<compile_context>
chip_gen: v7x
topology: tpu7x:2x2x1
jax: 0.10.0
libtpu: 0.0.40
codegen_flags: <defaults>
</compile_context>

<pallas_src>
import functools
import math

import jax
import jax.numpy as jnp
from jax import lax
from jax.experimental import pallas as pl
from jax.experimental.pallas import tpu as pltpu

NUM_HEADS = 4
LN_EPS = 1e-5
LANE = 128

# Column layout of the packed per-channel vector operand.
(VEC_LN1_W, VEC_LN1_B, VEC_BQ, VEC_BK, VEC_BV,
 VEC_OUT_B, VEC_LN2_W, VEC_LN2_B, VEC_FF1_B, VEC_FF2_B) = range(10)
NUM_VECS = 10


def _layernorm_fm(x, w, b):
    # Feature-major LayerNorm: x is (C, L), normalize over channels (axis 0).
    # w, b are (C, 1) columns so they broadcast along lanes.
    mu = jnp.mean(x, axis=0, keepdims=True)
    var = jnp.mean((x - mu) ** 2, axis=0, keepdims=True)
    return (x - mu) * lax.rsqrt(var + LN_EPS) * w + b


def _erf_approx(x):
    # TODO(synk): erf via Abramowitz & Stegun 7.1.26 polynomial (|err| < 1.5e-7);
    # swap for lax.erf if Mosaic gains an erf lowering.  The 1/(1+p*|x|) divide
    # goes through the EUP (approx reciprocal) so it stays off the VPU slot.
    a1, a2, a3, a4, a5 = 0.254829592, -0.284496736, 1.421413741, -1.453152027, 1.061405429
    p = 0.3275911
    s = jnp.where(x >= 0.0, 1.0, -1.0)
    ax = jnp.abs(x)
    t = pl.reciprocal(1.0 + p * ax, approx=True)
    poly = ((((a5 * t + a4) * t + a3) * t + a2) * t + a1) * t
    return s * (1.0 - poly * jnp.exp(-ax * ax))


def _gelu_exact(x):
    # nn.GELU() default (approximate='none'): 0.5 * x * (1 + erf(x / sqrt(2)))
    return 0.5 * x * (1.0 + _erf_approx(x * (1.0 / math.sqrt(2.0))))


def self_attention_kernel(x_ref, vec_ref, wqkv_ref, out_w_ref, ff1_w_ref, ff2_w_ref,
                          o_ref, attn_ref, *, num_seq, seq_len, num_heads):
    x = x_ref[...].astype(jnp.float32)            # (C, L) feature-major, L = TB*N
    C = x.shape[0]
    D = C // num_heads

    vecs = vec_ref[...]                           # (C, NUM_VECS) f32, packed vectors
    col = lambda j: vecs[:, j:j + 1]              # (C, 1) column, broadcasts over lanes

    # --- LayerNorm 1 (f32, over channels) ---
    x_ln = _layernorm_fm(x, col(VEC_LN1_W), col(VEC_LN1_B))

    # --- fused QKV projection: one MXU matmul, PyTorch (3C, C) weight as-is.
    #     The 1/sqrt(D) query scale is already folded into the q rows of wqkv/bq. ---
    qkv = jnp.dot(wqkv_ref[...], x_ln.astype(jnp.bfloat16),
                  preferred_element_type=jnp.float32)              # (3C, L) f32
    q = (qkv[:C] + col(VEC_BQ)).astype(jnp.bfloat16)
    k = (qkv[C:2 * C] + col(VEC_BK)).astype(jnp.bfloat16)
    v = (qkv[2 * C:] + col(VEC_BV)).astype(jnp.bfloat16)

    # --- multi-head scaled dot-product attention ---
    # Head slices are D-row sublane slices; per-sequence slices are N-wide lane
    # column slices.  Each head output is written directly into the VMEM scratch
    # accumulator, so the head merge is free (no concatenate, short live ranges).
    for t in range(num_seq):
        cols = slice(t * seq_len, (t + 1) * seq_len)
        for h in range(num_heads):
            rows = slice(h * D, (h + 1) * D)
            qh, kh, vh = q[rows, cols], k[rows, cols], v[rows, cols]   # (D, N) each
            # s[n, m] = sum_d q[d, n] * k[d, m]
            s = lax.dot_general(qh, kh, (((0,), (0,)), ((), ())),
                                preferred_element_type=jnp.float32)    # (N, N) f32
            s = s - jnp.max(s, axis=-1, keepdims=True)
            p = jnp.exp(s)
            p = p * pl.reciprocal(jnp.sum(p, axis=-1, keepdims=True), approx=True)
            # o[d, n] = sum_m v[d, m] * p[n, m]
            attn_ref[rows, cols] = lax.dot_general(
                vh, p.astype(jnp.bfloat16), (((1,), (1,)), ((), ())),
                preferred_element_type=jnp.float32)                    # (D, N)

    # --- output projection + residual 1 ---
    attn = jnp.dot(out_w_ref[...], attn_ref[...].astype(jnp.bfloat16),
                   preferred_element_type=jnp.float32) + col(VEC_OUT_B)
    y = attn + x

    # --- ff_self: LN -> Linear -> GELU -> Linear, + residual 2 ---
    h1 = _layernorm_fm(y, col(VEC_LN2_W), col(VEC_LN2_B))
    h1 = jnp.dot(ff1_w_ref[...], h1.astype(jnp.bfloat16),
                 preferred_element_type=jnp.float32) + col(VEC_FF1_B)
    h1 = _gelu_exact(h1)
    h1 = jnp.dot(ff2_w_ref[...], h1.astype(jnp.bfloat16),
                 preferred_element_type=jnp.float32) + col(VEC_FF2_B)

    o_ref[...] = (h1 + y).astype(o_ref.dtype)


def _pick_seqs_per_step(batch, seq_len):
    """Largest divisor of `batch` that packs up to ~128 lanes per grid step."""
    target = max(1, pl.cdiv(LANE, seq_len))
    best = 1
    for d in range(1, batch + 1):
        if batch % d == 0 and d <= target:
            best = d
    return best


def self_attention_forward(x, params, size):
    B, C, H, W = x.shape
    assert H == size and W == size
    assert C % NUM_HEADS == 0
    N = size * size
    D = C // NUM_HEADS
    scale = 1.0 / math.sqrt(D)
    f32, bf16 = jnp.float32, jnp.bfloat16

    # Lane-dense feature-major activation layout: (C, B*N), sequences packed along
    # the lane axis so every token-wise stage works on >=128 lanes.
    x_fm = x.reshape(B, C, N).transpose(1, 0, 2).reshape(C, B * N).astype(f32)

    # Fold the 1/sqrt(D) query scale into the q rows of the fused QKV weight/bias
    # (one-time weight transform, constant-folded outside the kernel).
    wqkv_p = params["in_proj_weight"]
    wqkv = jnp.concatenate([wqkv_p[:C] * scale, wqkv_p[C:]], axis=0).astype(bf16)  # (3C, C)
    bqkv = params["in_proj_bias"]
    out_w = params["out_w"].astype(bf16)
    ff1_w = params["ff1_w"].astype(bf16)
    ff2_w = params["ff2_w"].astype(bf16)

    # Pack all per-channel vectors into one (C, NUM_VECS) f32 operand: one DMA,
    # shared lane padding (instead of ten separate lane-padded (C, 1) blocks).
    vecs = jnp.stack(
        [params["ln1_w"], params["ln1_b"],
         bqkv[:C] * scale, bqkv[C:2 * C], bqkv[2 * C:],
         params["out_b"], params["ln2_w"], params["ln2_b"],
         params["ff1_b"], params["ff2_b"]],
        axis=1).astype(f32)                                                       # (C, 10)

    TB = _pick_seqs_per_step(B, N)       # sequences per grid step (lane packing)
    L = TB * N
    grid = (B // TB,)

    kernel = functools.partial(self_attention_kernel,
                               num_seq=TB, seq_len=N, num_heads=NUM_HEADS)
    full = lambda a: pl.BlockSpec(a.shape, lambda g: (0, 0))

    out_fm = pl.pallas_call(
        kernel,
        out_shape=jax.ShapeDtypeStruct((C, B * N), f32),
        grid_spec=pltpu.PrefetchScalarGridSpec(
            num_scalar_prefetch=0,
            grid=grid,
            in_specs=[
                pl.BlockSpec((C, L), lambda g: (0, g)),   # x, TB sequences per step
                full(vecs), full(wqkv), full(out_w), full(ff1_w), full(ff2_w),
            ],
            out_specs=pl.BlockSpec((C, L), lambda g: (0, g)),
            scratch_shapes=[pltpu.VMEM((C, L), jnp.float32)],   # head-merge accumulator
        ),
        compiler_params=pltpu.CompilerParams(dimension_semantics=("parallel",)),
    )(x_fm, vecs, wqkv, out_w, ff1_w, ff2_w)

    return out_fm.reshape(C, B, N).transpose(1, 0, 2).reshape(B, C, size, size)


def reference_forward(x, params, size):
    """Pure-JAX f32 reference (mirrors PyTorch SelfAttention.forward)."""
    B, C = x.shape[0], x.shape[1]
    N = size * size
    D = C // NUM_HEADS
    xs = x.reshape(B, C, N).transpose(0, 2, 1)

    def ln(v, w, b):
        mu = v.mean(-1, keepdims=True)
        var = ((v - mu) ** 2).mean(-1, keepdims=True)
        return (v - mu) / jnp.sqrt(var + LN_EPS) * w + b

    x_ln = ln(xs, params["ln1_w"], params["ln1_b"])
    qkv = x_ln @ params["in_proj_weight"].T + params["in_proj_bias"]
    q, k, v = jnp.split(qkv, 3, axis=-1)

    def split_heads(t):
        return t.reshape(B, N, NUM_HEADS, D).transpose(0, 2, 1, 3)

    qh, kh, vh = split_heads(q), split_heads(k), split_heads(v)
    s = (qh @ kh.transpose(0, 1, 3, 2)) / math.sqrt(D)
    p = jax.nn.softmax(s, axis=-1)
    o = (p @ vh).transpose(0, 2, 1, 3).reshape(B, N, C)
    attn = o @ params["out_w"].T + params["out_b"]
    y = attn + xs

    h = ln(y, params["ln2_w"], params["ln2_b"])
    h = h @ params["ff1_w"].T + params["ff1_b"]
    h = jax.nn.gelu(h, approximate=False)
    h = h @ params["ff2_w"].T + params["ff2_b"]
    out = h + y
    return out.transpose(0, 2, 1).reshape(B, C, size, size)


def init_params(key, C):
    ks = jax.random.split(key, 6)
    return {
        "ln1_w": jnp.ones((C,), jnp.float32),
        "ln1_b": jnp.zeros((C,), jnp.float32),
        "in_proj_weight": 0.02 * jax.random.normal(ks[0], (3 * C, C), jnp.float32),
        "in_proj_bias": 0.02 * jax.random.normal(ks[1], (3 * C,), jnp.float32),
        "out_w": 0.02 * jax.random.normal(ks[2], (C, C), jnp.float32),
        "out_b": jnp.zeros((C,), jnp.float32),
        "ln2_w": jnp.ones((C,), jnp.float32),
        "ln2_b": jnp.zeros((C,), jnp.float32),
        "ff1_w": 0.02 * jax.random.normal(ks[3], (C, C), jnp.float32),
        "ff1_b": 0.02 * jax.random.normal(ks[4], (C,), jnp.float32),
        "ff2_w": 0.02 * jax.random.normal(ks[5], (C, C), jnp.float32),
        "ff2_b": jnp.zeros((C,), jnp.float32),
    }


if __name__ == "__main__":
    B, C, size = 2, 32, 8                 # channels=32 (4 heads x 8), size=8 -> N=64
    key = jax.random.PRNGKey(0)
    kx, kp = jax.random.split(key)
    x = jax.random.normal(kx, (B, C, size, size), jnp.float32)
    params = init_params(kp, C)

    out = self_attention_forward(x, params, size)
    out = jax.block_until_ready(out)
    assert out.shape == (B, C, size, size)

    ref = reference_forward(x, params, size)
    # bf16 MXU inputs (f32 accumulation) + approx reciprocals -> slightly looser tol.
    assert jnp.allclose(out, ref, atol=5e-3, rtol=5e-3), "mismatch vs reference"

    print("KERNEL_OK")
</pallas_src>

<mosaic_0001>
module attributes {stable_mosaic.version = 11 : i64} {
  func.func @self_attention_kernel(%arg0: i32, %arg1: memref<32x128xf32, #tpu.memory_space<vmem>>, %arg2: memref<32x10xf32, #tpu.memory_space<vmem>>, %arg3: memref<96x32xbf16, #tpu.memory_space<vmem>>, %arg4: memref<32x32xbf16, #tpu.memory_space<vmem>>, %arg5: memref<32x32xbf16, #tpu.memory_space<vmem>>, %arg6: memref<32x32xbf16, #tpu.memory_space<vmem>>, %arg7: memref<32x128xf32, #tpu.memory_space<vmem>>, %arg8: memref<32x128xf32, #tpu.memory_space<vmem>>) attributes {dimension_semantics = [#tpu.dimension_semantics<parallel>], iteration_bounds = array<i64: 1>, scalar_prefetch = 0 : i64, scratch_operands = 1 : i64, tpu.core_type = #tpu.core_type<tc>, window_params = [{transform_indices = @transform_0, window_bounds = array<i64: 32, 128>}, {pipeline_mode = #tpu.pipeline_mode<synchronous>, transform_indices = @transform_1, window_bounds = array<i64: 32, 10>}, {pipeline_mode = #tpu.pipeline_mode<synchronous>, transform_indices = @transform_2, window_bounds = array<i64: 96, 32>}, {pipeline_mode = #tpu.pipeline_mode<synchronous>, transform_indices = @transform_3, window_bounds = array<i64: 32, 32>}, {pipeline_mode = #tpu.pipeline_mode<synchronous>, transform_indices = @transform_4, window_bounds = array<i64: 32, 32>}, {pipeline_mode = #tpu.pipeline_mode<synchronous>, transform_indices = @transform_5, window_bounds = array<i64: 32, 32>}, {transform_indices = @transform_6, window_bounds = array<i64: 32, 128>}]} {
    %c0 = arith.constant 0 : index
    %c0_0 = arith.constant 0 : index
    %0 = vector.load %arg1[%c0, %c0_0] : memref<32x128xf32, #tpu.memory_space<vmem>>, vector<32x128xf32>
    %c0_1 = arith.constant 0 : index
    %c0_2 = arith.constant 0 : index
    %1 = vector.load %arg2[%c0_1, %c0_2] : memref<32x10xf32, #tpu.memory_space<vmem>>, vector<32x10xf32>
    %2 = vector.extract_strided_slice %1 {offsets = [0, 0], sizes = [32, 1], strides = [1, 1]} : vector<32x10xf32> to vector<32x1xf32>
    %3 = vector.extract_strided_slice %1 {offsets = [0, 1], sizes = [32, 1], strides = [1, 1]} : vector<32x10xf32> to vector<32x1xf32>
    %cst = arith.constant dense<0.000000e+00> : vector<128xf32>
    %4 = vector.multi_reduction <add>, %0, %cst [0] : vector<32x128xf32> to vector<128xf32>
    %5 = vector.shape_cast %4 : vector<128xf32> to vector<1x128xf32>
    %cst_3 = arith.constant 3.200000e+01 : f32
    %6 = vector.broadcast %cst_3 : f32 to vector<1x128xf32>
    %7 = arith.divf %5, %6 : vector<1x128xf32>
    %8 = vector.broadcast %7 : vector<1x128xf32> to vector<32x128xf32>
    %9 = arith.subf %0, %8 : vector<32x128xf32>
    %10 = arith.mulf %9, %9 : vector<32x128xf32>
    %cst_4 = arith.constant dense<0.000000e+00> : vector<128xf32>
    %11 = vector.multi_reduction <add>, %10, %cst_4 [0] : vector<32x128xf32> to vector<128xf32>
    %12 = vector.shape_cast %11 : vector<128xf32> to vector<1x128xf32>
    %cst_5 = arith.constant 3.200000e+01 : f32
    %13 = vector.broadcast %cst_5 : f32 to vector<1x128xf32>
    %14 = arith.divf %12, %13 : vector<1x128xf32>
    %15 = vector.broadcast %7 : vector<1x128xf32> to vector<32x128xf32>
    %16 = arith.subf %0, %15 : vector<32x128xf32>
    %cst_6 = arith.constant 9.99999974E-6 : f32
    %17 = vector.broadcast %cst_6 : f32 to vector<1x128xf32>
    %18 = arith.addf %14, %17 : vector<1x128xf32>
    %19 = math.rsqrt %18 : vector<1x128xf32>
    %20 = vector.broadcast %19 : vector<1x128xf32> to vector<32x128xf32>
    %21 = arith.mulf %16, %20 : vector<32x128xf32>
    %22 = vector.broadcast %2 : vector<32x1xf32> to vector<32x128xf32>
    %23 = arith.mulf %21, %22 : vector<32x128xf32>
    %24 = vector.broadcast %3 : vector<32x1xf32> to vector<32x128xf32>
    %25 = arith.addf %23, %24 : vector<32x128xf32>
    %c0_7 = arith.constant 0 : index
    %c0_8 = arith.constant 0 : index
    %26 = vector.load %arg3[%c0_7, %c0_8] : memref<96x32xbf16, #tpu.memory_space<vmem>>, vector<96x32xbf16>
    %27 = arith.truncf %25 : vector<32x128xf32> to vector<32x128xbf16>
    %cst_9 = arith.constant dense<0.000000e+00> : vector<96x128xf32>
    %28 = tpu.matmul %26, %27, %cst_9 {dimension_numbers = #tpu.dot_dimension_numbers<[1], [0], [0], [1], [0, 0, 1, 1], [], []>} : vector<96x32xbf16>, vector<32x128xbf16>, vector<96x128xf32> -> vector<96x128xf32>
    %29 = vector.extract_strided_slice %28 {offsets = [0, 0], sizes = [32, 128], strides = [1, 1]} : vector<96x128xf32> to vector<32x128xf32>
    %30 = vector.extract_strided_slice %1 {offsets = [0, 2], sizes = [32, 1], strides = [1, 1]} : vector<32x10xf32> to vector<32x1xf32>
    %31 = vector.broadcast %30 : vector<32x1xf32> to vector<32x128xf32>
    %32 = arith.addf %29, %31 : vector<32x128xf32>
    %33 = arith.truncf %32 : vector<32x128xf32> to vector<32x128xbf16>
    %34 = vector.extract_strided_slice %28 {offsets = [32, 0], sizes = [32, 128], strides = [1, 1]} : vector<96x128xf32> to vector<32x128xf32>
    %35 = vector.extract_strided_slice %1 {offsets = [0, 3], sizes = [32, 1], strides = [1, 1]} : vector<32x10xf32> to vector<32x1xf32>
    %36 = vector.broadcast %35 : vector<32x1xf32> to vector<32x128xf32>
    %37 = arith.addf %34, %36 : vector<32x128xf32>
    %38 = arith.truncf %37 : vector<32x128xf32> to vector<32x128xbf16>
    %39 = vector.extract_strided_slice %28 {offsets = [64, 0], sizes = [32, 128], strides = [1, 1]} : vector<96x128xf32> to vector<32x128xf32>
    %40 = vector.extract_strided_slice %1 {offsets = [0, 4], sizes = [32, 1], strides = [1, 1]} : vector<32x10xf32> to vector<32x1xf32>
    %41 = vector.broadcast %40 : vector<32x1xf32> to vector<32x128xf32>
    %42 = arith.addf %39, %41 : vector<32x128xf32>
    %43 = arith.truncf %42 : vector<32x128xf32> to vector<32x128xbf16>
    %44 = vector.extract_strided_slice %33 {offsets = [0, 0], sizes = [8, 64], strides = [1, 1]} : vector<32x128xbf16> to vector<8x64xbf16>
    %45 = vector.extract_strided_slice %38 {offsets = [0, 0], sizes = [8, 64], strides = [1, 1]} : vector<32x128xbf16> to vector<8x64xbf16>
    %46 = vector.extract_strided_slice %43 {offsets = [0, 0], sizes = [8, 64], strides = [1, 1]} : vector<32x128xbf16> to vector<8x64xbf16>
    %cst_10 = arith.constant dense<0.000000e+00> : vector<64x64xf32>
    %47 = tpu.matmul %44, %45, %cst_10 {dimension_numbers = #tpu.dot_dimension_numbers<[0], [0], [1], [1], [0, 1, 1, 1], [], []>} : vector<8x64xbf16>, vector<8x64xbf16>, vector<64x64xf32> -> vector<64x64xf32>
    %cst_11 = arith.constant dense<0xFF800000> : vector<64xf32>
    %48 = vector.multi_reduction <maximumf>, %47, %cst_11 [1] : vector<64x64xf32> to vector<64xf32>
    %49 = vector.shape_cast %48 : vector<64xf32> to vector<64x1xf32>
    %50 = vector.broadcast %49 : vector<64x1xf32> to vector<64x64xf32>
    %51 = arith.subf %47, %50 : vector<64x64xf32>
    %52 = math.exp %51 : vector<64x64xf32>
    %cst_12 = arith.constant dense<0.000000e+00> : vector<64xf32>
    %53 = vector.multi_reduction <add>, %52, %cst_12 [1] : vector<64x64xf32> to vector<64xf32>
    %54 = vector.shape_cast %53 : vector<64xf32> to vector<64x1xf32>
    %55 = tpu.reciprocal %54 {approx = true} : vector<64x1xf32> -> vector<64x1xf32>
    %56 = vector.broadcast %55 : vector<64x1xf32> to vector<64x64xf32>
    %57 = arith.mulf %52, %56 : vector<64x64xf32>
    %58 = arith.truncf %57 : vector<64x64xf32> to vector<64x64xbf16>
    %cst_13 = arith.constant dense<0.000000e+00> : vector<8x64xf32>
    %59 = tpu.matmul %46, %58, %cst_13 {dimension_numbers = #tpu.dot_dimension_numbers<[1], [1], [0], [0], [0, 0, 1, 0], [], []>} : vector<8x64xbf16>, vector<64x64xbf16>, vector<8x64xf32> -> vector<8x64xf32>
    %c0_14 = arith.constant 0 : index
    %c0_15 = arith.constant 0 : index
    %60 = vector.load %arg8[%c0_14, %c0_15] : memref<32x128xf32, #tpu.memory_space<vmem>>, vector<8x64xf32>
    tpu.vector_store %arg8[%c0_14, %c0_15], %59 {strides = array<i32>} : memref<32x128xf32, #tpu.memory_space<vmem>>, vector<8x64xf32>,
    %61 = vector.extract_strided_slice %33 {offsets = [8, 0], sizes = [8, 64], strides = [1, 1]} : vector<32x128xbf16> to vector<8x64xbf16>
    %62 = vector.extract_strided_slice %38 {offsets = [8, 0], sizes = [8, 64], strides = [1, 1]} : vector<32x128xbf16> to vector<8x64xbf16>
    %63 = vector.extract_strided_slice %43 {offsets = [8, 0], sizes = [8, 64], strides = [1, 1]} : vector<32x128xbf16> to vector<8x64xbf16>
    %cst_16 = arith.constant dense<0.000000e+00> : vector<64x64xf32>
    %64 = tpu.matmul %61, %62, %cst_16 {dimension_numbers = #tpu.dot_dimension_numbers<[0], [0], [1], [1], [0, 1, 1, 1], [], []>} : vector<8x64xbf16>, vector<8x64xbf16>, vector<64x64xf32> -> vector<64x64xf32>
    %cst_17 = arith.constant dense<0xFF800000> : vector<64xf32>
    %65 = vector.multi_reduction <maximumf>, %64, %cst_17 [1] : vector<64x64xf32> to vector<64xf32>
    %66 = vector.shape_cast %65 : vector<64xf32> to vector<64x1xf32>
    %67 = vector.broadcast %66 : vector<64x1xf32> to vector<64x64xf32>
    %68 = arith.subf %64, %67 : vector<64x64xf32>
    %69 = math.exp %68 : vector<64x64xf32>
    %cst_18 = arith.constant dense<0.000000e+00> : vector<64xf32>
    %70 = vector.multi_reduction <add>, %69, %cst_18 [1] : vector<64x64xf32> to vector<64xf32>
    %71 = vector.shape_cast %70 : vector<64xf32> to vector<64x1xf32>
    %72 = tpu.reciprocal %71 {approx = true} : vector<64x1xf32> -> vector<64x1xf32>
    %73 = vector.broadcast %72 : vector<64x1xf32> to vector<64x64xf32>
    %74 = arith.mulf %69, %73 : vector<64x64xf32>
    %75 = arith.truncf %74 : vector<64x64xf32> to vector<64x64xbf16>
    %cst_19 = arith.constant dense<0.000000e+00> : vector<8x64xf32>
    %76 = tpu.matmul %63, %75, %cst_19 {dimension_numbers = #tpu.dot_dimension_numbers<[1], [1], [0], [0], [0, 0, 1, 0], [], []>} : vector<8x64xbf16>, vector<64x64xbf16>, vector<8x64xf32> -> vector<8x64xf32>
    %c8 = arith.constant 8 : index
    %c0_20 = arith.constant 0 : index
    %77 = vector.load %arg8[%c8, %c0_20] : memref<32x128xf32, #tpu.memory_space<vmem>>, vector<8x64xf32>
    tpu.vector_store %arg8[%c8, %c0_20], %76 {strides = array<i32>} : memref<32x128xf32, #tpu.memory_space<vmem>>, vector<8x64xf32>,
    %78 = vector.extract_strided_slice %33 {offsets = [16, 0], sizes = [8, 64], strides = [1, 1]} : vector<32x128xbf16> to vector<8x64xbf16>
    %79 = vector.extract_strided_slice %38 {offsets = [16, 0], sizes = [8, 64], strides = [1, 1]} : vector<32x128xbf16> to vector<8x64xbf16>
    %80 = vector.extract_strided_slice %43 {offsets = [16, 0], sizes = [8, 64], strides = [1, 1]} : vector<32x128xbf16> to vector<8x64xbf16>
    %cst_21 = arith.constant dense<0.000000e+00> : vector<64x64xf32>
    %81 = tpu.matmul %78, %79, %cst_21 {dimension_numbers = #tpu.dot_dimension_numbers<[0], [0], [1], [1], [0, 1, 1, 1], [], []>} : vector<8x64xbf16>, vector<8x64xbf16>, vector<64x64xf32> -> vector<64x64xf32>
    %cst_22 = arith.constant dense<0xFF800000> : vector<64xf32>
    %82 = vector.multi_reduction <maximumf>, %81, %cst_22 [1] : vector<64x64xf32> to vector<64xf32>
    %83 = vector.shape_cast %82 : vector<64xf32> to vector<64x1xf32>
    %84 = vector.broadcast %83 : vector<64x1xf32> to vector<64x64xf32>
    %85 = arith.subf %81, %84 : vector<64x64xf32>
    %86 = math.exp %85 : vector<64x64xf32>
    %cst_23 = arith.constant dense<0.000000e+00> : vector<64xf32>
    %87 = vector.multi_reduction <add>, %86, %cst_23 [1] : vector<64x64xf32> to vector<64xf32>
    %88 = vector.shape_cast %87 : vector<64xf32> to vector<64x1xf32>
    %89 = tpu.reciprocal %88 {approx = true} : vector<64x1xf32> -> vector<64x1xf32>
    %90 = vector.broadcast %89 : vector<64x1xf32> to vector<64x64xf32>
    %91 = arith.mulf %86, %90 : vector<64x64xf32>
    %92 = arith.truncf %91 : vector<64x64xf32> to vector<64x64xbf16>
    %cst_24 = arith.constant dense<0.000000e+00> : vector<8x64xf32>
    %93 = tpu.matmul %80, %92, %cst_24 {dimension_numbers = #tpu.dot_dimension_numbers<[1], [1], [0], [0], [0, 0, 1, 0], [], []>} : vector<8x64xbf16>, vector<64x64xbf16>, vector<8x64xf32> -> vector<8x64xf32>
    %c16 = arith.constant 16 : index
    %c0_25 = arith.constant 0 : index
    %94 = vector.load %arg8[%c16, %c0_25] : memref<32x128xf32, #tpu.memory_space<vmem>>, vector<8x64xf32>
    tpu.vector_store %arg8[%c16, %c0_25], %93 {strides = array<i32>} : memref<32x128xf32, #tpu.memory_space<vmem>>, vector<8x64xf32>,
    %95 = vector.extract_strided_slice %33 {offsets = [24, 0], sizes = [8, 64], strides = [1, 1]} : vector<32x128xbf16> to vector<8x64xbf16>
    %96 = vector.extract_strided_slice %38 {offsets = [24, 0], sizes = [8, 64], strides = [1, 1]} : vector<32x128xbf16> to vector<8x64xbf16>
    %97 = vector.extract_strided_slice %43 {offsets = [24, 0], sizes = [8, 64], strides = [1, 1]} : vector<32x128xbf16> to vector<8x64xbf16>
    %cst_26 = arith.constant dense<0.000000e+00> : vector<64x64xf32>
    %98 = tpu.matmul %95, %96, %cst_26 {dimension_numbers = #tpu.dot_dimension_numbers<[0], [0], [1], [1], [0, 1, 1, 1], [], []>} : vector<8x64xbf16>, vector<8x64xbf16>, vector<64x64xf32> -> vector<64x64xf32>
    %cst_27 = arith.constant dense<0xFF800000> : vector<64xf32>
    %99 = vector.multi_reduction <maximumf>, %98, %cst_27 [1] : vector<64x64xf32> to vector<64xf32>
    %100 = vector.shape_cast %99 : vector<64xf32> to vector<64x1xf32>
    %101 = vector.broadcast %100 : vector<64x1xf32> to vector<64x64xf32>
    %102 = arith.subf %98, %101 : vector<64x64xf32>
    %103 = math.exp %102 : vector<64x64xf32>
    %cst_28 = arith.constant dense<0.000000e+00> : vector<64xf32>
    %104 = vector.multi_reduction <add>, %103, %cst_28 [1] : vector<64x64xf32> to vector<64xf32>
    %105 = vector.shape_cast %104 : vector<64xf32> to vector<64x1xf32>
    %106 = tpu.reciprocal %105 {approx = true} : vector<64x1xf32> -> vector<64x1xf32>
    %107 = vector.broadcast %106 : vector<64x1xf32> to vector<64x64xf32>
    %108 = arith.mulf %103, %107 : vector<64x64xf32>
    %109 = arith.truncf %108 : vector<64x64xf32> to vector<64x64xbf16>
    %cst_29 = arith.constant dense<0.000000e+00> : vector<8x64xf32>
    %110 = tpu.matmul %97, %109, %cst_29 {dimension_numbers = #tpu.dot_dimension_numbers<[1], [1], [0], [0], [0, 0, 1, 0], [], []>} : vector<8x64xbf16>, vector<64x64xbf16>, vector<8x64xf32> -> vector<8x64xf32>
    %c24 = arith.constant 24 : index
    %c0_30 = arith.constant 0 : index
    %111 = vector.load %arg8[%c24, %c0_30] : memref<32x128xf32, #tpu.memory_space<vmem>>, vector<8x64xf32>
    tpu.vector_store %arg8[%c24, %c0_30], %110 {strides = array<i32>} : memref<32x128xf32, #tpu.memory_space<vmem>>, vector<8x64xf32>,
    %112 = vector.extract_strided_slice %33 {offsets = [0, 64], sizes = [8, 64], strides = [1, 1]} : vector<32x128xbf16> to vector<8x64xbf16>
    %113 = vector.extract_strided_slice %38 {offsets = [0, 64], sizes = [8, 64], strides = [1, 1]} : vector<32x128xbf16> to vector<8x64xbf16>
    %114 = vector.extract_strided_slice %43 {offsets = [0, 64], sizes = [8, 64], strides = [1, 1]} : vector<32x128xbf16> to vector<8x64xbf16>
    %cst_31 = arith.constant dense<0.000000e+00> : vector<64x64xf32>
    %115 = tpu.matmul %112, %113, %cst_31 {dimension_numbers = #tpu.dot_dimension_numbers<[0], [0], [1], [1], [0, 1, 1, 1], [], []>} : vector<8x64xbf16>, vector<8x64xbf16>, vector<64x64xf32> -> vector<64x64xf32>
    %cst_32 = arith.constant dense<0xFF800000> : vector<64xf32>
    %116 = vector.multi_reduction <maximumf>, %115, %cst_32 [1] : vector<64x64xf32> to vector<64xf32>
    %117 = vector.shape_cast %116 : vector<64xf32> to vector<64x1xf32>
    %118 = vector.broadcast %117 : vector<64x1xf32> to vector<64x64xf32>
    %119 = arith.subf %115, %118 : vector<64x64xf32>
    %120 = math.exp %119 : vector<64x64xf32>
    %cst_33 = arith.constant dense<0.000000e+00> : vector<64xf32>
    %121 = vector.multi_reduction <add>, %120, %cst_33 [1] : vector<64x64xf32> to vector<64xf32>
    %122 = vector.shape_cast %121 : vector<64xf32> to vector<64x1xf32>
    %123 = tpu.reciprocal %122 {approx = true} : vector<64x1xf32> -> vector<64x1xf32>
    %124 = vector.broadcast %123 : vector<64x1xf32> to vector<64x64xf32>
    %125 = arith.mulf %120, %124 : vector<64x64xf32>
    %126 = arith.truncf %125 : vector<64x64xf32> to vector<64x64xbf16>
    %cst_34 = arith.constant dense<0.000000e+00> : vector<8x64xf32>
    %127 = tpu.matmul %114, %126, %cst_34 {dimension_numbers = #tpu.dot_dimension_numbers<[1], [1], [0], [0], [0, 0, 1, 0], [], []>} : vector<8x64xbf16>, vector<64x64xbf16>, vector<8x64xf32> -> vector<8x64xf32>
    %c0_35 = arith.constant 0 : index
    %c64 = arith.constant 64 : index
    %128 = vector.load %arg8[%c0_35, %c64] : memref<32x128xf32, #tpu.memory_space<vmem>>, vector<8x64xf32>
    tpu.vector_store %arg8[%c0_35, %c64], %127 {strides = array<i32>} : memref<32x128xf32, #tpu.memory_space<vmem>>, vector<8x64xf32>,
    %129 = vector.extract_strided_slice %33 {offsets = [8, 64], sizes = [8, 64], strides = [1, 1]} : vector<32x128xbf16> to vector<8x64xbf16>
    %130 = vector.extract_strided_slice %38 {offsets = [8, 64], sizes = [8, 64], strides = [1, 1]} : vector<32x128xbf16> to vector<8x64xbf16>
    %131 = vector.extract_strided_slice %43 {offsets = [8, 64], sizes = [8, 64], strides = [1, 1]} : vector<32x128xbf16> to vector<8x64xbf16>
    %cst_36 = arith.constant dense<0.000000e+00> : vector<64x64xf32>
    %132 = tpu.matmul %129, %130, %cst_36 {dimension_numbers = #tpu.dot_dimension_numbers<[0], [0], [1], [1], [0, 1, 1, 1], [], []>} : vector<8x64xbf16>, vector<8x64xbf16>, vector<64x64xf32> -> vector<64x64xf32>
    %cst_37 = arith.constant dense<0xFF800000> : vector<64xf32>
    %133 = vector.multi_reduction <maximumf>, %132, %cst_37 [1] : vector<64x64xf32> to vector<64xf32>
    %134 = vector.shape_cast %133 : vector<64xf32> to vector<64x1xf32>
    %135 = vector.broadcast %134 : vector<64x1xf32> to vector<64x64xf32>
    %136 = arith.subf %132, %135 : vector<64x64xf32>
    %137 = math.exp %136 : vector<64x64xf32>
    %cst_38 = arith.constant dense<0.000000e+00> : vector<64xf32>
    %138 = vector.multi_reduction <add>, %137, %cst_38 [1] : vector<64x64xf32> to vector<64xf32>
    %139 = vector.shape_cast %138 : vector<64xf32> to vector<64x1xf32>
    %140 = tpu.reciprocal %139 {approx = true} : vector<64x1xf32> -> vector<64x1xf32>
    %141 = vector.broadcast %140 : vector<64x1xf32> to vector<64x64xf32>
    %142 = arith.mulf %137, %141 : vector<64x64xf32>
    %143 = arith.truncf %142 : vector<64x64xf32> to vector<64x64xbf16>
    %cst_39 = arith.constant dense<0.000000e+00> : vector<8x64xf32>
    %144 = tpu.matmul %131, %143, %cst_39 {dimension_numbers = #tpu.dot_dimension_numbers<[1], [1], [0], [0], [0, 0, 1, 0], [], []>} : vector<8x64xbf16>, vector<64x64xbf16>, vector<8x64xf32> -> vector<8x64xf32>
    %c8_40 = arith.constant 8 : index
    %c64_41 = arith.constant 64 : index
    %145 = vector.load %arg8[%c8_40, %c64_41] : memref<32x128xf32, #tpu.memory_space<vmem>>, vector<8x64xf32>
    tpu.vector_store %arg8[%c8_40, %c64_41], %144 {strides = array<i32>} : memref<32x128xf32, #tpu.memory_space<vmem>>, vector<8x64xf32>,
    %146 = vector.extract_strided_slice %33 {offsets = [16, 64], sizes = [8, 64], strides = [1, 1]} : vector<32x128xbf16> to vector<8x64xbf16>
    %147 = vector.extract_strided_slice %38 {offsets = [16, 64], sizes = [8, 64], strides = [1, 1]} : vector<32x128xbf16> to vector<8x64xbf16>
    %148 = vector.extract_strided_slice %43 {offsets = [16, 64], sizes = [8, 64], strides = [1, 1]} : vector<32x128xbf16> to vector<8x64xbf16>
    %cst_42 = arith.constant dense<0.000000e+00> : vector<64x64xf32>
    %149 = tpu.matmul %146, %147, %cst_42 {dimension_numbers = #tpu.dot_dimension_numbers<[0], [0], [1], [1], [0, 1, 1, 1], [], []>} : vector<8x64xbf16>, vector<8x64xbf16>, vector<64x64xf32> -> vector<64x64xf32>
    %cst_43 = arith.constant dense<0xFF800000> : vector<64xf32>
    %150 = vector.multi_reduction <maximumf>, %149, %cst_43 [1] : vector<64x64xf32> to vector<64xf32>
    %151 = vector.shape_cast %150 : vector<64xf32> to vector<64x1xf32>
    %152 = vector.broadcast %151 : vector<64x1xf32> to vector<64x64xf32>
    %153 = arith.subf %149, %152 : vector<64x64xf32>
    %154 = math.exp %153 : vector<64x64xf32>
    %cst_44 = arith.constant dense<0.000000e+00> : vector<64xf32>
    %155 = vector.multi_reduction <add>, %154, %cst_44 [1] : vector<64x64xf32> to vector<64xf32>
    %156 = vector.shape_cast %155 : vector<64xf32> to vector<64x1xf32>
    %157 = tpu.reciprocal %156 {approx = true} : vector<64x1xf32> -> vector<64x1xf32>
    %158 = vector.broadcast %157 : vector<64x1xf32> to vector<64x64xf32>
    %159 = arith.mulf %154, %158 : vector<64x64xf32>
    %160 = arith.truncf %159 : vector<64x64xf32> to vector<64x64xbf16>
    %cst_45 = arith.constant dense<0.000000e+00> : vector<8x64xf32>
    %161 = tpu.matmul %148, %160, %cst_45 {dimension_numbers = #tpu.dot_dimension_numbers<[1], [1], [0], [0], [0, 0, 1, 0], [], []>} : vector<8x64xbf16>, vector<64x64xbf16>, vector<8x64xf32> -> vector<8x64xf32>
    %c16_46 = arith.constant 16 : index
    %c64_47 = arith.constant 64 : index
    %162 = vector.load %arg8[%c16_46, %c64_47] : memref<32x128xf32, #tpu.memory_space<vmem>>, vector<8x64xf32>
    tpu.vector_store %arg8[%c16_46, %c64_47], %161 {strides = array<i32>} : memref<32x128xf32, #tpu.memory_space<vmem>>, vector<8x64xf32>,
    %163 = vector.extract_strided_slice %33 {offsets = [24, 64], sizes = [8, 64], strides = [1, 1]} : vector<32x128xbf16> to vector<8x64xbf16>
    %164 = vector.extract_strided_slice %38 {offsets = [24, 64], sizes = [8, 64], strides = [1, 1]} : vector<32x128xbf16> to vector<8x64xbf16>
    %165 = vector.extract_strided_slice %43 {offsets = [24, 64], sizes = [8, 64], strides = [1, 1]} : vector<32x128xbf16> to vector<8x64xbf16>
    %cst_48 = arith.constant dense<0.000000e+00> : vector<64x64xf32>
    %166 = tpu.matmul %163, %164, %cst_48 {dimension_numbers = #tpu.dot_dimension_numbers<[0], [0], [1], [1], [0, 1, 1, 1], [], []>} : vector<8x64xbf16>, vector<8x64xbf16>, vector<64x64xf32> -> vector<64x64xf32>
    %cst_49 = arith.constant dense<0xFF800000> : vector<64xf32>
    %167 = vector.multi_reduction <maximumf>, %166, %cst_49 [1] : vector<64x64xf32> to vector<64xf32>
    %168 = vector.shape_cast %167 : vector<64xf32> to vector<64x1xf32>
    %169 = vector.broadcast %168 : vector<64x1xf32> to vector<64x64xf32>
    %170 = arith.subf %166, %169 : vector<64x64xf32>
    %171 = math.exp %170 : vector<64x64xf32>
    %cst_50 = arith.constant dense<0.000000e+00> : vector<64xf32>
    %172 = vector.multi_reduction <add>, %171, %cst_50 [1] : vector<64x64xf32> to vector<64xf32>
    %173 = vector.shape_cast %172 : vector<64xf32> to vector<64x1xf32>
    %174 = tpu.reciprocal %173 {approx = true} : vector<64x1xf32> -> vector<64x1xf32>
    %175 = vector.broadcast %174 : vector<64x1xf32> to vector<64x64xf32>
    %176 = arith.mulf %171, %175 : vector<64x64xf32>
    %177 = arith.truncf %176 : vector<64x64xf32> to vector<64x64xbf16>
    %cst_51 = arith.constant dense<0.000000e+00> : vector<8x64xf32>
    %178 = tpu.matmul %165, %177, %cst_51 {dimension_numbers = #tpu.dot_dimension_numbers<[1], [1], [0], [0], [0, 0, 1, 0], [], []>} : vector<8x64xbf16>, vector<64x64xbf16>, vector<8x64xf32> -> vector<8x64xf32>
    %c24_52 = arith.constant 24 : index
    %c64_53 = arith.constant 64 : index
    %179 = vector.load %arg8[%c24_52, %c64_53] : memref<32x128xf32, #tpu.memory_space<vmem>>, vector<8x64xf32>
    tpu.vector_store %arg8[%c24_52, %c64_53], %178 {strides = array<i32>} : memref<32x128xf32, #tpu.memory_space<vmem>>, vector<8x64xf32>,
    %c0_54 = arith.constant 0 : index
    %c0_55 = arith.constant 0 : index
    %180 = vector.load %arg4[%c0_54, %c0_55] : memref<32x32xbf16, #tpu.memory_space<vmem>>, vector<32x32xbf16>
    %c0_56 = arith.constant 0 : index
    %c0_57 = arith.constant 0 : index
    %181 = vector.load %arg8[%c0_56, %c0_57] : memref<32x128xf32, #tpu.memory_space<vmem>>, vector<32x128xf32>
    %182 = arith.truncf %181 : vector<32x128xf32> to vector<32x128xbf16>
    %cst_58 = arith.constant dense<0.000000e+00> : vector<32x128xf32>
    %183 = tpu.matmul %180, %182, %cst_58 {dimension_numbers = #tpu.dot_dimension_numbers<[1], [0], [0], [1], [0, 0, 1, 1], [], []>} : vector<32x32xbf16>, vector<32x128xbf16>, vector<32x128xf32> -> vector<32x128xf32>
    %184 = vector.extract_strided_slice %1 {offsets = [0, 5], sizes = [32, 1], strides = [1, 1]} : vector<32x10xf32> to vector<32x1xf32>
    %185 = vector.broadcast %184 : vector<32x1xf32> to vector<32x128xf32>
    %186 = arith.addf %183, %185 : vector<32x128xf32>
    %187 = arith.addf %186, %0 : vector<32x128xf32>
    %188 = vector.extract_strided_slice %1 {offsets = [0, 6], sizes = [32, 1], strides = [1, 1]} : vector<32x10xf32> to vector<32x1xf32>
    %189 = vector.extract_strided_slice %1 {offsets = [0, 7], sizes = [32, 1], strides = [1, 1]} : vector<32x10xf32> to vector<32x1xf32>
    %cst_59 = arith.constant dense<0.000000e+00> : vector<128xf32>
    %190 = vector.multi_reduction <add>, %187, %cst_59 [0] : vector<32x128xf32> to vector<128xf32>
    %191 = vector.shape_cast %190 : vector<128xf32> to vector<1x128xf32>
    %cst_60 = arith.constant 3.200000e+01 : f32
    %192 = vector.broadcast %cst_60 : f32 to vector<1x128xf32>
    %193 = arith.divf %191, %192 : vector<1x128xf32>
    %194 = vector.broadcast %193 : vector<1x128xf32> to vector<32x128xf32>
    %195 = arith.subf %187, %194 : vector<32x128xf32>
    %196 = arith.mulf %195, %195 : vector<32x128xf32>
    %cst_61 = arith.constant dense<0.000000e+00> : vector<128xf32>
    %197 = vector.multi_reduction <add>, %196, %cst_61 [0] : vector<32x128xf32> to vector<128xf32>
    %198 = vector.shape_cast %197 : vector<128xf32> to vector<1x128xf32>
    %cst_62 = arith.constant 3.200000e+01 : f32
    %199 = vector.broadcast %cst_62 : f32 to vector<1x128xf32>
    %200 = arith.divf %198, %199 : vector<1x128xf32>
    %201 = vector.broadcast %193 : vector<1x128xf32> to vector<32x128xf32>
    %202 = arith.subf %187, %201 : vector<32x128xf32>
    %cst_63 = arith.constant 9.99999974E-6 : f32
    %203 = vector.broadcast %cst_63 : f32 to vector<1x128xf32>
    %204 = arith.addf %200, %203 : vector<1x128xf32>
    %205 = math.rsqrt %204 : vector<1x128xf32>
    %206 = vector.broadcast %205 : vector<1x128xf32> to vector<32x128xf32>
    %207 = arith.mulf %202, %206 : vector<32x128xf32>
    %208 = vector.broadcast %188 : vector<32x1xf32> to vector<32x128xf32>
    %209 = arith.mulf %207, %208 : vector<32x128xf32>
    %210 = vector.broadcast %189 : vector<32x1xf32> to vector<32x128xf32>
    %211 = arith.addf %209, %210 : vector<32x128xf32>
    %c0_64 = arith.constant 0 : index
    %c0_65 = arith.constant 0 : index
    %212 = vector.load %arg5[%c0_64, %c0_65] : memref<32x32xbf16, #tpu.memory_space<vmem>>, vector<32x32xbf16>
    %213 = arith.truncf %211 : vector<32x128xf32> to vector<32x128xbf16>
    %cst_66 = arith.constant dense<0.000000e+00> : vector<32x128xf32>
    %214 = tpu.matmul %212, %213, %cst_66 {dimension_numbers = #tpu.dot_dimension_numbers<[1], [0], [0], [1], [0, 0, 1, 1], [], []>} : vector<32x32xbf16>, vector<32x128xbf16>, vector<32x128xf32> -> vector<32x128xf32>
    %215 = vector.extract_strided_slice %1 {offsets = [0, 8], sizes = [32, 1], strides = [1, 1]} : vector<32x10xf32> to vector<32x1xf32>
    %216 = vector.broadcast %215 : vector<32x1xf32> to vector<32x128xf32>
    %217 = arith.addf %214, %216 : vector<32x128xf32>
    %cst_67 = arith.constant 5.000000e-01 : f32
    %218 = vector.broadcast %cst_67 : f32 to vector<32x128xf32>
    %219 = arith.mulf %218, %217 : vector<32x128xf32>
    %cst_68 = arith.constant 0.707106769 : f32
    %220 = vector.broadcast %cst_68 : f32 to vector<32x128xf32>
    %221 = arith.mulf %217, %220 : vector<32x128xf32>
    %cst_69 = arith.constant 0.000000e+00 : f32
    %222 = vector.broadcast %cst_69 : f32 to vector<32x128xf32>
    %223 = arith.cmpf oge, %221, %222 : vector<32x128xf32>
    %cst_70 = arith.constant 1.000000e+00 : f32
    %cst_71 = arith.constant -1.000000e+00 : f32
    %224 = vector.broadcast %cst_70 : f32 to vector<32x128xf32>
    %225 = vector.broadcast %cst_71 : f32 to vector<32x128xf32>
    %226 = arith.select %223, %224, %225 : vector<32x128xi1>, vector<32x128xf32>
    %227 = math.absf %221 : vector<32x128xf32>
    %cst_72 = arith.constant 0.327591091 : f32
    %228 = vector.broadcast %cst_72 : f32 to vector<32x128xf32>
    %229 = arith.mulf %228, %227 : vector<32x128xf32>
    %cst_73 = arith.constant 1.000000e+00 : f32
    %230 = vector.broadcast %cst_73 : f32 to vector<32x128xf32>
    %231 = arith.addf %230, %229 : vector<32x128xf32>
    %232 = tpu.reciprocal %231 {approx = true} : vector<32x128xf32> -> vector<32x128xf32>
    %cst_74 = arith.constant 1.06140542 : f32
    %233 = vector.broadcast %cst_74 : f32 to vector<32x128xf32>
    %234 = arith.mulf %233, %232 : vector<32x128xf32>
    %cst_75 = arith.constant -1.45315206 : f32
    %235 = vector.broadcast %cst_75 : f32 to vector<32x128xf32>
    %236 = arith.addf %234, %235 : vector<32x128xf32>
    %237 = arith.mulf %236, %232 : vector<32x128xf32>
    %cst_76 = arith.constant 1.42141378 : f32
    %238 = vector.broadcast %cst_76 : f32 to vector<32x128xf32>
    %239 = arith.addf %237, %238 : vector<32x128xf32>
    %240 = arith.mulf %239, %232 : vector<32x128xf32>
    %cst_77 = arith.constant -0.284496725 : f32
    %241 = vector.broadcast %cst_77 : f32 to vector<32x128xf32>
    %242 = arith.addf %240, %241 : vector<32x128xf32>
    %243 = arith.mulf %242, %232 : vector<32x128xf32>
    %cst_78 = arith.constant 0.254829586 : f32
    %244 = vector.broadcast %cst_78 : f32 to vector<32x128xf32>
    %245 = arith.addf %243, %244 : vector<32x128xf32>
    %246 = arith.mulf %245, %232 : vector<32x128xf32>
    %cst_79 = arith.constant 0.000000e+00 : f32
    %247 = vector.broadcast %cst_79 : f32 to vector<32x128xf32>
    %248 = arith.subf %247, %227 : vector<32x128xf32>
    %249 = arith.mulf %248, %227 : vector<32x128xf32>
    %250 = math.exp %249 : vector<32x128xf32>
    %251 = arith.mulf %246, %250 : vector<32x128xf32>
    %cst_80 = arith.constant 1.000000e+00 : f32
    %252 = vector.broadcast %cst_80 : f32 to vector<32x128xf32>
    %253 = arith.subf %252, %251 : vector<32x128xf32>
    %254 = arith.mulf %226, %253 : vector<32x128xf32>
    %cst_81 = arith.constant 1.000000e+00 : f32
    %255 = vector.broadcast %cst_81 : f32 to vector<32x128xf32>
    %256 = arith.addf %255, %254 : vector<32x128xf32>
    %257 = arith.mulf %219, %256 : vector<32x128xf32>
    %c0_82 = arith.constant 0 : index
    %c0_83 = arith.constant 0 : index
    %258 = vector.load %arg6[%c0_82, %c0_83] : memref<32x32xbf16, #tpu.memory_space<vmem>>, vector<32x32xbf16>
    %259 = arith.truncf %257 : vector<32x128xf32> to vector<32x128xbf16>
    %cst_84 = arith.constant dense<0.000000e+00> : vector<32x128xf32>
    %260 = tpu.matmul %258, %259, %cst_84 {dimension_numbers = #tpu.dot_dimension_numbers<[1], [0], [0], [1], [0, 0, 1, 1], [], []>} : vector<32x32xbf16>, vector<32x128xbf16>, vector<32x128xf32> -> vector<32x128xf32>
    %261 = vector.extract_strided_slice %1 {offsets = [0, 9], sizes = [32, 1], strides = [1, 1]} : vector<32x10xf32> to vector<32x1xf32>
    %262 = vector.broadcast %261 : vector<32x1xf32> to vector<32x128xf32>
    %263 = arith.addf %260, %262 : vector<32x128xf32>
    %264 = arith.addf %263, %187 : vector<32x128xf32>
    %c0_85 = arith.constant 0 : index
    %c0_86 = arith.constant 0 : index
    %265 = vector.load %arg7[%c0_85, %c0_86] : memref<32x128xf32, #tpu.memory_space<vmem>>, vector<32x128xf32>
    tpu.vector_store %arg7[%c0_85, %c0_86], %264 {strides = array<i32>} : memref<32x128xf32, #tpu.memory_space<vmem>>, vector<32x128xf32>,
    return
  }
  func.func @transform_0(%arg0: i32) -> (i32, i32) {
    %c0_i32 = arith.constant 0 : i32
    %c0_i32_0 = arith.constant 0 : i32
    return %c0_i32, %arg0 : i32, i32
  }
  func.func @transform_1(%arg0: i32) -> (i32, i32) {
    %c0_i32 = arith.constant 0 : i32
    %c0_i32_0 = arith.constant 0 : i32
    %c0_i32_1 = arith.constant 0 : i32
    return %c0_i32, %c0_i32_0 : i32, i32
  }
  func.func @transform_2(%arg0: i32) -> (i32, i32) {
    %c0_i32 = arith.constant 0 : i32
    %c0_i32_0 = arith.constant 0 : i32
    %c0_i32_1 = arith.constant 0 : i32
    return %c0_i32, %c0_i32_0 : i32, i32
  }
  func.func @transform_3(%arg0: i32) -> (i32, i32) {
    %c0_i32 = arith.constant 0 : i32
    %c0_i32_0 = arith.constant 0 : i32
    %c0_i32_1 = arith.constant 0 : i32
    return %c0_i32, %c0_i32_0 : i32, i32
  }
  func.func @transform_4(%arg0: i32) -> (i32, i32) {
    %c0_i32 = arith.constant 0 : i32
    %c0_i32_0 = arith.constant 0 : i32
    %c0_i32_1 = arith.constant 0 : i32
    return %c0_i32, %c0_i32_0 : i32, i32
  }
  func.func @transform_5(%arg0: i32) -> (i32, i32) {
    %c0_i32 = arith.constant 0 : i32
    %c0_i32_0 = arith.constant 0 : i32
    %c0_i32_1 = arith.constant 0 : i32
    return %c0_i32, %c0_i32_0 : i32, i32
  }
  func.func @transform_6(%arg0: i32) -> (i32, i32) {
    %c0_i32 = arith.constant 0 : i32
    %c0_i32_0 = arith.constant 0 : i32
    return %c0_i32, %arg0 : i32, i32
  }
}

</mosaic_0001>

<bundles_post_ra>
// kernel: tpu_custom_call.1
= control target key start
LH: loop header
LB: loop body
LE: loop exit
PB: predicated region body
PF: predicated region fallthrough
CT: control target
= control target key end

     0   :  { %v3559_v1 = vmov 1   ;;  %v3560_v2 = vmov 0   ;;  %s4663_s0 = inlined_call_operand.vmem [shape: f32[32,128], index: 0, kind: input, shape index: {}]   ;;  %s4664_s1 = inlined_call_operand.vmem [shape: f32[32,10], index: 1, kind: input, shape index: {}]   ;;  %s4665_s2 = inlined_call_operand.vmem [shape: bf16[96,32], index: 2, kind: input, shape index: {}]   ;;  %s4666_s3 = inlined_call_operand.vmem [shape: bf16[32,32], index: 3, kind: input, shape index: {}]   ;;  %s4667_s4 = inlined_call_operand.vmem [shape: bf16[32,32], index: 4, kind: input, shape index: {}]   ;;  %s4668_s5 = inlined_call_operand.vmem [shape: bf16[32,32], index: 5, kind: input, shape index: {}]   ;;  %s4669_s6 = inlined_call_operand.hbm [shape: f32[32,128], index: 6, kind: output, shape index: {}]  }
   0x1   :  { %v3614_v0 = vld [vmem:[%s4664_s1] sm:$0xff]  ;;  %3213 = vset.pattern.permute.xlu1 %v3559_v1  ;;  %3212 = vset.pattern.permute.xlu0 %v3560_v2  ;;  %v3621_v3 = vld [vmem:[%s4664_s1 + $0x8] sm:$0xff]  ;;  %v3626_v4 = vld [vmem:[%s4664_s1 + $0x10] sm:$0xff] }
   0x2   :  { %93 = vperm.xlu1 %3213, %v3614_v0   ;;  %70 = vperm.xlu0 %3212, %v3614_v0   ;;  %v3633_v5 = vld [vmem:[%s4664_s1 + $0x18] sm:$0xff] }
   0x6   :  { %97 = vperm.xlu1 %3213, %v3621_v3   ;;  %75 = vperm.xlu0 %3212, %v3621_v3  }
   0xa   :  { %3214 = vset.pattern.permute.xlu1 %v3560_v2  ;;  %80 = vperm.xlu0 %3212, %v3626_v4  }
   0xb   :  { %85 = vperm.xlu1 %3214, %v3633_v5  }
   0xc   :  { %11 = vsyncpa [#allocation4], 0  ;;  %v25_v6 = vld [vmem:[%s4663_s0] sm:$0xff]  ;;  %v26_v7 = vld [vmem:[%s4663_s0 + $0x8] sm:$0xff]  ;;  %vm156_vm0 = vcmask 261120   ;;  %v3561_v14 = vmov 2  }
   0xd   :  { %v3237_v8 = vld [vmem:[%s4665_s2] sm:$0xff]   ;;  %v33_v9 = vadd.f32 %v26_v7, %v25_v6  ;;  %v27_v10 = vld [vmem:[%s4663_s0 + $0x10] sm:$0xff]  ;;  %v28_v12 = vld [vmem:[%s4663_s0 + $0x18] sm:$0xff]  ;;  %v3562_v16 = vmov 3   ;;  %vm351_vm1 = vcmask 1043456   ;;  %vm338_vm2 = vcmask 64512  }
   0xe   :  { %3215 = vset.pattern.permute.xlu0 %v3559_v1  ;;  %2975 = vmatprep.mubr.msk.bf16.mxu0 %vm156_vm0, %v3237_v8  ;;  %v3238_v2 = vld [vmem:[%s4665_s2 + $0x8] sm:$0xff]   ;;  %v3241_v8 = vld [vmem:[%s4665_s2 + $0x20] sm:$0xff]   ;;  %vm420_vm3 = vcmask 523264   ;;  %vm3565_vm4 = vmmov 0   ;;  %vm1569_vm5 = vcmask 1048064   ;;  %s3573_s28 = smov [#allocation3]  }
   0xf   :  { %3216 = vset.pattern.permute.xlu1 %v3559_v1  ;;  %101 = vperm.xlu0 %3215, %v3626_v4   ;;  %v34_v11 = vadd.f32 %v33_v9, %v27_v10  ;;  %v3242_v9 = vld [vmem:[%s4665_s2 + $0x28] sm:$0xff]   ;;  %s2796_s29 = sshll.u32 %s3573_s28, 4  ;;  %s2797_s29 = int_to_ptr.vmem [resolvable:$true] %s2796_s29 }
  0x10   :  { %105 = vperm.xlu1 %3216, %v3633_v5   ;;  %p3540_p1 = scmp.lt.s32.totalorder %s2797_s29, %s2797_s29 }
  0x11   :  { %v35_v13 = vadd.f32 %v34_v11, %v28_v12 }
  0x13   :  { %3218 = vset.pattern.permute.xlu0 %v3561_v14  ;;  %v36_v15 = vrot.slane %v35_v13, 4 }
  0x14   :  { %3217 = vset.pattern.permute.xlu1 %v3561_v14  ;;  %261 = vperm.xlu0 %3218, %v3621_v3  }
  0x15   :  { %257 = vperm.xlu1 %3217, %v3614_v0   ;;  %v37_v17 = vadd.f32 %v36_v15, %v35_v13 }
  0x17   :  { %v38_v18 = vrot.slane %v37_v17, 2 }
  0x19   :  { %3219 = vset.pattern.permute.xlu1 %v3562_v16  ;;  %v39_v19 = vadd.f32 %v38_v18, %v37_v17 }
  0x1a   :  { %279 = vperm.xlu1 %3219, %v3614_v0  }
  0x1b   :  { %v40_v20 = vrot.slane %v39_v19, 1 }
  0x1d   :  { %v41_v21 = vadd.f32 %v40_v20, %v39_v19 }
  0x1e   :  { %283 = vperm.xlu1 %3219, %v3621_v3  }
  0x1f   :  { %v43_v22 = vmul.f32 0.03125, %v41_v21 }
  0x21   :  { %v44_v23 = vsub.f32 %v25_v6, %v43_v22  ;;  %v45_v24 = vsub.f32 %v26_v7, %v43_v22  ;;  %v46_v25 = vsub.f32 %v27_v10, %v43_v22  ;;  %v47_v28 = vsub.f32 %v28_v12, %v43_v22  ;;  %v3239_v6 = vld [vmem:[%s4665_s2 + $0x10] sm:$0xff]   ;;  %v3240_v7 = vld [vmem:[%s4665_s2 + $0x18] sm:$0xff]   ;;  %s3566_s2 = smov 64  }
  0x23   :  { %v48_v26 = vmul.f32 %v44_v23, %v44_v23  ;;  %v49_v27 = vmul.f32 %v45_v24, %v45_v24  ;;  %v50_v29 = vmul.f32 %v46_v25, %v46_v25  ;;  %v51_v31 = vmul.f32 %v47_v28, %v47_v28 }
  0x25   :  { %v52_v30 = vadd.f32 %v49_v27, %v48_v26 }
  0x27   :  { %v53_v32 = vadd.f32 %v52_v30, %v50_v29 }
  0x29   :  { %v54_v33 = vadd.f32 %v53_v32, %v51_v31 }
  0x2b   :  { %v55_v34 = vrot.slane %v54_v33, 4 }
  0x2d   :  { %v56_v35 = vadd.f32 %v55_v34, %v54_v33 }
  0x2f   :  { %v57_v36 = vrot.slane %v56_v35, 2 }
  0x31   :  { %v58_v37 = vadd.f32 %v57_v36, %v56_v35 }
  0x33   :  { %v59_v38 = vrot.slane %v58_v37, 1 }
  0x35   :  { %v60_v39 = vadd.f32 %v59_v38, %v58_v37 }
  0x37   :  { %v61_v40 = vmul.f32 0.03125, %v60_v39 }
  0x39   :  { %v62_v41 = vadd.f32 1e-05, %v61_v40 }
  0x3b   :  { %3249 = vrsqrt.f32 %v62_v41 }
  0x45   :  { %v3250_v42 = vpop.eup %3249 }
  0x46   :  { %v64_v43 = vmul.f32 %v3250_v42, %v44_v23  ;;  %v65_v46 = vmul.f32 %v3250_v42, %v45_v24  ;;  %v66_v54 = vmul.f32 %v3250_v42, %v46_v25  ;;  %v67_v56 = vmul.f32 %v3250_v42, %v47_v28 }
  0x81   :  { %v94_v44 = vpop.permute.xlu1 %93  ;;  %v71_v45 = vpop.permute.xlu0 %70 }
  0x82   :  { %v88_v47 = vmul.f32 %v71_v45, %v64_v43 }
  0x84   :  { %v108_v51 = vadd.f32 %v94_v44, %v88_v47 }
  0x85   :  { %v98_v48 = vpop.permute.xlu1 %97  ;;  %v76_v49 = vpop.permute.xlu0 %75 }
  0x86   :  { %v89_v50 = vmul.f32 %v76_v49, %v65_v46 }
  0x88   :  { %v109_v52 = vadd.f32 %v98_v48, %v89_v50 }
  0x89   :  { %v81_v53 = vpop.permute.xlu0 %80 }
  0x8a   :  { %v86_v55 = vpop.permute.xlu1 %85  ;;  %v124_v57 = vpack.c.bf16 %v109_v52, %v108_v51  ;;  %v90_v58 = vmul.f32 %v81_v53, %v66_v54 }
  0x8b   :  { %v91_v59 = vmul.f32 %v86_v55, %v67_v56 }
  0x8c   :  { %2971 = vmatprep.subr.bf16.mxu0 %v124_v57 }
  0x8d   :  { %2972 = vmatpush3.bf16.msra.mxu0 %v124_v57 }
  0x8e   :  { %v102_v60 = vpop.permute.xlu0 %101 }
  0x8f   :  { %v110_v61 = vadd.f32 %v102_v60, %v90_v58  ;;  %v106_v62 = vpop.permute.xlu1 %105 }
  0x90   :  { %v111_v63 = vadd.f32 %v106_v62, %v91_v59 }
  0x92   :  { %v125_v1 = vpack.c.bf16 %v111_v63, %v110_v61 }
  0x93   :  { %v262_v13 = vpop.permute.xlu0 %261 }
  0x94   :  { %2973 = vmatprep.subr.bf16.mxu0 %v125_v1  ;;  %v258_v10 = vpop.permute.xlu1 %257 }
  0x95   :  { %2974 = vmatpush3.bf16.msra.mxu0 %v125_v1 }
  0x98   :  { %2976 = vmatmul.mubr.msk.bf16.vlgmr.msra.gmra.mrb[0].mxu0 %vm156_vm0, %v3238_v2 }
  0x99   :  { %2979 = vmatprep.mubr.msk.bf16.mxu0 %vm156_vm0, %v3239_v6  ;;  %v280_v18 = vpop.permute.xlu1 %279 }
  0x9d   :  { %v284_v25 = vpop.permute.xlu1 %283 }
  0xa0   :  { %2980 = vmatmul.mubr.msk.bf16.gmra.mrb[4].mxu0 %vm156_vm0, %v3240_v7 }
  0xa1   :  { %2983 = vmatprep.mubr.msk.bf16.mxu0 %vm156_vm0, %v3241_v8 }
  0xa8   :  { %2984 = vmatmul.mubr.msk.bf16.gmra.mrb[8].mxu0 %vm156_vm0, %v3242_v9 }
 0x16b   :  { %v3682_v11 = vpop.f32.mrb[0].mxu0 }
 0x16c   :  { %v209_v12 = vpop.f32.mrb[1].mxu0 }
 0x16d   :  { %v3684_v15 = vpop.f32.mrb[2].mxu0  ;;  %v272_v19 = vadd.f32 %v258_v10, %v209_v12 }
 0x16e   :  { %v212_v17 = vpop.f32.mrb[3].mxu0 }
 0x16f   :  { %v273_v20 = vadd.f32 %v262_v13, %v212_v17 }
 0x171   :  { %v3686_v21 = vpack.c.bf16 %v273_v20, %v272_v19 }
 0x173   :  { %322 = vxpose.xlu0.c.b16.start.end [1/1] (short) (narrow) %v3686_v21, 64  ;;  %v570_v22 = vrot.slane %v3686_v21, 4  ;;  %v3690_v23 = vpop.f32.mrb[4].mxu0 }
 0x174   :  { %v225_v24 = vpop.f32.mrb[5].mxu0 }
 0x175   :  { %572 = vxpose.xlu1.c.b16.start.end [1/1] (short) (narrow) %v570_v22, 64  ;;  %v294_v26 = vadd.f32 %v280_v18, %v225_v24  ;;  %v3694_v27 = vpop.f32.mrb[6].mxu0  ;;  %v3563_v24 = vmov 4  }
 0x176   :  { %v228_v28 = vpop.f32.mrb[7].mxu0 }
 0x177   :  { %v295_v29 = vadd.f32 %v284_v25, %v228_v28 }
 0x179   :  { %v3696_v30 = vpack.c.bf16 %v295_v29, %v294_v26  ;;  %3220 = vset.pattern.permute.xlu1 %v3561_v14 }
 0x17b   :  { %3187 = vmatprep.subr.msk.bf16.mxu1 %vm351_vm1, %v3696_v30  ;;  %v353_v31 = vsel %vm351_vm1, %v3696_v30, 0  ;;  %v3704_v32 = vrot.slane %v3696_v30, 4  ;;  %v3710_v34 = vpop.f32.mrb[8].mxu0 }
 0x17c   :  { %2988 = vmatpush3.bf16.msra.mxu1 %v353_v31  ;;  %v3712_v14 = vpop.f32.mrb[9].mxu0 }
 0x17d   :  { %3188 = vmatprep.subr.msk.bf16.mxu0 %vm351_vm1, %v3704_v32  ;;  %v603_v33 = vsel %vm351_vm1, %v3704_v32, 0  ;;  %v3714_v35 = vpop.f32.mrb[10].mxu0 }
 0x17e   :  { %3010 = vmatpush3.bf16.msra.mxu0 %v603_v33  ;;  %v3716_v36 = vpop.f32.mrb[11].mxu0 }
 0x1d9   :  { %v330_v37 = vpop.trf.xlu0 }
 0x1da   :  { %2989 = vmatprep.mubr.msk.bf16.mxu1 %vm338_vm2, %v330_v37 }
 0x1db   :  { %v580_v38 = vpop.trf.xlu1 }
 0x1dc   :  { %3011 = vmatprep.mubr.msk.bf16.mxu0 %vm338_vm2, %v580_v38 }
 0x1dd   :  { %v331_v39 = vpop.trf.xlu0 }
 0x1de   :  { %2990 = vmatmul.mubr.msk.bf16.vlgmr.msra.gmra.mrb[0].mxu1 %vm338_vm2, %v331_v39 }
 0x1df   :  { %v581_v40 = vpop.trf.xlu1 }
 0x1e0   :  { %3012 = vmatmul.mubr.msk.bf16.vlgmr.msra.gmra.mrb[12].mxu0 %vm338_vm2, %v581_v40 }
 0x1e1   :  { %v332_v41 = vpop.trf.xlu0 }
 0x1e2   :  { %2993 = vmatprep.mubr.msk.bf16.mxu1 %vm338_vm2, %v332_v41 }
 0x1e3   :  { %v582_v42 = vpop.trf.xlu1 }
 0x1e4   :  { %3015 = vmatprep.mubr.msk.bf16.mxu0 %vm338_vm2, %v582_v42 }
 0x1e5   :  { %v333_v43 = vpop.trf.xlu0 }
 0x1e6   :  { %2994 = vmatmul.mubr.msk.bf16.gmra.mrb[4].mxu1 %vm338_vm2, %v333_v43 }
 0x1e7   :  { %v583_v44 = vpop.trf.xlu1 }
 0x1e8   :  { %3016 = vmatmul.mubr.msk.bf16.gmra.mrb[16].mxu0 %vm338_vm2, %v583_v44 }
 0x2b1   :  { %v2991_v45 = vpop.f32.mrb[0].mxu1 }
 0x2b2   :  { %v389_v46 = vpop.f32.mrb[1].mxu1  ;;  %v427_v47 = vsel %vm420_vm3, %v2991_v45, -inf }
 0x2b3   :  { %428 = vmax.xlane.f32.xlu1 %v427_v47  ;;  %v2992_v48 = vpop.f32.mrb[2].mxu1  ;;  %v3013_v49 = vpop.f32.mrb[12].mxu0  ;;  %v421_v50 = vsel %vm420_vm3, %v389_v46, -inf }
 0x2b4   :  { %422 = vmax.xlane.f32.xlu0 %v421_v50  ;;  %v3728_v51 = vpop.f32.mrb[3].mxu1  ;;  %v3730_v52 = vpop.f32.mrb[13].mxu0  ;;  %v676_v53 = vsel %vm420_vm3, %v3013_v49, -inf  ;;  %v430_v56 = vsel %vm420_vm3, %v2992_v48, -inf }
 0x2b5   :  { %v3733_v54 = vpop.f32.mrb[14].mxu0  ;;  %v424_v58 = vsel %vm420_vm3, %v3728_v51, -inf  ;;  %v670_v60 = vsel %vm420_vm3, %v3730_v52, -inf }
 0x2b6   :  { %v3735_v55 = vpop.f32.mrb[15].mxu0  ;;  %v679_v8 = vsel %vm420_vm3, %v3733_v54, -inf }
 0x2b7   :  { %677 = vmax.xlane.f32.xlu1 %v676_v53  ;;  %v673_v10 = vsel %vm420_vm3, %v3735_v55, -inf }
 0x2b8   :  { %431 = vmax.xlane.f32.xlu0 %v430_v56 }
 0x2b9   :  { %v3738_v57 = vpop.f32.mrb[4].mxu1 }
 0x2ba   :  { %v3742_v59 = vpop.f32.mrb[5].mxu1  ;;  %v439_v63 = vsel %vm420_vm3, %v3738_v57, -inf }
 0x2bb   :  { %425 = vmax.xlane.f32.xlu1 %v424_v58  ;;  %v3746_v61 = vpop.f32.mrb[16].mxu0  ;;  %v3748_v62 = vpop.f32.mrb[6].mxu1  ;;  %v433_v9 = vsel %vm420_vm3, %v3742_v59, -inf }
 0x2bc   :  { %671 = vmax.xlane.f32.xlu0 %v670_v60  ;;  %v3752_v1 = vpop.f32.mrb[17].mxu0  ;;  %v3754_v2 = vpop.f32.mrb[7].mxu1  ;;  %v688_v12 = vsel %vm420_vm3, %v3746_v61, -inf  ;;  %v442_v13 = vsel %vm420_vm3, %v3748_v62, -inf }
 0x2bd   :  { %v3756_v6 = vpop.f32.mrb[18].mxu0  ;;  %v682_v17 = vsel %vm420_vm3, %v3752_v1, -inf  ;;  %v436_v18 = vsel %vm420_vm3, %v3754_v2, -inf }
 0x2be   :  { %v3758_v7 = vpop.f32.mrb[19].mxu0  ;;  %v691_v19 = vsel %vm420_vm3, %v3756_v6, -inf }
 0x2bf   :  { %440 = vmax.xlane.f32.xlu1 %v439_v63  ;;  %v685_v20 = vsel %vm420_vm3, %v3758_v7, -inf }
 0x2c0   :  { %680 = vmax.xlane.f32.xlu0 %v679_v8 }
 0x2c3   :  { %434 = vmax.xlane.f32.xlu1 %v433_v9 }
 0x2c4   :  { %674 = vmax.xlane.f32.xlu0 %v673_v10 }
 0x2c7   :  { %689 = vmax.xlane.f32.xlu1 %v688_v12 }
 0x2c8   :  { %443 = vmax.xlane.f32.xlu0 %v442_v13 }
 0x2cb   :  { %683 = vmax.xlane.f32.xlu1 %v682_v17 }
 0x2cc   :  { %437 = vmax.xlane.f32.xlu0 %v436_v18 }
 0x2d0   :  { %692 = vmax.xlane.f32.xlu0 %v691_v19 }
 0x2d4   :  { %686 = vmax.xlane.f32.xlu0 %v685_v20 }
 0x2dc   :  { %265 = vperm.xlu1 %3220, %v3626_v4  }
 0x2e0   :  { %3221 = vset.pattern.permute.xlu1 %v3563_v24 }
 0x340   :  { %v429_v25 = vpop.xlane.xlu1 %428 }
 0x341   :  { %v447_v26 = vsub.f32 %v2991_v45, %v429_v25  ;;  %v423_v28 = vpop.xlane.xlu0 %422 }
 0x342   :  { %v445_v29 = vsub.f32 %v389_v46, %v423_v28 }
 0x343   :  { %v457_v31 = vmul.f32 1.442695, %v447_v26 }
 0x344   :  { %v453_v33 = vmul.f32 1.442695, %v445_v29  ;;  %v678_v37 = vpop.xlane.xlu1 %677 }
 0x345   :  { %3251 = vpow2.f32 %v457_v31  ;;  %v696_v38 = vsub.f32 %v3013_v49, %v678_v37  ;;  %v432_v39 = vpop.xlane.xlu0 %431 }
 0x346   :  { %v448_v40 = vsub.f32 %v2992_v48, %v432_v39  ;;  %3253 = vpow2.f32 %v453_v33 }
 0x347   :  { %v706_v41 = vmul.f32 1.442695, %v696_v38 }
 0x348   :  { %v459_v42 = vmul.f32 1.442695, %v448_v40  ;;  %v426_v43 = vpop.xlane.xlu1 %425 }
 0x349   :  { %v446_v44 = vsub.f32 %v3728_v51, %v426_v43  ;;  %v672_v47 = vpop.xlane.xlu0 %671 }
 0x34a   :  { %3255 = vpow2.f32 %v459_v42  ;;  %v694_v50 = vsub.f32 %v3730_v52, %v672_v47 }
 0x34b   :  { %3257 = vpow2.f32 %v706_v41  ;;  %v455_v45 = vmul.f32 1.442695, %v446_v44 }
 0x34c   :  { %v702_v46 = vmul.f32 1.442695, %v694_v50  ;;  %v441_v53 = vpop.xlane.xlu1 %440 }
 0x34d   :  { %3259 = vpow2.f32 %v455_v45  ;;  %v451_v56 = vsub.f32 %v3738_v57, %v441_v53  ;;  %v681_v49 = vpop.xlane.xlu0 %680 }
 0x34e   :  { %v697_v48 = vsub.f32 %v3733_v54, %v681_v49  ;;  %3261 = vpow2.f32 %v702_v46 }
 0x34f   :  { %v3784_v58 = vpop.eup %3251  ;;  %v465_v60 = vmul.f32 1.442695, %v451_v56  ;;  %v3564_v56 = vmov 0.0  }
 0x350   :  { %v708_v63 = vmul.f32 1.442695, %v697_v48  ;;  %v435_v51 = vpop.xlane.xlu1 %434  ;;  %v475_v8 = vsel %vm420_vm3, %v3784_v58, 0.0  ;;  %v3788_v52 = vpop.eup %3253  ;;  %2997 = vmatprep.subr.bf16.mxu1 %v3564_v56  ;;  %3019 = vmatprep.subr.bf16.mxu0 %v3564_v56 }
 0x351   :  { %v449_v9 = vsub.f32 %v3742_v59, %v435_v51  ;;  %v675_v10 = vpop.xlane.xlu0 %674  ;;  %476 = vadd.xlane.f32.xlu1 %v475_v8  ;;  %v469_v18 = vsel %vm420_vm3, %v3788_v52, 0.0  ;;  %3005 = vmatprep.mubr.msk.bf16.mxu1 %vm3565_vm4, %v3564_v56 }
 0x352   :  { %3263 = vpow2.f32 %v708_v63  ;;  %v695_v57 = vsub.f32 %v3735_v55, %v675_v10  ;;  %3027 = vmatprep.mubr.msk.bf16.mxu0 %vm3565_vm4, %v3564_v56 }
 0x353   :  { %3265 = vpow2.f32 %v465_v60  ;;  %v461_v54 = vmul.f32 1.442695, %v449_v9 }
 0x354   :  { %v3792_v12 = vpop.eup %3255  ;;  %v704_v13 = vmul.f32 1.442695, %v695_v57  ;;  %v690_v17 = vpop.xlane.xlu1 %689 }
 0x355   :  { %v3796_v19 = vpop.eup %3257  ;;  %v700_v20 = vsub.f32 %v3746_v61, %v690_v17  ;;  %470 = vadd.xlane.f32.xlu1 %v469_v18  ;;  %v478_v59 = vsel %vm420_vm3, %v3792_v12, 0.0  ;;  %v444_v53 = vpop.xlane.xlu0 %443 }
 0x356   :  { %3267 = vpow2.f32 %v704_v13  ;;  %479 = vadd.xlane.f32.xlu0 %v478_v59  ;;  %v724_v28 = vsel %vm420_vm3, %v3796_v19, 0.0  ;;  %v452_v60 = vsub.f32 %v3748_v62, %v444_v53 }
 0x357   :  { %v3801_v55 = vpop.eup %3259  ;;  %3269 = vpow2.f32 %v461_v54  ;;  %v714_v25 = vmul.f32 1.442695, %v700_v20 }
 0x358   :  { %v684_v26 = vpop.xlane.xlu1 %683  ;;  %v472_v29 = vsel %vm420_vm3, %v3801_v55, 0.0  ;;  %v3807_v31 = vpop.eup %3261  ;;  %v467_v63 = vmul.f32 1.442695, %v452_v60 }
 0x359   :  { %v698_v61 = vsub.f32 %v3752_v1, %v684_v26  ;;  %725 = vadd.xlane.f32.xlu1 %v724_v28  ;;  %3271 = vpow2.f32 %v714_v25  ;;  %v718_v38 = vsel %vm420_vm3, %v3807_v31, 0.0  ;;  %v438_v49 = vpop.xlane.xlu0 %437 }
 0x35a   :  { %473 = vadd.xlane.f32.xlu0 %v472_v29  ;;  %v450_v51 = vsub.f32 %v3754_v2, %v438_v49 }
 0x35b   :  { %v710_v33 = vmul.f32 1.442695, %v698_v61 }
 0x35c   :  { %v3810_v37 = vpop.eup %3263  ;;  %v463_v9 = vmul.f32 1.442695, %v450_v51  ;;  %v266_v17 = vpop.permute.xlu1 %265 }
 0x35d   :  { %v3814_v39 = vpop.eup %3265  ;;  %719 = vadd.xlane.f32.xlu1 %v718_v38  ;;  %v727_v40 = vsel %vm420_vm3, %v3810_v37, 0.0  ;;  %3273 = vpow2.f32 %v710_v33  ;;  %v693_v48 = vpop.xlane.xlu0 %692  ;;  %v274_v51 = vadd.f32 %v3682_v11, %v266_v17 }
 0x35e   :  { %728 = vadd.xlane.f32.xlu0 %v727_v40  ;;  %v487_v1 = vsel %vm420_vm3, %v3814_v39, 0.0  ;;  %3275 = vpow2.f32 %v467_v63 }
 0x35f   :  { %3277 = vpow2.f32 %v463_v9 }
 0x360   :  { %v3818_v41 = vpop.eup %3267 }
 0x361   :  { %v3822_v42 = vpop.eup %3269  ;;  %488 = vadd.xlane.f32.xlu1 %v487_v1  ;;  %v721_v43 = vsel %vm420_vm3, %v3818_v41, 0.0  ;;  %v687_v8 = vpop.xlane.xlu0 %686 }
 0x362   :  { %722 = vadd.xlane.f32.xlu0 %v721_v43  ;;  %v481_v44 = vsel %vm420_vm3, %v3822_v42, 0.0  ;;  %v699_v10 = vsub.f32 %v3758_v7, %v687_v8 }
 0x363   :  { %v3828_v47 = vpop.eup %3271 }
 0x364   :  { %v736_v50 = vsel %vm420_vm3, %v3828_v47, 0.0  ;;  %v712_v57 = vmul.f32 1.442695, %v699_v10 }
 0x365   :  { %482 = vadd.xlane.f32.xlu1 %v481_v44 }
 0x366   :  { %3279 = vpow2.f32 %v712_v57 }
 0x367   :  { %v3832_v45 = vpop.eup %3273 }
 0x368   :  { %v730_v46 = vsel %vm420_vm3, %v3832_v45, 0.0  ;;  %v3848_v62 = vpop.eup %3275 }
 0x369   :  { %737 = vadd.xlane.f32.xlu1 %v736_v50 }
 0x36d   :  { %731 = vadd.xlane.f32.xlu1 %v730_v46 }
 0x378   :  { %269 = vperm.xlu0 %3218, %v3633_v5  }
 0x37c   :  { %3222 = vset.pattern.permute.xlu0 %v3563_v24 }
 0x37e   :  { %301 = vperm.xlu1 %3221, %v3614_v0   ;;  %v701_v0 = vsub.f32 %v3756_v6, %v693_v48 }
 0x380   :  { %v716_v54 = vmul.f32 1.442695, %v701_v0 }
 0x382   :  { %3223 = vset.pattern.permute.xlu1 %v3562_v16  ;;  %3281 = vpow2.f32 %v716_v54  ;;  %v3852_v16 = vpop.eup %3277 }
 0x383   :  { %287 = vperm.xlu1 %3223, %v3626_v4   ;;  %v490_v4 = vsel %vm420_vm3, %v3848_v62, 0.0  ;;  %v3856_v2 = vpop.eup %3279 }
 0x384   :  { %v733_v6 = vsel %vm420_vm3, %v3856_v2, 0.0 }
 0x387   :  { %291 = vperm.xlu1 %3223, %v3633_v5   ;;  %v484_v5 = vsel %vm420_vm3, %v3852_v16, 0.0 }
 0x38c   :  { %v3860_v7 = vpop.eup %3281 }
 0x38d   :  { %v739_v13 = vsel %vm420_vm3, %v3860_v7, 0.0 }
 0x397   :  { %491 = vadd.xlane.f32.xlu0 %v490_v4 }
 0x39b   :  { %485 = vadd.xlane.f32.xlu0 %v484_v5 }
 0x39f   :  { %734 = vadd.xlane.f32.xlu0 %v733_v6 }
 0x3a3   :  { %740 = vadd.xlane.f32.xlu0 %v739_v13 }
 0x3b9   :  { %305 = vperm.xlu0 %3222, %v3621_v3  }
 0x3de   :  { %v477_v18 = vpop.xlane.xlu1 %476 }
 0x3e2   :  { %v471_v20 = vpop.xlane.xlu1 %470 }
 0x3e3   :  { %v480_v59 = vpop.xlane.xlu0 %479  ;;  %3283 = vrcp.f32 %v471_v20 }
 0x3e6   :  { %v726_v25 = vpop.xlane.xlu1 %725 }
 0x3e7   :  { %v474_v26 = vpop.xlane.xlu0 %473 }
 0x3e8   :  { %3285 = vrcp.f32 %v474_v26 }
 0x3e9   :  { %3287 = vrcp.f32 %v480_v59 }
 0x3ea   :  { %v720_v28 = vpop.xlane.xlu1 %719  ;;  %3289 = vrcp.f32 %v477_v18 }
 0x3eb   :  { %v729_v29 = vpop.xlane.xlu0 %728  ;;  %3291 = vrcp.f32 %v720_v28 }
 0x3ed   :  { %v3284_v33 = vpop.eup %3283 }
 0x3ee   :  { %v489_v3 = vpop.xlane.xlu1 %488  ;;  %v501_v1 = vmul.f32 %v3284_v33, %v3788_v52 }
 0x3ef   :  { %v723_v61 = vpop.xlane.xlu0 %722 }
 0x3f0   :  { %3293 = vrcp.f32 %v723_v61 }
 0x3f1   :  { %3295 = vrcp.f32 %v729_v29 }
 0x3f2   :  { %v3286_v38 = vpop.eup %3285  ;;  %v483_v40 = vpop.xlane.xlu1 %482  ;;  %3297 = vrcp.f32 %v726_v25 }
 0x3f3   :  { %v502_v43 = vmul.f32 %v3286_v38, %v3801_v55  ;;  %v3288_v44 = vpop.eup %3287  ;;  %3299 = vrcp.f32 %v483_v40 }
 0x3f4   :  { %v3290_v46 = vpop.eup %3289  ;;  %v504_v60 = vmul.f32 %v3288_v44, %v3792_v12 }
 0x3f5   :  { %v509_v50 = vpack.c.bf16 %v502_v43, %v501_v1  ;;  %v3292_v63 = vpop.eup %3291  ;;  %v503_v52 = vmul.f32 %v3290_v46, %v3784_v58 }
 0x3f6   :  { %v738_v53 = vpop.xlane.xlu1 %737  ;;  %v750_v57 = vmul.f32 %v3292_v63, %v3807_v31 }
 0x3f7   :  { %v270_v49 = vpop.permute.xlu0 %269  ;;  %v517_v48 = vsel %vm420_vm3, %v509_v50, 0  ;;  %v510_v0 = vpack.c.bf16 %v504_v60, %v503_v52 }
 0x3f8   :  { %v275_v8 = vadd.f32 %v3684_v15, %v270_v49  ;;  %2998 = vmatpush3.bf16.xpose.msra.mxu1 %v517_v48 }
 0x3f9   :  { %2999 = vmatprep.subr.bf16.mxu1 %v3564_v56  ;;  %v520_v58 = vsel %vm420_vm3, %v510_v0, 0 }
 0x3fa   :  { %v3294_v55 = vpop.eup %3293  ;;  %v3877_v9 = vpack.c.bf16 %v275_v8, %v274_v51  ;;  %v732_v10 = vpop.xlane.xlu1 %731 }
 0x3fb   :  { %v751_v54 = vmul.f32 %v3294_v55, %v3818_v41  ;;  %v3296_v12 = vpop.eup %3295 }
 0x3fc   :  { %v1065_v4 = vrot.slane %v3877_v9, 4  ;;  %820 = vxpose.xlu1.c.b16.start.end [1/1] (short) (narrow) %v3877_v9, 64  ;;  %v3298_v15 = vpop.eup %3297  ;;  %v753_v13 = vmul.f32 %v3296_v12, %v3810_v37 }
 0x3fd   :  { %v758_v11 = vpack.c.bf16 %v751_v54, %v750_v57  ;;  %v752_v31 = vmul.f32 %v3298_v15, %v3796_v19  ;;  %v3300_v28 = vpop.eup %3299 }
 0x3fe   :  { %v302_v5 = vpop.permute.xlu1 %301  ;;  %1067 = vxpose.xlu0.c.b16.start.end [1/1] (short) (narrow) %v1065_v4, 64  ;;  %v505_v61 = vmul.f32 %v3300_v28, %v3822_v42 }
 0x3ff   :  { %v768_v6 = vsel %vm420_vm3, %v758_v11, 0  ;;  %v759_v17 = vpack.c.bf16 %v753_v13, %v752_v31  ;;  %v316_v49 = vadd.f32 %v302_v5, %v3712_v14 }
 0x400   :  { %3000 = vmatpush3.bf16.xpose.msra.mxu1 %v520_v58  ;;  %3020 = vmatpush3.bf16.xpose.msra.mxu0 %v768_v6 }
 0x401   :  { %3021 = vmatprep.subr.bf16.mxu0 %v3564_v56  ;;  %3001 = vmatprep.subr.bf16.mxu1 %v3564_v56  ;;  %v771_v25 = vsel %vm420_vm3, %v759_v17, 0 }
 0x402   :  { %v288_v41 = vpop.permute.xlu1 %287  ;;  %3224 = vset.pattern.permute.xlu1 %v3563_v24 }
 0x403   :  { %v296_v20 = vadd.f32 %v3690_v23, %v288_v41 }
 0x406   :  { %v292_v18 = vpop.permute.xlu1 %291 }
 0x407   :  { %v297_v59 = vadd.f32 %v3694_v27, %v292_v18 }
 0x408   :  { %3022 = vmatpush3.bf16.xpose.msra.mxu0 %v771_v25 }
 0x409   :  { %v3895_v37 = vpack.c.bf16 %v297_v59, %v296_v20  ;;  %3023 = vmatprep.subr.bf16.mxu0 %v3564_v56 }
 0x40b   :  { %v3919_v52 = vrot.slane %v3895_v37, 4 }
 0x40d   :  { %v1098_v55 = vsel %vm351_vm1, %v3919_v52, 0 }
 0x424   :  { %v492_v26 = vpop.xlane.xlu0 %491 }
 0x428   :  { %v486_v19 = vpop.xlane.xlu0 %485 }
 0x429   :  { %3301 = vrcp.f32 %v486_v19 }
 0x42a   :  { %3303 = vrcp.f32 %v732_v10 }
 0x42b   :  { %3305 = vrcp.f32 %v492_v26 }
 0x42c   :  { %3307 = vrcp.f32 %v489_v3  ;;  %v735_v24 = vpop.xlane.xlu0 %734 }
 0x42d   :  { %3309 = vrcp.f32 %v735_v24 }
 0x42e   :  { %3311 = vrcp.f32 %v738_v53 }
 0x430   :  { %v741_v23 = vpop.xlane.xlu0 %740 }
 0x431   :  { %3313 = vrcp.f32 %v741_v23 }
 0x433   :  { %v3302_v27 = vpop.eup %3301 }
 0x434   :  { %v3304_v29 = vpop.eup %3303  ;;  %v506_v33 = vmul.f32 %v3302_v27, %v3852_v16 }
 0x435   :  { %v3306_v38 = vpop.eup %3305  ;;  %v754_v3 = vmul.f32 %v3304_v29, %v3832_v45 }
 0x436   :  { %v3308_v1 = vpop.eup %3307  ;;  %v511_v40 = vpack.c.bf16 %v506_v33, %v505_v61  ;;  %v508_v53 = vmul.f32 %v3306_v38, %v3848_v62 }
 0x437   :  { %v3310_v43 = vpop.eup %3309  ;;  %v507_v60 = vmul.f32 %v3308_v1, %v3814_v39 }
 0x438   :  { %v306_v44 = vpop.permute.xlu0 %305  ;;  %v523_v50 = vsel %vm420_vm3, %v511_v40, 0  ;;  %v755_v46 = vmul.f32 %v3310_v43, %v3856_v2  ;;  %v3312_v42 = vpop.eup %3311 }
 0x439   :  { %v317_v48 = vadd.f32 %v306_v44, %v3716_v36  ;;  %3002 = vmatpush3.bf16.xpose.msra.mxu1 %v523_v50  ;;  %v512_v8 = vpack.c.bf16 %v508_v53, %v507_v60  ;;  %v756_v14 = vmul.f32 %v3312_v42, %v3828_v47  ;;  %v849_v47 = vsel %vm351_vm1, %v3895_v37, 0 }
 0x43a   :  { %v760_v16 = vpack.c.bf16 %v755_v46, %v754_v3  ;;  %3003 = vmatprep.subr.bf16.mxu1 %v3564_v56 }
 0x43b   :  { %v3314_v63 = vpop.eup %3313  ;;  %v3908_v51 = vpack.c.bf16 %v317_v48, %v316_v49  ;;  %v526_v36 = vsel %vm420_vm3, %v512_v8, 0 }
 0x43c   :  { %v774_v45 = vsel %vm420_vm3, %v760_v16, 0  ;;  %v757_v2 = vmul.f32 %v3314_v63, %v3860_v7 }
 0x43d   :  { %3024 = vmatpush3.bf16.xpose.msra.mxu0 %v774_v45  ;;  %v763_v7 = vrot.slane %v3908_v51, 4 }
 0x43e   :  { %3025 = vmatprep.subr.bf16.mxu0 %v3564_v56  ;;  %v761_v62 = vpack.c.bf16 %v757_v2, %v756_v14 }
 0x440   :  { %v777_v39 = vsel %vm420_vm3, %v761_v62, 0 }
 0x441   :  { %3004 = vmatpush3.bf16.xpose.msra.mxu1 %v526_v36 }
 0x442   :  { %3189 = vmatprep.subr.msk.bf16.mxu1 %vm351_vm1, %v3895_v37 }
 0x445   :  { %3026 = vmatpush3.bf16.xpose.msra.mxu0 %v777_v39 }
 0x446   :  { %3190 = vmatprep.subr.msk.bf16.mxu0 %vm351_vm1, %v3919_v52 }
 0x448   :  { %3006 = vmatmul.mubr.msk.bf16.vlgmr.msra.gmra.mrb[8].mxu1 %vm420_vm3, %v3908_v51 }
 0x449   :  { %3032 = vmatpush3.bf16.msra.mxu1 %v849_v47 }
 0x44a   :  { %3041 = vmatprep.subr.bf16.mxu1 %v3564_v56 }
 0x44c   :  { %3028 = vmatmul.mubr.msk.bf16.vlgmr.msra.gmra.mrb[20].mxu0 %vm420_vm3, %v763_v7 }
 0x44d   :  { %3054 = vmatpush3.bf16.msra.mxu0 %v1098_v55 }
 0x44e   :  { %3063 = vmatprep.subr.bf16.mxu0 %v3564_v56 }
 0x462   :  { %v828_v10 = vpop.trf.xlu1 }
 0x463   :  { %3033 = vmatprep.mubr.msk.bf16.mxu1 %vm338_vm2, %v828_v10 }
 0x464   :  { %v1075_v0 = vpop.trf.xlu0 }
 0x465   :  { %3055 = vmatprep.mubr.msk.bf16.mxu0 %vm338_vm2, %v1075_v0 }
 0x466   :  { %v829_v57 = vpop.trf.xlu1 }
 0x467   :  { %3034 = vmatmul.mubr.msk.bf16.vlgmr.msra.gmra.mrb[12].mxu1 %vm338_vm2, %v829_v57 }
 0x468   :  { %v1076_v54 = vpop.trf.xlu0 }
 0x469   :  { %3056 = vmatmul.mubr.msk.bf16.vlgmr.msra.gmra.mrb[24].mxu0 %vm338_vm2, %v1076_v54 }
 0x46a   :  { %v830_v12 = vpop.trf.xlu1 }
 0x46b   :  { %3037 = vmatprep.mubr.msk.bf16.mxu1 %vm338_vm2, %v830_v12 }
 0x46c   :  { %v1077_v11 = vpop.trf.xlu0 }
 0x46d   :  { %3059 = vmatprep.mubr.msk.bf16.mxu0 %vm338_vm2, %v1077_v11 }
 0x46e   :  { %v831_v15 = vpop.trf.xlu1 }
 0x46f   :  { %3038 = vmatmul.mubr.msk.bf16.gmra.mrb[16].mxu1 %vm338_vm2, %v831_v15 }
 0x470   :  { %v1078_v5 = vpop.trf.xlu0  ;;  %3049 = vmatprep.mubr.msk.bf16.mxu1 %vm3565_vm4, %v3564_v56 }
 0x471   :  { %3060 = vmatmul.mubr.msk.bf16.gmra.mrb[28].mxu0 %vm338_vm2, %v1078_v5 }
 0x472   :  { %3071 = vmatprep.mubr.msk.bf16.mxu0 %vm3565_vm4, %v3564_v56 }
 0x51b   :  { %v562_v58 = vpop.f32.mrb[8].mxu1 }
 0x51c   :  { %568 = vst.msk [vmem:[#allocation2] sm:$0xff] %vm420_vm3, %v562_v58  ;;  %v3007_v6 = vpop.f32.mrb[9].mxu1 }
 0x51d   :  { %v565_v13 = vpop.f32.mrb[10].mxu1 }
 0x51e   :  { %v3008_v31 = vpop.f32.mrb[11].mxu1 }
 0x51f   :  { %v813_v41 = vpop.f32.mrb[20].mxu0 }
 0x520   :  { %819 = vst.msk [vmem:[#allocation2 + $0x8] sm:$0xff] %vm420_vm3, %v813_v41  ;;  %v3029_v17 = vpop.f32.mrb[21].mxu0 }
 0x521   :  { %v816_v18 = vpop.f32.mrb[22].mxu0 }
 0x522   :  { %v3030_v20 = vpop.f32.mrb[23].mxu0 }
 0x53a   :  { %v3035_v59 = vpop.f32.mrb[12].mxu1 }
 0x53b   :  { %v885_v25 = vpop.f32.mrb[13].mxu1  ;;  %v922_v33 = vsel %vm420_vm3, %v3035_v59, -inf }
 0x53c   :  { %v3949_v26 = vpop.f32.mrb[14].mxu1  ;;  %v916_v19 = vsel %vm420_vm3, %v885_v25, -inf  ;;  %v3952_v24 = vpop.f32.mrb[24].mxu0 }
 0x53d   :  { %917 = vmax.xlane.f32.xlu1 %v916_v19  ;;  %v888_v23 = vpop.f32.mrb[15].mxu1  ;;  %v3954_v28 = vpop.f32.mrb[25].mxu0  ;;  %v925_v44 = vsel %vm420_vm3, %v3949_v26, -inf  ;;  %v1171_v42 = vsel %vm420_vm3, %v3952_v24, -inf }
 0x53e   :  { %v919_v27 = vsel %vm420_vm3, %v888_v23, -inf  ;;  %v3957_v29 = vpop.f32.mrb[26].mxu0  ;;  %v1165_v60 = vsel %vm420_vm3, %v3954_v28, -inf }
 0x53f   :  { %920 = vmax.xlane.f32.xlu0 %v919_v27  ;;  %v3959_v61 = vpop.f32.mrb[27].mxu0  ;;  %v1174_v38 = vsel %vm420_vm3, %v3957_v29, -inf }
 0x540   :  { %v1168_v45 = vsel %vm420_vm3, %v3959_v61, -inf }
 0x541   :  { %923 = vmax.xlane.f32.xlu1 %v922_v33 }
 0x542   :  { %v3964_v1 = vpop.f32.mrb[16].mxu1 }
 0x543   :  { %v3966_v40 = vpop.f32.mrb[17].mxu1  ;;  %1175 = vmax.xlane.f32.xlu0 %v1174_v38  ;;  %v934_v2 = vsel %vm420_vm3, %v3964_v1, -inf }
 0x544   :  { %v3968_v43 = vpop.f32.mrb[18].mxu1  ;;  %v3972_v50 = vpop.f32.mrb[28].mxu0  ;;  %v928_v14 = vsel %vm420_vm3, %v3966_v40, -inf }
 0x545   :  { %926 = vmax.xlane.f32.xlu1 %v925_v44  ;;  %v3974_v3 = vpop.f32.mrb[19].mxu1  ;;  %v3976_v46 = vpop.f32.mrb[29].mxu0  ;;  %v937_v63 = vsel %vm420_vm3, %v3968_v43, -inf  ;;  %v1183_v62 = vsel %vm420_vm3, %v3972_v50, -inf }
 0x546   :  { %v931_v53 = vsel %vm420_vm3, %v3974_v3, -inf  ;;  %v3980_v49 = vpop.f32.mrb[30].mxu0  ;;  %v1177_v36 = vsel %vm420_vm3, %v3976_v46, -inf }
 0x547   :  { %932 = vmax.xlane.f32.xlu0 %v931_v53  ;;  %v3982_v48 = vpop.f32.mrb[31].mxu0  ;;  %v1186_v8 = vsel %vm420_vm3, %v3980_v49, -inf }
 0x548   :  { %v1180_v16 = vsel %vm420_vm3, %v3982_v48, -inf }
 0x549   :  { %1172 = vmax.xlane.f32.xlu1 %v1171_v42 }
 0x54b   :  { %1181 = vmax.xlane.f32.xlu0 %v1180_v16 }
 0x54d   :  { %1166 = vmax.xlane.f32.xlu1 %v1165_v60 }
 0x54f   :  { %938 = vmax.xlane.f32.xlu0 %v937_v63 }
 0x551   :  { %1169 = vmax.xlane.f32.xlu1 %v1168_v45 }
 0x553   :  { %1187 = vmax.xlane.f32.xlu0 %v1186_v8 }
 0x555   :  { %935 = vmax.xlane.f32.xlu1 %v934_v2 }
 0x559   :  { %929 = vmax.xlane.f32.xlu1 %v928_v14 }
 0x55d   :  { %1178 = vmax.xlane.f32.xlu1 %v1177_v36 }
 0x561   :  { %1184 = vmax.xlane.f32.xlu1 %v1183_v62 }
 0x572   :  { %1315 = vrot.lane.b32.xlu1 %v3686_v21, %s3566_s2 }
 0x5ca   :  { %v918_v39 = vpop.xlane.xlu1 %917 }
 0x5cb   :  { %v940_v55 = vsub.f32 %v885_v25, %v918_v39 }
 0x5cc   :  { %v921_v47 = vpop.xlane.xlu0 %920 }
 0x5cd   :  { %v948_v54 = vmul.f32 1.442695, %v940_v55  ;;  %v941_v12 = vsub.f32 %v888_v23, %v921_v47 }
 0x5ce   :  { %v924_v10 = vpop.xlane.xlu1 %923 }
 0x5cf   :  { %v942_v0 = vsub.f32 %v3035_v59, %v924_v10  ;;  %v950_v6 = vmul.f32 1.442695, %v941_v12 }
 0x5d0   :  { %v1176_v57 = vpop.xlane.xlu0 %1175 }
 0x5d1   :  { %v952_v11 = vmul.f32 1.442695, %v942_v0  ;;  %v1192_v13 = vsub.f32 %v3957_v29, %v1176_v57 }
 0x5d2   :  { %v927_v15 = vpop.xlane.xlu1 %926 }
 0x5d3   :  { %3315 = vpow2.f32 %v952_v11  ;;  %v943_v5 = vsub.f32 %v3949_v26, %v927_v15  ;;  %v1203_v20 = vmul.f32 1.442695, %v1192_v13 }
 0x5d4   :  { %v933_v58 = vpop.xlane.xlu0 %932  ;;  %3317 = vpow2.f32 %v948_v54 }
 0x5d5   :  { %v954_v31 = vmul.f32 1.442695, %v943_v5 }
 0x5d6   :  { %v1173_v41 = vpop.xlane.xlu1 %1172 }
 0x5d7   :  { %3319 = vpow2.f32 %v954_v31  ;;  %v1191_v17 = vsub.f32 %v3952_v24, %v1173_v41 }
 0x5d8   :  { %v1182_v18 = vpop.xlane.xlu0 %1181  ;;  %3321 = vpow2.f32 %v950_v6 }
 0x5d9   :  { %v1201_v59 = vmul.f32 1.442695, %v1191_v17 }
 0x5da   :  { %v1167_v25 = vpop.xlane.xlu1 %1166 }
 0x5db   :  { %3323 = vpow2.f32 %v1201_v59  ;;  %v1189_v19 = vsub.f32 %v3954_v28, %v1167_v25  ;;  %v945_v28 = vsub.f32 %v3974_v3, %v933_v58 }
 0x5dc   :  { %v939_v23 = vpop.xlane.xlu0 %938  ;;  %3325 = vpow2.f32 %v1203_v20 }
 0x5dd   :  { %v4010_v26 = vpop.eup %3315  ;;  %v1197_v27 = vmul.f32 1.442695, %v1189_v19  ;;  %v947_v29 = vsub.f32 %v3968_v43, %v939_v23  ;;  %v958_v3 = vmul.f32 1.442695, %v945_v28 }
 0x5de   :  { %v1170_v33 = vpop.xlane.xlu1 %1169  ;;  %v970_v38 = vsel %vm420_vm3, %v4010_v26, 0.0  ;;  %v4015_v24 = vpop.eup %3317 }
 0x5df   :  { %3327 = vpow2.f32 %v1197_v27  ;;  %v1190_v44 = vsub.f32 %v3959_v61, %v1170_v33  ;;  %971 = vadd.xlane.f32.xlu1 %v970_v38  ;;  %v962_v42 = vmul.f32 1.442695, %v947_v29  ;;  %v964_v43 = vsel %vm420_vm3, %v4015_v24, 0.0 }
 0x5e0   :  { %v1188_v60 = vpop.xlane.xlu0 %1187 }
 0x5e1   :  { %v4018_v53 = vpop.eup %3319  ;;  %v1199_v16 = vmul.f32 1.442695, %v1190_v44  ;;  %v1196_v14 = vsub.f32 %v3980_v49, %v1188_v60  ;;  %v1194_v49 = vsub.f32 %v3982_v48, %v1182_v18 }
 0x5e2   :  { %v936_v63 = vpop.xlane.xlu1 %935  ;;  %v973_v45 = vsel %vm420_vm3, %v4018_v53, 0.0  ;;  %v4025_v8 = vpop.eup %3321 }
 0x5e3   :  { %3329 = vpow2.f32 %v1199_v16  ;;  %v946_v61 = vsub.f32 %v3964_v1, %v936_v63  ;;  %965 = vadd.xlane.f32.xlu1 %v964_v43  ;;  %974 = vadd.xlane.f32.xlu0 %v973_v45  ;;  %v967_v47 = vsel %vm420_vm3, %v4025_v8, 0.0  ;;  %v1211_v0 = vmul.f32 1.442695, %v1196_v14  ;;  %v3526_v16 = vld [vmem:[%s4664_s1 + $0x18] sm:$0xff] }
 0x5e4   :  { %3331 = vpow2.f32 %v962_v42  ;;  %v1207_v15 = vmul.f32 1.442695, %v1194_v49  ;;  %v3525_v42 = vld [vmem:[%s4664_s1 + $0x10] sm:$0xff] }
 0x5e5   :  { %v4028_v2 = vpop.eup %3323  ;;  %v960_v36 = vmul.f32 1.442695, %v946_v61 }
 0x5e6   :  { %v930_v62 = vpop.xlane.xlu1 %929  ;;  %v1219_v39 = vsel %vm420_vm3, %v4028_v2, 0.0  ;;  %v4035_v55 = vpop.eup %3325 }
 0x5e7   :  { %3333 = vpow2.f32 %v960_v36  ;;  %v944_v1 = vsub.f32 %v3966_v40, %v930_v62  ;;  %1220 = vadd.xlane.f32.xlu1 %v1219_v39  ;;  %968 = vadd.xlane.f32.xlu0 %v967_v47  ;;  %v1222_v11 = vsel %vm420_vm3, %v4035_v55, 0.0 }
 0x5e8   :  { %3335 = vpow2.f32 %v958_v3 }
 0x5e9   :  { %v4038_v10 = vpop.eup %3327  ;;  %v956_v57 = vmul.f32 1.442695, %v944_v1 }
 0x5ea   :  { %v1179_v54 = vpop.xlane.xlu1 %1178  ;;  %v1213_v12 = vsel %vm420_vm3, %v4038_v10, 0.0 }
 0x5eb   :  { %3337 = vpow2.f32 %v956_v57  ;;  %1214 = vadd.xlane.f32.xlu1 %v1213_v12  ;;  %1223 = vadd.xlane.f32.xlu0 %v1222_v11  ;;  %v1193_v5 = vsub.f32 %v3976_v46, %v1179_v54 }
 0x5ec   :  { %3339 = vpow2.f32 %v1211_v0 }
 0x5ed   :  { %v4045_v40 = vpop.eup %3329  ;;  %3341 = vpow2.f32 %v1207_v15  ;;  %v1205_v41 = vmul.f32 1.442695, %v1193_v5 }
 0x5ee   :  { %v1185_v58 = vpop.xlane.xlu1 %1184  ;;  %v1216_v48 = vsel %vm420_vm3, %v4045_v40, 0.0  ;;  %v4050_v6 = vpop.eup %3331 }
 0x5ef   :  { %v1195_v13 = vsub.f32 %v3972_v50, %v1185_v58  ;;  %1217 = vadd.xlane.f32.xlu0 %v1216_v48  ;;  %v985_v46 = vsel %vm420_vm3, %v4050_v6, 0.0 }
 0x5f1   :  { %v4053_v31 = vpop.eup %3333  ;;  %v1209_v17 = vmul.f32 1.442695, %v1195_v13 }
 0x5f2   :  { %v982_v18 = vsel %vm420_vm3, %v4053_v31, 0.0  ;;  %v4059_v20 = vpop.eup %3335  ;;  %v1316_v60 = vpop.permute.xlu1 %1315 }
 0x5f3   :  { %3343 = vpow2.f32 %v1209_v17  ;;  %983 = vadd.xlane.f32.xlu1 %v982_v18  ;;  %986 = vadd.xlane.f32.xlu0 %v985_v46  ;;  %v979_v25 = vsel %vm420_vm3, %v4059_v20, 0.0 }
 0x5f4   :  { %3345 = vpow2.f32 %v1205_v41 }
 0x5f5   :  { %v4061_v59 = vpop.eup %3337 }
 0x5f6   :  { %v976_v50 = vsel %vm420_vm3, %v4061_v59, 0.0  ;;  %v4067_v19 = vpop.eup %3339 }
 0x5f7   :  { %977 = vadd.xlane.f32.xlu1 %v976_v50  ;;  %980 = vadd.xlane.f32.xlu0 %v979_v25  ;;  %v1234_v23 = vsel %vm420_vm3, %v4067_v19, 0.0  ;;  %v4071_v27 = vpop.eup %3341 }
 0x5f8   :  { %v1228_v38 = vsel %vm420_vm3, %v4071_v27, 0.0 }
 0x5fb   :  { %1235 = vadd.xlane.f32.xlu0 %v1234_v23 }
 0x5fd   :  { %v4073_v29 = vpop.eup %3343 }
 0x5fe   :  { %v1231_v33 = vsel %vm420_vm3, %v4073_v29, 0.0  ;;  %v4079_v44 = vpop.eup %3345 }
 0x5ff   :  { %1232 = vadd.xlane.f32.xlu1 %v1231_v33  ;;  %1229 = vadd.xlane.f32.xlu0 %v1228_v38  ;;  %v1225_v28 = vsel %vm420_vm3, %v4079_v44, 0.0 }
 0x603   :  { %1226 = vadd.xlane.f32.xlu1 %v1225_v28 }
 0x614   :  { %309 = vperm.xlu1 %3224, %v3525_v42  }
 0x615   :  { %1571 = vrot.lane.b32.xlu0 %v570_v22, %s3566_s2 }
 0x618   :  { %313 = vperm.xlu1 %3224, %v3526_v16  }
 0x619   :  { %1334 = vrot.lane.b32.xlu0 %v3696_v30, %s3566_s2 }
 0x61c   :  { %1590 = vrot.lane.b32.xlu1 %v3704_v32, %s3566_s2 }
 0x637   :  { %1318 = vxpose.xlu0.c.b16.start.end [1/1] (short) (narrow) %v1316_v60, 64 }
 0x66c   :  { %v972_v63 = vpop.xlane.xlu1 %971 }
 0x670   :  { %v966_v43 = vpop.xlane.xlu1 %965  ;;  %v975_v45 = vpop.xlane.xlu0 %974 }
 0x671   :  { %3347 = vrcp.f32 %v966_v43 }
 0x674   :  { %v1221_v61 = vpop.xlane.xlu1 %1220  ;;  %v969_v21 = vpop.xlane.xlu0 %968 }
 0x675   :  { %3349 = vrcp.f32 %v969_v21 }
 0x676   :  { %3351 = vrcp.f32 %v975_v45 }
 0x677   :  { %3353 = vrcp.f32 %v972_v63 }
 0x678   :  { %v1215_v22 = vpop.xlane.xlu1 %1214  ;;  %v1224_v3 = vpop.xlane.xlu0 %1223 }
 0x679   :  { %3355 = vrcp.f32 %v1215_v22 }
 0x67b   :  { %v3348_v30 = vpop.eup %3347 }
 0x67c   :  { %v1218_v14 = vpop.xlane.xlu0 %1217  ;;  %v996_v39 = vmul.f32 %v3348_v30, %v4015_v24 }
 0x67d   :  { %3357 = vrcp.f32 %v1218_v14 }
 0x67e   :  { %3359 = vrcp.f32 %v1224_v3 }
 0x67f   :  { %v3350_v36 = vpop.eup %3349  ;;  %3361 = vrcp.f32 %v1221_v61 }
 0x680   :  { %v984_v32 = vpop.xlane.xlu1 %983  ;;  %v987_v62 = vpop.xlane.xlu0 %986  ;;  %v997_v47 = vmul.f32 %v3350_v36, %v4025_v8 }
 0x681   :  { %v3352_v1 = vpop.eup %3351 }
 0x682   :  { %v1004_v49 = vpack.c.bf16 %v997_v47, %v996_v39  ;;  %v3354_v0 = vpop.eup %3353  ;;  %v999_v15 = vmul.f32 %v3352_v1, %v4018_v53 }
 0x683   :  { %v3356_v12 = vpop.eup %3355  ;;  %v998_v24 = vmul.f32 %v3354_v0, %v4010_v26 }
 0x684   :  { %v978_v57 = vpop.xlane.xlu1 %977  ;;  %v981_v54 = vpop.xlane.xlu0 %980  ;;  %v1012_v11 = vsel %vm420_vm3, %v1004_v49, 0  ;;  %v1245_v58 = vmul.f32 %v3356_v12, %v4038_v10 }
 0x685   :  { %3363 = vrcp.f32 %v978_v57  ;;  %3042 = vmatpush3.bf16.xpose.msra.mxu1 %v1012_v11  ;;  %v1005_v41 = vpack.c.bf16 %v999_v15, %v998_v24 }
 0x686   :  { %3365 = vrcp.f32 %v981_v54  ;;  %3043 = vmatprep.subr.bf16.mxu1 %v3564_v56 }
 0x687   :  { %v3358_v5 = vpop.eup %3357  ;;  %3367 = vrcp.f32 %v984_v32  ;;  %v1015_v23 = vsel %vm420_vm3, %v1005_v41, 0 }
 0x688   :  { %3369 = vrcp.f32 %v987_v62  ;;  %v1236_v8 = vpop.xlane.xlu0 %1235  ;;  %v1246_v48 = vmul.f32 %v3358_v5, %v4045_v40  ;;  %v3360_v13 = vpop.eup %3359 }
 0x689   :  { %v3362_v18 = vpop.eup %3361  ;;  %v1248_v25 = vmul.f32 %v3360_v13, %v4035_v55 }
 0x68a   :  { %v1253_v17 = vpack.c.bf16 %v1246_v48, %v1245_v58  ;;  %v1247_v26 = vmul.f32 %v3362_v18, %v4028_v2 }
 0x68c   :  { %v1233_v46 = vpop.xlane.xlu1 %1232  ;;  %v1230_v53 = vpop.xlane.xlu0 %1229  ;;  %v1263_v50 = vsel %vm420_vm3, %v1253_v17, 0  ;;  %v1254_v42 = vpack.c.bf16 %v1248_v25, %v1247_v26 }
 0x68d   :  { %3064 = vmatpush3.bf16.xpose.msra.mxu0 %v1263_v50  ;;  %3044 = vmatpush3.bf16.xpose.msra.mxu1 %v1015_v23  ;;  %3371 = vrcp.f32 %v1230_v53 }
 0x68e   :  { %3065 = vmatprep.subr.bf16.mxu0 %v3564_v56  ;;  %3045 = vmatprep.subr.bf16.mxu1 %v3564_v56  ;;  %v1266_v2 = vsel %vm420_vm3, %v1254_v42, 0 }
 0x68f   :  { %v3364_v10 = vpop.eup %3363 }
 0x690   :  { %v3366_v40 = vpop.eup %3365  ;;  %v1227_v33 = vpop.xlane.xlu1 %1226  ;;  %v1000_v28 = vmul.f32 %v3364_v10, %v4061_v59 }
 0x691   :  { %v1572_v38 = vpop.permute.xlu0 %1571  ;;  %v3368_v16 = vpop.eup %3367  ;;  %3373 = vrcp.f32 %v1227_v33  ;;  %v1001_v55 = vmul.f32 %v3366_v40, %v4059_v20 }
 0x692   :  { %1574 = vxpose.xlu1.c.b16.start.end [1/1] (short) (narrow) %v1572_v38, 64  ;;  %v3370_v60 = vpop.eup %3369  ;;  %3375 = vrcp.f32 %v1233_v46  ;;  %v1002_v61 = vmul.f32 %v3368_v16, %v4053_v31 }
 0x693   :  { %v1006_v63 = vpack.c.bf16 %v1001_v55, %v1000_v28  ;;  %3377 = vrcp.f32 %v1236_v8  ;;  %v1003_v59 = vmul.f32 %v3370_v60, %v4050_v6 }
 0x694   :  { %v310_v43 = vpop.permute.xlu1 %309 }
 0x695   :  { %v1018_v45 = vsel %vm420_vm3, %v1006_v63, 0  ;;  %3066 = vmatpush3.bf16.xpose.msra.mxu0 %v1266_v2  ;;  %v318_v22 = vadd.f32 %v3710_v34, %v310_v43  ;;  %v1007_v14 = vpack.c.bf16 %v1003_v59, %v1002_v61  ;;  %v1335_v39 = vpop.permute.xlu0 %1334 }
 0x696   :  { %3046 = vmatpush3.bf16.xpose.msra.mxu1 %v1018_v45  ;;  %3067 = vmatprep.subr.bf16.mxu0 %v3564_v56  ;;  %v1349_v0 = vsel %vm351_vm1, %v1335_v39, 0 }
 0x697   :  { %3047 = vmatprep.subr.bf16.mxu1 %v3564_v56  ;;  %v3372_v21 = vpop.eup %3371  ;;  %v1021_v62 = vsel %vm420_vm3, %v1007_v14, 0 }
 0x698   :  { %v314_v20 = vpop.permute.xlu1 %313  ;;  %v1250_v31 = vmul.f32 %v3372_v21, %v4071_v27 }
 0x699   :  { %v319_v3 = vadd.f32 %v3714_v35, %v314_v20 }
 0x69b   :  { %v3374_v30 = vpop.eup %3373  ;;  %v4120_v36 = vpack.c.bf16 %v319_v3, %v318_v22 }
 0x69c   :  { %v1249_v32 = vmul.f32 %v3374_v30, %v4079_v44  ;;  %v3376_v6 = vpop.eup %3375  ;;  %v1591_v54 = vpop.permute.xlu1 %1590 }
 0x69d   :  { %v3378_v1 = vpop.eup %3377  ;;  %v1251_v35 = vmul.f32 %v3376_v6, %v4073_v29  ;;  %v1326_v49 = vpop.trf.xlu0  ;;  %v1605_v11 = vsel %vm351_vm1, %v1591_v54, 0 }
 0x69e   :  { %3048 = vmatpush3.bf16.xpose.msra.mxu1 %v1021_v62  ;;  %v1255_v47 = vpack.c.bf16 %v1250_v31, %v1249_v32  ;;  %v1252_v44 = vmul.f32 %v3378_v1, %v4067_v19  ;;  %v1258_v19 = vrot.slane %v4120_v36, 4 }
 0x69f   :  { %3191 = vmatprep.subr.msk.bf16.mxu1 %vm351_vm1, %v1335_v39 }
 0x6a0   :  { %v1269_v34 = vsel %vm420_vm3, %v1255_v47, 0  ;;  %v1256_v27 = vpack.c.bf16 %v1252_v44, %v1251_v35 }
 0x6a1   :  { %3068 = vmatpush3.bf16.xpose.msra.mxu0 %v1269_v34  ;;  %v1327_v29 = vpop.trf.xlu0 }
 0x6a2   :  { %3069 = vmatprep.subr.bf16.mxu0 %v3564_v56  ;;  %v1272_v57 = vsel %vm420_vm3, %v1256_v27, 0 }
 0x6a5   :  { %3050 = vmatmul.mubr.msk.bf16.vlgmr.msra.gmra.mrb[20].mxu1 %vm420_vm3, %v4120_v36  ;;  %v1328_v12 = vpop.trf.xlu0 }
 0x6a6   :  { %3076 = vmatpush3.bf16.msra.mxu1 %v1349_v0  ;;  %3077 = vmatprep.mubr.msk.bf16.mxu1 %vm338_vm2, %v1326_v49 }
 0x6a7   :  { %3085 = vmatprep.subr.bf16.mxu1 %v3564_v56 }
 0x6a9   :  { %3070 = vmatpush3.bf16.xpose.msra.mxu0 %v1272_v57  ;;  %v1329_v15 = vpop.trf.xlu0 }
 0x6aa   :  { %3192 = vmatprep.subr.msk.bf16.mxu0 %vm351_vm1, %v1591_v54 }
 0x6ad   :  { %3078 = vmatmul.mubr.msk.bf16.vlgmr.msra.gmra.mrb[24].mxu1 %vm338_vm2, %v1327_v29 }
 0x6ae   :  { %3081 = vmatprep.mubr.msk.bf16.mxu1 %vm338_vm2, %v1328_v12 }
 0x6b0   :  { %3072 = vmatmul.mubr.msk.bf16.vlgmr.msra.gmra.mrb[32].mxu0 %vm420_vm3, %v1258_v19 }
 0x6b1   :  { %3098 = vmatpush3.bf16.msra.mxu0 %v1605_v11 }
 0x6b2   :  { %3107 = vmatprep.subr.bf16.mxu0 %v3564_v56 }
 0x6b5   :  { %3082 = vmatmul.mubr.msk.bf16.gmra.mrb[28].mxu1 %vm338_vm2, %v1329_v15 }
 0x6b6   :  { %3093 = vmatprep.mubr.msk.bf16.mxu1 %vm3565_vm4, %v3564_v56 }
 0x6f8   :  { %v1582_v5 = vpop.trf.xlu1 }
 0x6f9   :  { %3099 = vmatprep.mubr.msk.bf16.mxu0 %vm338_vm2, %v1582_v5 }
 0x6fc   :  { %v1583_v24 = vpop.trf.xlu1 }
 0x6fd   :  { %3100 = vmatmul.mubr.msk.bf16.vlgmr.msra.gmra.mrb[36].mxu0 %vm338_vm2, %v1583_v24 }
 0x700   :  { %v1584_v8 = vpop.trf.xlu1 }
 0x701   :  { %3103 = vmatprep.mubr.msk.bf16.mxu0 %vm338_vm2, %v1584_v8 }
 0x704   :  { %v1585_v58 = vpop.trf.xlu1 }
 0x705   :  { %3104 = vmatmul.mubr.msk.bf16.gmra.mrb[40].mxu0 %vm338_vm2, %v1585_v58 }
 0x706   :  { %3115 = vmatprep.mubr.msk.bf16.mxu0 %vm3565_vm4, %v3564_v56 }
 0x778   :  { %v1057_v48 = vpop.f32.mrb[20].mxu1 }
 0x779   :  { %1063 = vst.msk [vmem:[#allocation2 + $0x10] sm:$0xff] %vm420_vm3, %v1057_v48  ;;  %v3051_v13 = vpop.f32.mrb[21].mxu1 }
 0x77a   :  { %v1060_v41 = vpop.f32.mrb[22].mxu1 }
 0x77b   :  { %v3052_v17 = vpop.f32.mrb[23].mxu1 }
 0x780   :  { %v3079_v18 = vpop.f32.mrb[24].mxu1 }
 0x781   :  { %v1385_v46 = vpop.f32.mrb[25].mxu1  ;;  %v1422_v53 = vsel %vm420_vm3, %v3079_v18, -inf }
 0x782   :  { %1423 = vmax.xlane.f32.xlu1 %v1422_v53  ;;  %v1416_v50 = vsel %vm420_vm3, %v1385_v46, -inf  ;;  %v4157_v25 = vpop.f32.mrb[26].mxu1 }
 0x783   :  { %1417 = vmax.xlane.f32.xlu0 %v1416_v50  ;;  %v1308_v23 = vpop.f32.mrb[32].mxu0  ;;  %v4159_v26 = vpop.f32.mrb[27].mxu1  ;;  %v1425_v14 = vsel %vm420_vm3, %v4157_v25, -inf }
 0x784   :  { %1314 = vst.msk [vmem:[#allocation2 + $0x18] sm:$0xff] %vm420_vm3, %v1308_v23  ;;  %v3073_v10 = vpop.f32.mrb[33].mxu0  ;;  %v1419_v40 = vsel %vm420_vm3, %v4159_v26, -inf }
 0x785   :  { %v1311_v33 = vpop.f32.mrb[34].mxu0 }
 0x786   :  { %1420 = vmax.xlane.f32.xlu1 %v1419_v40  ;;  %v3074_v38 = vpop.f32.mrb[35].mxu0 }
 0x788   :  { %v4164_v28 = vpop.f32.mrb[28].mxu1 }
 0x789   :  { %v4166_v42 = vpop.f32.mrb[29].mxu1  ;;  %v1434_v59 = vsel %vm420_vm3, %v4164_v28, -inf }
 0x78a   :  { %v4168_v16 = vpop.f32.mrb[30].mxu1  ;;  %v1428_v21 = vsel %vm420_vm3, %v4166_v42, -inf }
 0x78b   :  { %v4170_v55 = vpop.f32.mrb[31].mxu1  ;;  %v1437_v1 = vsel %vm420_vm3, %v4168_v16, -inf }
 0x78c   :  { %v1431_v39 = vsel %vm420_vm3, %v4170_v55, -inf }
 0x7d0   :  { %v3101_v60 = vpop.f32.mrb[36].mxu0 }
 0x7d1   :  { %v1641_v63 = vpop.f32.mrb[37].mxu0  ;;  %v1678_v43 = vsel %vm420_vm3, %v3101_v60, -inf }
 0x7d2   :  { %v4173_v2 = vpop.f32.mrb[38].mxu0  ;;  %1679 = vmax.xlane.f32.xlu1 %v1678_v43  ;;  %v1672_v45 = vsel %vm420_vm3, %v1641_v63, -inf }
 0x7d3   :  { %v4176_v61 = vpop.f32.mrb[39].mxu0  ;;  %1673 = vmax.xlane.f32.xlu0 %v1672_v45  ;;  %v1681_v6 = vsel %vm420_vm3, %v4173_v2, -inf }
 0x7d4   :  { %v1675_v20 = vsel %vm420_vm3, %v4176_v61, -inf }
 0x7d6   :  { %1435 = vmax.xlane.f32.xlu1 %v1434_v59 }
 0x7d7   :  { %1676 = vmax.xlane.f32.xlu0 %v1675_v20 }
 0x7d8   :  { %v4184_v22 = vpop.f32.mrb[40].mxu0 }
 0x7d9   :  { %v4186_v3 = vpop.f32.mrb[41].mxu0  ;;  %v1690_v62 = vsel %vm420_vm3, %v4184_v22, -inf }
 0x7da   :  { %1429 = vmax.xlane.f32.xlu1 %v1428_v21  ;;  %v4190_v30 = vpop.f32.mrb[42].mxu0  ;;  %v1684_v32 = vsel %vm420_vm3, %v4186_v3, -inf }
 0x7db   :  { %1426 = vmax.xlane.f32.xlu0 %v1425_v14  ;;  %v4194_v31 = vpop.f32.mrb[43].mxu0  ;;  %v1693_v34 = vsel %vm420_vm3, %v4190_v30, -inf }
 0x7dc   :  { %v1687_v47 = vsel %vm420_vm3, %v4194_v31, -inf }
 0x7de   :  { %1685 = vmax.xlane.f32.xlu1 %v1684_v32 }
 0x7df   :  { %1682 = vmax.xlane.f32.xlu0 %v1681_v6 }
 0x7e2   :  { %1691 = vmax.xlane.f32.xlu1 %v1690_v62 }
 0x7e3   :  { %1432 = vmax.xlane.f32.xlu0 %v1431_v39 }
 0x7e7   :  { %1688 = vmax.xlane.f32.xlu0 %v1687_v47 }
 0x7eb   :  { %1438 = vmax.xlane.f32.xlu0 %v1437_v1 }
 0x7ef   :  { %1694 = vmax.xlane.f32.xlu0 %v1693_v34 }
 0x7f3   :  { %1826 = vrot.lane.b32.xlu1 %v3877_v9, %s3566_s2 }
 0x80f   :  { %v1424_v35 = vpop.xlane.xlu1 %1423 }
 0x810   :  { %v1442_v49 = vsub.f32 %v3079_v18, %v1424_v35  ;;  %v1418_v44 = vpop.xlane.xlu0 %1417 }
 0x811   :  { %v1440_v27 = vsub.f32 %v1385_v46, %v1418_v44 }
 0x812   :  { %v1452_v0 = vmul.f32 1.442695, %v1442_v49 }
 0x813   :  { %v1448_v57 = vmul.f32 1.442695, %v1440_v27  ;;  %v1421_v15 = vpop.xlane.xlu1 %1420 }
 0x814   :  { %3379 = vpow2.f32 %v1452_v0  ;;  %v1441_v53 = vsub.f32 %v4159_v26, %v1421_v15 }
 0x815   :  { %3381 = vpow2.f32 %v1448_v57 }
 0x816   :  { %v1450_v38 = vmul.f32 1.442695, %v1441_v53 }
 0x81e   :  { %v4210_v29 = vpop.eup %3379 }
 0x81f   :  { %v1470_v54 = vsel %vm420_vm3, %v4210_v29, 0.0  ;;  %v4214_v12 = vpop.eup %3381 }
 0x820   :  { %1471 = vadd.xlane.f32.xlu1 %v1470_v54  ;;  %v1464_v11 = vsel %vm420_vm3, %v4214_v12, 0.0 }
 0x824   :  { %1465 = vadd.xlane.f32.xlu1 %v1464_v11 }
 0x85f   :  { %v1680_v5 = vpop.xlane.xlu1 %1679 }
 0x860   :  { %v1698_v24 = vsub.f32 %v3101_v60, %v1680_v5  ;;  %v1674_v8 = vpop.xlane.xlu0 %1673 }
 0x861   :  { %v1696_v58 = vsub.f32 %v1641_v63, %v1674_v8 }
 0x862   :  { %v1708_v48 = vmul.f32 1.442695, %v1698_v24 }
 0x863   :  { %v1704_v13 = vmul.f32 1.442695, %v1696_v58  ;;  %v1436_v41 = vpop.xlane.xlu1 %1435 }
 0x864   :  { %3383 = vpow2.f32 %v1708_v48  ;;  %v1446_v17 = vsub.f32 %v4164_v28, %v1436_v41  ;;  %v1677_v18 = vpop.xlane.xlu0 %1676 }
 0x865   :  { %3385 = vpow2.f32 %v1704_v13 }
 0x866   :  { %v1460_v46 = vmul.f32 1.442695, %v1446_v17 }
 0x867   :  { %v1430_v50 = vpop.xlane.xlu1 %1429 }
 0x868   :  { %v1444_v23 = vsub.f32 %v4166_v42, %v1430_v50  ;;  %v1427_v10 = vpop.xlane.xlu0 %1426  ;;  %3387 = vpow2.f32 %v1460_v46  ;;  %v1697_v42 = vsub.f32 %v4176_v61, %v1677_v18 }
 0x869   :  { %v1443_v40 = vsub.f32 %v4157_v25, %v1427_v10 }
 0x86a   :  { %v1456_v33 = vmul.f32 1.442695, %v1444_v23  ;;  %v1706_v62 = vmul.f32 1.442695, %v1697_v42 }
 0x86b   :  { %v1454_v60 = vmul.f32 1.442695, %v1443_v40  ;;  %v1686_v63 = vpop.xlane.xlu1 %1685 }
 0x86c   :  { %v1683_v43 = vpop.xlane.xlu0 %1682  ;;  %v1700_v26 = vsub.f32 %v4186_v3, %v1686_v63 }
 0x86d   :  { %3389 = vpow2.f32 %v1454_v60  ;;  %v1699_v28 = vsub.f32 %v4173_v2, %v1683_v43 }
 0x86e   :  { %v4223_v45 = vpop.eup %3383  ;;  %3391 = vpow2.f32 %v1456_v33  ;;  %v1712_v2 = vmul.f32 1.442695, %v1700_v26 }
 0x86f   :  { %3393 = vpow2.f32 %v1450_v38  ;;  %v1710_v59 = vmul.f32 1.442695, %v1699_v28  ;;  %v1692_v20 = vpop.xlane.xlu1 %1691  ;;  %v1726_v25 = vsel %vm420_vm3, %v4223_v45, 0.0  ;;  %v4229_v21 = vpop.eup %3385 }
 0x870   :  { %v1702_v14 = vsub.f32 %v4184_v22, %v1692_v20  ;;  %1727 = vadd.xlane.f32.xlu1 %v1726_v25  ;;  %v1433_v32 = vpop.xlane.xlu0 %1432  ;;  %v1720_v3 = vsel %vm420_vm3, %v4229_v21, 0.0 }
 0x871   :  { %3395 = vpow2.f32 %v1710_v59  ;;  %v1445_v22 = vsub.f32 %v4170_v55, %v1433_v32 }
 0x872   :  { %v1716_v6 = vmul.f32 1.442695, %v1702_v14  ;;  %v4234_v39 = vpop.eup %3387 }
 0x873   :  { %v1482_v1 = vsel %vm420_vm3, %v4234_v39, 0.0  ;;  %v1458_v0 = vmul.f32 1.442695, %v1445_v22  ;;  %v1827_v38 = vpop.permute.xlu1 %1826 }
 0x874   :  { %3397 = vpow2.f32 %v1716_v6  ;;  %1721 = vadd.xlane.f32.xlu1 %v1720_v3  ;;  %v1689_v61 = vpop.xlane.xlu0 %1688 }
 0x875   :  { %3399 = vpow2.f32 %v1712_v2 }
 0x876   :  { %3401 = vpow2.f32 %v1706_v62 }
 0x877   :  { %v4236_v47 = vpop.eup %3389 }
 0x878   :  { %v4241_v34 = vpop.eup %3391  ;;  %1483 = vadd.xlane.f32.xlu1 %v1482_v1  ;;  %v1439_v35 = vpop.xlane.xlu0 %1438  ;;  %v1473_v49 = vsel %vm420_vm3, %v4236_v47, 0.0 }
 0x879   :  { %v4245_v44 = vpop.eup %3393  ;;  %v1447_v27 = vsub.f32 %v4168_v16, %v1439_v35  ;;  %1474 = vadd.xlane.f32.xlu0 %v1473_v49  ;;  %v1476_v55 = vsel %vm420_vm3, %v4241_v34, 0.0  ;;  %v1701_v16 = vsub.f32 %v4194_v31, %v1689_v61 }
 0x87a   :  { %v1467_v11 = vsel %vm420_vm3, %v4245_v44, 0.0 }
 0x87b   :  { %v1462_v57 = vmul.f32 1.442695, %v1447_v27  ;;  %v4252_v15 = vpop.eup %3395 }
 0x87c   :  { %1477 = vadd.xlane.f32.xlu1 %v1476_v55  ;;  %v1695_v54 = vpop.xlane.xlu0 %1694  ;;  %v1729_v13 = vsel %vm420_vm3, %v4252_v15, 0.0 }
 0x87d   :  { %3403 = vpow2.f32 %v1462_v57  ;;  %v1703_v5 = vsub.f32 %v4190_v30, %v1695_v54  ;;  %1468 = vadd.xlane.f32.xlu0 %v1467_v11  ;;  %v1714_v30 = vmul.f32 1.442695, %v1701_v16 }
 0x87e   :  { %v4255_v24 = vpop.eup %3397  ;;  %3405 = vpow2.f32 %v1458_v0 }
 0x87f   :  { %v1718_v8 = vmul.f32 1.442695, %v1703_v5  ;;  %v1738_v58 = vsel %vm420_vm3, %v4255_v24, 0.0  ;;  %v4260_v48 = vpop.eup %3399 }
 0x880   :  { %1739 = vadd.xlane.f32.xlu1 %v1738_v58  ;;  %v4264_v41 = vpop.eup %3401  ;;  %v1732_v17 = vsel %vm420_vm3, %v4260_v48, 0.0 }
 0x881   :  { %1730 = vadd.xlane.f32.xlu0 %v1729_v13  ;;  %3407 = vpow2.f32 %v1718_v8  ;;  %v1723_v31 = vsel %vm420_vm3, %v4264_v41, 0.0 }
 0x882   :  { %3409 = vpow2.f32 %v1714_v30 }
 0x884   :  { %1733 = vadd.xlane.f32.xlu1 %v1732_v17 }
 0x885   :  { %1724 = vadd.xlane.f32.xlu0 %v1723_v31 }
 0x887   :  { %v4270_v18 = vpop.eup %3403 }
 0x888   :  { %v1485_v46 = vsel %vm420_vm3, %v4270_v18, 0.0  ;;  %v4274_v53 = vpop.eup %3405 }
 0x889   :  { %1486 = vadd.xlane.f32.xlu0 %v1485_v46  ;;  %v1479_v50 = vsel %vm420_vm3, %v4274_v53, 0.0 }
 0x88b   :  { %v4278_v23 = vpop.eup %3407 }
 0x88c   :  { %v1741_v10 = vsel %vm420_vm3, %v4278_v23, 0.0  ;;  %v4282_v40 = vpop.eup %3409 }
 0x88d   :  { %1480 = vadd.xlane.f32.xlu0 %v1479_v50  ;;  %v1735_v33 = vsel %vm420_vm3, %v4282_v40, 0.0 }
 0x891   :  { %1742 = vadd.xlane.f32.xlu0 %v1741_v10 }
 0x895   :  { %1508 = vrot.lane.b32.xlu1 %v3908_v51, %s3566_s2  ;;  %1736 = vadd.xlane.f32.xlu0 %v1735_v33 }
 0x899   :  { %1764 = vrot.lane.b32.xlu1 %v763_v7, %s3566_s2 }
 0x89d   :  { %2100 = vrot.lane.b32.xlu1 %v3919_v52, %s3566_s2 }
 0x8ab   :  { %2081 = vrot.lane.b32.xlu0 %v1065_v4, %s3566_s2 }
 0x8ad   :  { %v1472_v60 = vpop.xlane.xlu1 %1471 }
 0x8af   :  { %1845 = vrot.lane.b32.xlu0 %v3895_v37, %s3566_s2 }
 0x8b1   :  { %v1466_v63 = vpop.xlane.xlu1 %1465 }
 0x8b2   :  { %3411 = vrcp.f32 %v1466_v63 }
 0x8bc   :  { %v3412_v42 = vpop.eup %3411 }
 0x8bd   :  { %v1496_v20 = vmul.f32 %v3412_v42, %v4214_v12 }
 0x8cd   :  { %1829 = vxpose.xlu0.c.b16.start.end [1/1] (short) (narrow) %v1827_v38, 64 }
 0x8fd   :  { %v1728_v43 = vpop.xlane.xlu1 %1727 }
 0x901   :  { %v1722_v28 = vpop.xlane.xlu1 %1721 }
 0x905   :  { %v1484_v7 = vpop.xlane.xlu1 %1483 }
 0x906   :  { %v1475_v26 = vpop.xlane.xlu0 %1474 }
 0x909   :  { %v1478_v9 = vpop.xlane.xlu1 %1477 }
 0x90a   :  { %v1469_v51 = vpop.xlane.xlu0 %1468 }
 0x90b   :  { %3413 = vrcp.f32 %v1469_v51 }
 0x90c   :  { %3415 = vrcp.f32 %v1475_v26 }
 0x90d   :  { %3417 = vrcp.f32 %v1472_v60  ;;  %v1740_v32 = vpop.xlane.xlu1 %1739 }
 0x90e   :  { %v1731_v52 = vpop.xlane.xlu0 %1730  ;;  %3419 = vrcp.f32 %v1722_v28 }
 0x911   :  { %v1734_v35 = vpop.xlane.xlu1 %1733 }
 0x912   :  { %v1725_v4 = vpop.xlane.xlu0 %1724 }
 0x913   :  { %3421 = vrcp.f32 %v1725_v4 }
 0x914   :  { %3423 = vrcp.f32 %v1731_v52 }
 0x915   :  { %v3414_v37 = vpop.eup %3413  ;;  %3425 = vrcp.f32 %v1728_v43  ;;  %v1509_v43 = vpop.permute.xlu1 %1508 }
 0x916   :  { %v1487_v59 = vpop.xlane.xlu0 %1486  ;;  %v1497_v25 = vmul.f32 %v3414_v37, %v4245_v44  ;;  %v3416_v14 = vpop.eup %3415  ;;  %3427 = vrcp.f32 %v1478_v9 }
 0x917   :  { %v3418_v6 = vpop.eup %3417  ;;  %v1499_v61 = vmul.f32 %v3416_v14, %v4236_v47 }
 0x918   :  { %v1504_v2 = vpack.c.bf16 %v1497_v25, %v1496_v20  ;;  %v3420_v22 = vpop.eup %3419  ;;  %v1498_v12 = vmul.f32 %v3418_v6, %v4210_v29 }
 0x919   :  { %v1752_v27 = vmul.f32 %v3420_v22, %v4229_v21 }
 0x91a   :  { %v1481_v62 = vpop.xlane.xlu0 %1480  ;;  %v1514_v3 = vsel %vm420_vm3, %v1504_v2, 0  ;;  %v1505_v44 = vpack.c.bf16 %v1499_v61, %v1498_v12 }
 0x91b   :  { %3429 = vrcp.f32 %v1481_v62  ;;  %3086 = vmatpush3.bf16.xpose.msra.mxu1 %v1514_v3 }
 0x91c   :  { %3087 = vmatprep.subr.bf16.mxu1 %v3564_v56  ;;  %3431 = vrcp.f32 %v1487_v59  ;;  %v1517_v11 = vsel %vm420_vm3, %v1505_v44, 0 }
 0x91d   :  { %v3422_v1 = vpop.eup %3421  ;;  %3433 = vrcp.f32 %v1484_v7 }
 0x91e   :  { %v1743_v49 = vpop.xlane.xlu0 %1742  ;;  %v1753_v0 = vmul.f32 %v3422_v1, %v4264_v41  ;;  %v3424_v57 = vpop.eup %3423  ;;  %3435 = vrcp.f32 %v1734_v35 }
 0x91f   :  { %v3426_v47 = vpop.eup %3425  ;;  %v1755_v29 = vmul.f32 %v3424_v57, %v4252_v15 }
 0x920   :  { %v1760_v55 = vpack.c.bf16 %v1753_v0, %v1752_v27  ;;  %v3428_v16 = vpop.eup %3427  ;;  %v1754_v21 = vmul.f32 %v3426_v47, %v4223_v45 }
 0x921   :  { %v1500_v13 = vmul.f32 %v3428_v16, %v4241_v34 }
 0x922   :  { %v1737_v54 = vpop.xlane.xlu0 %1736  ;;  %v1770_v5 = vsel %vm420_vm3, %v1760_v55, 0  ;;  %v1761_v30 = vpack.c.bf16 %v1755_v29, %v1754_v21 }
 0x923   :  { %3437 = vrcp.f32 %v1737_v54  ;;  %3088 = vmatpush3.bf16.xpose.msra.mxu1 %v1517_v11  ;;  %3108 = vmatpush3.bf16.xpose.msra.mxu0 %v1770_v5 }
 0x924   :  { %3089 = vmatprep.subr.bf16.mxu1 %v3564_v56  ;;  %3109 = vmatprep.subr.bf16.mxu0 %v3564_v56  ;;  %3439 = vrcp.f32 %v1743_v49  ;;  %v1773_v50 = vsel %vm420_vm3, %v1761_v30, 0 }
 0x925   :  { %v3430_v8 = vpop.eup %3429  ;;  %3441 = vrcp.f32 %v1740_v32 }
 0x926   :  { %v2082_v58 = vpop.permute.xlu0 %2081  ;;  %v1501_v41 = vmul.f32 %v3430_v8, %v4274_v53  ;;  %v3432_v17 = vpop.eup %3431 }
 0x927   :  { %2084 = vxpose.xlu1.c.b16.start.end [1/1] (short) (narrow) %v2082_v58, 64  ;;  %v3434_v31 = vpop.eup %3433  ;;  %v1503_v10 = vmul.f32 %v3432_v17, %v4270_v18 }
 0x928   :  { %v1506_v15 = vpack.c.bf16 %v1501_v41, %v1500_v13  ;;  %v3436_v45 = vpop.eup %3435  ;;  %v1502_v34 = vmul.f32 %v3434_v31, %v4234_v39 }
 0x929   :  { %v1756_v38 = vmul.f32 %v3436_v45, %v4260_v48  ;;  %v1765_v48 = vpop.permute.xlu1 %1764 }
 0x92a   :  { %v1520_v46 = vsel %vm420_vm3, %v1506_v15, 0  ;;  %v1507_v33 = vpack.c.bf16 %v1503_v10, %v1502_v34  ;;  %v1846_v52 = vpop.permute.xlu0 %1845 }
 0x92b   :  { %3090 = vmatpush3.bf16.xpose.msra.mxu1 %v1520_v46  ;;  %3110 = vmatpush3.bf16.xpose.msra.mxu0 %v1773_v50  ;;  %v1860_v4 = vsel %vm351_vm1, %v1846_v52, 0 }
 0x92c   :  { %3091 = vmatprep.subr.bf16.mxu1 %v3564_v56  ;;  %3111 = vmatprep.subr.bf16.mxu0 %v3564_v56  ;;  %v1523_v18 = vsel %vm420_vm3, %v1507_v33, 0 }
 0x92d   :  { %v3438_v53 = vpop.eup %3437  ;;  %v2101_v37 = vpop.permute.xlu1 %2100 }
 0x92e   :  { %v1757_v60 = vmul.f32 %v3438_v53, %v4282_v40  ;;  %v3440_v63 = vpop.eup %3439  ;;  %v2115_v59 = vsel %vm351_vm1, %v2101_v37, 0 }
 0x92f   :  { %v3442_v26 = vpop.eup %3441  ;;  %v1759_v7 = vmul.f32 %v3440_v63, %v4278_v23 }
 0x930   :  { %v1762_v28 = vpack.c.bf16 %v1757_v60, %v1756_v38  ;;  %v1758_v39 = vmul.f32 %v3442_v26, %v4255_v24 }
 0x932   :  { %v1776_v51 = vsel %vm420_vm3, %v1762_v28, 0  ;;  %v1763_v40 = vpack.c.bf16 %v1759_v7, %v1758_v39 }
 0x933   :  { %3092 = vmatpush3.bf16.xpose.msra.mxu1 %v1523_v18  ;;  %3112 = vmatpush3.bf16.xpose.msra.mxu0 %v1776_v51  ;;  %v1837_v9 = vpop.trf.xlu0 }
 0x934   :  { %3193 = vmatprep.subr.msk.bf16.mxu1 %vm351_vm1, %v1846_v52  ;;  %3113 = vmatprep.subr.bf16.mxu0 %v3564_v56  ;;  %v1779_v42 = vsel %vm420_vm3, %v1763_v40, 0 }
 0x937   :  { %v1838_v23 = vpop.trf.xlu0 }
 0x93a   :  { %3094 = vmatmul.mubr.msk.bf16.vlgmr.msra.gmra.mrb[32].mxu1 %vm420_vm3, %v1509_v43 }
 0x93b   :  { %3114 = vmatpush3.bf16.xpose.msra.mxu0 %v1779_v42  ;;  %3120 = vmatpush3.bf16.msra.mxu1 %v1860_v4  ;;  %v1839_v24 = vpop.trf.xlu0 }
 0x93c   :  { %3194 = vmatprep.subr.msk.bf16.mxu0 %vm351_vm1, %v2101_v37  ;;  %3121 = vmatprep.mubr.msk.bf16.mxu1 %vm338_vm2, %v1837_v9 }
 0x93d   :  { %3129 = vmatprep.subr.bf16.mxu1 %v3564_v56 }
 0x93f   :  { %v1840_v20 = vpop.trf.xlu0 }
 0x942   :  { %3116 = vmatmul.mubr.msk.bf16.vlgmr.msra.gmra.mrb[44].mxu0 %vm420_vm3, %v1765_v48  ;;  %3122 = vmatmul.mubr.msk.bf16.vlgmr.msra.gmra.mrb[36].mxu1 %vm338_vm2, %v1838_v23 }
 0x943   :  { %3142 = vmatpush3.bf16.msra.mxu0 %v2115_v59  ;;  %3125 = vmatprep.mubr.msk.bf16.mxu1 %vm338_vm2, %v1839_v24 }
 0x944   :  { %3151 = vmatprep.subr.bf16.mxu0 %v3564_v56 }
 0x94a   :  { %3126 = vmatmul.mubr.msk.bf16.gmra.mrb[40].mxu1 %vm338_vm2, %v1840_v20 }
 0x94b   :  { %3137 = vmatprep.mubr.msk.bf16.mxu1 %vm3565_vm4, %v3564_v56 }
 0x98d   :  { %v2092_v25 = vpop.trf.xlu1 }
 0x98e   :  { %3143 = vmatprep.mubr.msk.bf16.mxu0 %vm338_vm2, %v2092_v25 }
 0x991   :  { %v2093_v14 = vpop.trf.xlu1 }
 0x992   :  { %3144 = vmatmul.mubr.msk.bf16.vlgmr.msra.gmra.mrb[48].mxu0 %vm338_vm2, %v2093_v14 }
 0x995   :  { %v2094_v32 = vpop.trf.xlu1 }
 0x996   :  { %3147 = vmatprep.mubr.msk.bf16.mxu0 %vm338_vm2, %v2094_v32 }
 0x999   :  { %v2095_v2 = vpop.trf.xlu1 }
 0x99a   :  { %3148 = vmatmul.mubr.msk.bf16.gmra.mrb[52].mxu0 %vm338_vm2, %v2095_v2 }
 0x99b   :  { %3159 = vmatprep.mubr.msk.bf16.mxu0 %vm3565_vm4, %v3564_v56 }
 0xa0d   :  { %v4348_v6 = vpop.f32.mrb[32].mxu1 }
 0xa0e   :  { %v3095_v62 = vpop.f32.mrb[33].mxu1 }
 0xa0f   :  { %v1562_v3 = vpop.f32.mrb[34].mxu1 }
 0xa10   :  { %v3096_v61 = vpop.f32.mrb[35].mxu1 }
 0xa15   :  { %v4350_v22 = vpop.f32.mrb[44].mxu0  ;;  %v4352_v12 = vpop.f32.mrb[36].mxu1 }
 0xa16   :  { %v3117_v1 = vpop.f32.mrb[45].mxu0  ;;  %v1896_v35 = vpop.f32.mrb[37].mxu1  ;;  %v1933_v47 = vsel %vm420_vm3, %v4352_v12, -inf }
 0xa17   :  { %v1818_v49 = vpop.f32.mrb[46].mxu0  ;;  %v4354_v44 = vpop.f32.mrb[38].mxu1  ;;  %v1927_v27 = vsel %vm420_vm3, %v1896_v35, -inf }
 0xa18   :  { %v3118_v0 = vpop.f32.mrb[47].mxu0  ;;  %1928 = vmax.xlane.f32.xlu0 %v1927_v27  ;;  %v1899_v57 = vpop.f32.mrb[39].mxu1  ;;  %v1936_v46 = vsel %vm420_vm3, %v4354_v44, -inf }
 0xa19   :  { %v1930_v55 = vsel %vm420_vm3, %v1899_v57, -inf }
 0xa1a   :  { %1931 = vmax.xlane.f32.xlu1 %v1930_v55 }
 0xa1d   :  { %v4360_v54 = vpop.f32.mrb[40].mxu1 }
 0xa1e   :  { %1934 = vmax.xlane.f32.xlu1 %v1933_v47  ;;  %v4362_v11 = vpop.f32.mrb[41].mxu1  ;;  %v1945_v34 = vsel %vm420_vm3, %v4360_v54, -inf }
 0xa1f   :  { %v4364_v5 = vpop.f32.mrb[42].mxu1  ;;  %v1939_v30 = vsel %vm420_vm3, %v4362_v11, -inf }
 0xa20   :  { %v4366_v29 = vpop.f32.mrb[43].mxu1  ;;  %v1948_v63 = vsel %vm420_vm3, %v4364_v5, -inf }
 0xa21   :  { %v1942_v38 = vsel %vm420_vm3, %v4366_v29, -inf }
 0xa65   :  { %v3145_v16 = vpop.f32.mrb[48].mxu0 }
 0xa66   :  { %v2151_v21 = vpop.f32.mrb[49].mxu0  ;;  %v2188_v8 = vsel %vm420_vm3, %v3145_v16, -inf }
 0xa67   :  { %v4369_v58 = vpop.f32.mrb[50].mxu0  ;;  %2189 = vmax.xlane.f32.xlu1 %v2188_v8  ;;  %v2182_v13 = vsel %vm420_vm3, %v2151_v21, -inf }
 0xa68   :  { %v2154_v41 = vpop.f32.mrb[51].mxu0  ;;  %2183 = vmax.xlane.f32.xlu0 %v2182_v13  ;;  %v2191_v53 = vsel %vm420_vm3, %v4369_v58, -inf }
 0xa69   :  { %v2185_v17 = vsel %vm420_vm3, %v2154_v41, -inf }
 0xa6b   :  { %1940 = vmax.xlane.f32.xlu1 %v1939_v30 }
 0xa6c   :  { %2186 = vmax.xlane.f32.xlu0 %v2185_v17 }
 0xa6d   :  { %v4375_v15 = vpop.f32.mrb[52].mxu0 }
 0xa6e   :  { %v4377_v31 = vpop.f32.mrb[53].mxu0  ;;  %v2200_v33 = vsel %vm420_vm3, %v4375_v15, -inf }
 0xa6f   :  { %v2194_v50 = vsel %vm420_vm3, %v4377_v31, -inf  ;;  %v4383_v10 = vpop.f32.mrb[54].mxu0 }
 0xa70   :  { %1937 = vmax.xlane.f32.xlu0 %v1936_v46  ;;  %2195 = vmax.xlane.f32.xlu1 %v2194_v50  ;;  %v4385_v45 = vpop.f32.mrb[55].mxu0  ;;  %v2203_v43 = vsel %vm420_vm3, %v4383_v10, -inf }
 0xa71   :  { %v2197_v60 = vsel %vm420_vm3, %v4385_v45, -inf }
 0xa74   :  { %2192 = vmax.xlane.f32.xlu0 %v2191_v53  ;;  %1946 = vmax.xlane.f32.xlu1 %v1945_v34 }
 0xa78   :  { %2201 = vmax.xlane.f32.xlu1 %v2200_v33  ;;  %1943 = vmax.xlane.f32.xlu0 %v1942_v38 }
 0xa7c   :  { %2198 = vmax.xlane.f32.xlu0 %v2197_v60 }
 0xa80   :  { %1949 = vmax.xlane.f32.xlu0 %v1948_v63 }
 0xa84   :  { %2204 = vmax.xlane.f32.xlu0 %v2203_v43 }
 0xaa5   :  { %v1929_v28 = vpop.xlane.xlu0 %1928 }
 0xaa6   :  { %v1951_v26 = vsub.f32 %v1896_v35, %v1929_v28 }
 0xaa7   :  { %v1932_v18 = vpop.xlane.xlu1 %1931 }
 0xaa8   :  { %v1959_v51 = vmul.f32 1.442695, %v1951_v26  ;;  %v1952_v7 = vsub.f32 %v1899_v57, %v1932_v18 }
 0xaaa   :  { %3443 = vpow2.f32 %v1959_v51  ;;  %v1961_v52 = vmul.f32 1.442695, %v1952_v7 }
 0xaab   :  { %v1935_v4 = vpop.xlane.xlu1 %1934 }
 0xaac   :  { %3445 = vpow2.f32 %v1961_v52  ;;  %v1953_v42 = vsub.f32 %v4352_v12, %v1935_v4 }
 0xaae   :  { %v1963_v59 = vmul.f32 1.442695, %v1953_v42 }
 0xab4   :  { %v4401_v39 = vpop.eup %3443 }
 0xab5   :  { %v1975_v48 = vsel %vm420_vm3, %v4401_v39, 0.0 }
 0xab6   :  { %v4405_v40 = vpop.eup %3445  ;;  %1976 = vadd.xlane.f32.xlu1 %v1975_v48 }
 0xab7   :  { %v1978_v9 = vsel %vm420_vm3, %v4405_v40, 0.0 }
 0xab8   :  { %1979 = vadd.xlane.f32.xlu0 %v1978_v9 }
 0xaf4   :  { %v2190_v37 = vpop.xlane.xlu1 %2189 }
 0xaf5   :  { %v2184_v23 = vpop.xlane.xlu0 %2183  ;;  %v2208_v20 = vsub.f32 %v3145_v16, %v2190_v37 }
 0xaf6   :  { %v2206_v24 = vsub.f32 %v2151_v21, %v2184_v23 }
 0xaf7   :  { %v2218_v62 = vmul.f32 1.442695, %v2208_v20 }
 0xaf8   :  { %v2214_v25 = vmul.f32 1.442695, %v2206_v24  ;;  %v1941_v14 = vpop.xlane.xlu1 %1940 }
 0xaf9   :  { %v2187_v32 = vpop.xlane.xlu0 %2186  ;;  %v1955_v3 = vsub.f32 %v4362_v11, %v1941_v14 }
 0xafa   :  { %3447 = vpow2.f32 %v2214_v25  ;;  %v2207_v2 = vsub.f32 %v2154_v41, %v2187_v32 }
 0xafb   :  { %3449 = vpow2.f32 %v1963_v59  ;;  %v1967_v49 = vmul.f32 1.442695, %v1955_v3 }
 0xafc   :  { %v2216_v61 = vmul.f32 1.442695, %v2207_v2 }
 0xafd   :  { %v2196_v1 = vpop.xlane.xlu1 %2195  ;;  %v1938_v35 = vpop.xlane.xlu0 %1937 }
 0xafe   :  { %3451 = vpow2.f32 %v2216_v61  ;;  %v1954_v12 = vsub.f32 %v4354_v44, %v1938_v35  ;;  %v2210_v27 = vsub.f32 %v4377_v31, %v2196_v1 }
 0xaff   :  { %3453 = vpow2.f32 %v2218_v62 }
 0xb00   :  { %v1965_v0 = vmul.f32 1.442695, %v1954_v12  ;;  %v2222_v11 = vmul.f32 1.442695, %v2210_v27 }
 0xb01   :  { %v1947_v57 = vpop.xlane.xlu1 %1946  ;;  %v2193_v55 = vpop.xlane.xlu0 %2192 }
 0xb02   :  { %v2209_v47 = vsub.f32 %v4369_v58, %v2193_v55  ;;  %3455 = vpow2.f32 %v1965_v0  ;;  %v1957_v21 = vsub.f32 %v4360_v54, %v1947_v57 }
 0xb03   :  { %3457 = vpow2.f32 %v1967_v49 }
 0xb04   :  { %v4414_v16 = vpop.eup %3447  ;;  %v2220_v8 = vmul.f32 1.442695, %v2209_v47  ;;  %v1971_v31 = vmul.f32 1.442695, %v1957_v21 }
 0xb05   :  { %v2202_v13 = vpop.xlane.xlu1 %2201  ;;  %v1944_v41 = vpop.xlane.xlu0 %1943  ;;  %v2230_v44 = vsel %vm420_vm3, %v4414_v16, 0.0 }
 0xb06   :  { %v4419_v30 = vpop.eup %3449  ;;  %v1956_v17 = vsub.f32 %v4366_v29, %v1944_v41  ;;  %2231 = vadd.xlane.f32.xlu1 %v2230_v44  ;;  %3459 = vpow2.f32 %v2220_v8  ;;  %v2212_v46 = vsub.f32 %v4375_v15, %v2202_v13 }
 0xb07   :  { %3461 = vpow2.f32 %v2222_v11  ;;  %v1981_v34 = vsel %vm420_vm3, %v4419_v30, 0.0 }
 0xb08   :  { %v4422_v58 = vpop.eup %3451  ;;  %v1969_v50 = vmul.f32 1.442695, %v1956_v17  ;;  %v2226_v38 = vmul.f32 1.442695, %v2212_v46 }
 0xb09   :  { %v2199_v54 = vpop.xlane.xlu0 %2198  ;;  %v2233_v53 = vsel %vm420_vm3, %v4422_v58, 0.0  ;;  %v4429_v33 = vpop.eup %3453 }
 0xb0a   :  { %v2211_v29 = vsub.f32 %v4385_v45, %v2199_v54  ;;  %1982 = vadd.xlane.f32.xlu1 %v1981_v34  ;;  %2234 = vadd.xlane.f32.xlu0 %v2233_v53  ;;  %3463 = vpow2.f32 %v1969_v50  ;;  %v2236_v43 = vsel %vm420_vm3, %v4429_v33, 0.0 }
 0xb0b   :  { %3465 = vpow2.f32 %v1971_v31 }
 0xb0c   :  { %v2224_v60 = vmul.f32 1.442695, %v2211_v29  ;;  %v4432_v63 = vpop.eup %3455 }
 0xb0d   :  { %v1950_v15 = vpop.xlane.xlu0 %1949  ;;  %v4436_v28 = vpop.eup %3457  ;;  %v1984_v45 = vsel %vm420_vm3, %v4432_v63, 0.0 }
 0xb0e   :  { %3467 = vpow2.f32 %v2224_v60  ;;  %v1958_v26 = vsub.f32 %v4364_v5, %v1950_v15  ;;  %2237 = vadd.xlane.f32.xlu1 %v2236_v43  ;;  %1985 = vadd.xlane.f32.xlu0 %v1984_v45  ;;  %v1987_v52 = vsel %vm420_vm3, %v4436_v28, 0.0 }
 0xb0f   :  { %3469 = vpow2.f32 %v2226_v38 }
 0xb10   :  { %v1973_v18 = vmul.f32 1.442695, %v1958_v26  ;;  %v4441_v51 = vpop.eup %3459 }
 0xb11   :  { %v2205_v7 = vpop.xlane.xlu0 %2204  ;;  %v4445_v48 = vpop.eup %3461  ;;  %v2239_v5 = vsel %vm420_vm3, %v4441_v51, 0.0 }
 0xb12   :  { %3471 = vpow2.f32 %v1973_v18  ;;  %v2213_v9 = vsub.f32 %v4383_v10, %v2205_v7  ;;  %1988 = vadd.xlane.f32.xlu1 %v1987_v52  ;;  %2240 = vadd.xlane.f32.xlu0 %v2239_v5  ;;  %v2242_v37 = vsel %vm420_vm3, %v4445_v48, 0.0 }
 0xb14   :  { %v2228_v4 = vmul.f32 1.442695, %v2213_v9  ;;  %v4450_v42 = vpop.eup %3463 }
 0xb15   :  { %v4454_v23 = vpop.eup %3465  ;;  %v1990_v24 = vsel %vm420_vm3, %v4450_v42, 0.0 }
 0xb16   :  { %3473 = vpow2.f32 %v2228_v4  ;;  %2243 = vadd.xlane.f32.xlu1 %v2242_v37  ;;  %1991 = vadd.xlane.f32.xlu0 %v1990_v24  ;;  %v1993_v59 = vsel %vm420_vm3, %v4454_v23, 0.0 }
 0xb18   :  { %v4458_v10 = vpop.eup %3467 }
 0xb19   :  { %v2245_v20 = vsel %vm420_vm3, %v4458_v10, 0.0  ;;  %v4464_v25 = vpop.eup %3469 }
 0xb1a   :  { %1994 = vadd.xlane.f32.xlu1 %v1993_v59  ;;  %2246 = vadd.xlane.f32.xlu0 %v2245_v20  ;;  %v2248_v32 = vsel %vm420_vm3, %v4464_v25, 0.0 }
 0xb1c   :  { %v4466_v14 = vpop.eup %3471 }
 0xb1d   :  { %v1996_v2 = vsel %vm420_vm3, %v4466_v14, 0.0 }
 0xb1e   :  { %2249 = vadd.xlane.f32.xlu1 %v2248_v32  ;;  %1997 = vadd.xlane.f32.xlu0 %v1996_v2 }
 0xb20   :  { %v4472_v62 = vpop.eup %3473 }
 0xb21   :  { %v2251_v3 = vsel %vm420_vm3, %v4472_v62, 0.0 }
 0xb22   :  { %2252 = vadd.xlane.f32.xlu0 %v2251_v3 }
 0xb2f   :  { %2019 = vrot.lane.b32.xlu1 %v4120_v36, %s3566_s2 }
 0xb33   :  { %1566 = vrot.lane.b32.xlu1 %v4348_v6, %s3566_s2 }
 0xb37   :  { %1822 = vrot.lane.b32.xlu1 %v4350_v22, %s3566_s2 }
 0xb38   :  { %2274 = vrot.lane.b32.xlu0 %v1258_v19, %s3566_s2 }
 0xb43   :  { %v1977_v61 = vpop.xlane.xlu1 %1976 }
 0xb44   :  { %3475 = vrcp.f32 %v1977_v61 }
 0xb45   :  { %v1980_v1 = vpop.xlane.xlu0 %1979 }
 0xb46   :  { %3477 = vrcp.f32 %v1980_v1 }
 0xb4e   :  { %v3476_v35 = vpop.eup %3475 }
 0xb4f   :  { %v2007_v49 = vmul.f32 %v3476_v35, %v4401_v39 }
 0xb50   :  { %v3478_v12 = vpop.eup %3477 }
 0xb51   :  { %v2008_v27 = vmul.f32 %v3478_v12, %v4405_v40 }
 0xb53   :  { %v2015_v0 = vpack.c.bf16 %v2008_v27, %v2007_v49 }
 0xb55   :  { %v2025_v6 = vsel %vm420_vm3, %v2015_v0, 0 }
 0xb56   :  { %3130 = vmatpush3.bf16.xpose.msra.mxu1 %v2025_v6 }
 0xb57   :  { %3131 = vmatprep.subr.bf16.mxu1 %v3564_v56 }
 0xb93   :  { %v2232_v22 = vpop.xlane.xlu1 %2231 }
 0xb94   :  { %3479 = vrcp.f32 %v2232_v22 }
 0xb97   :  { %v1983_v36 = vpop.xlane.xlu1 %1982  ;;  %v2235_v19 = vpop.xlane.xlu0 %2234 }
 0xb98   :  { %3481 = vrcp.f32 %v2235_v19 }
 0xb99   :  { %3483 = vrcp.f32 %v1983_v36 }
 0xb9b   :  { %v2238_v57 = vpop.xlane.xlu1 %2237  ;;  %v1986_v55 = vpop.xlane.xlu0 %1985 }
 0xb9c   :  { %3485 = vrcp.f32 %v1986_v55 }
 0xb9d   :  { %3487 = vrcp.f32 %v2238_v57  ;;  %v3243_v57 = vld [vmem:[%s4666_s3] sm:$0xff]  }
 0xb9e   :  { %v3480_v11 = vpop.eup %3479 }
 0xb9f   :  { %v1989_v47 = vpop.xlane.xlu1 %1988  ;;  %v2241_v39 = vpop.xlane.xlu0 %2240  ;;  %v2262_v13 = vmul.f32 %v3480_v11, %v4414_v16 }
 0xba0   :  { %3489 = vrcp.f32 %v2241_v39 }
 0xba1   :  { %3491 = vrcp.f32 %v1989_v47 }
 0xba2   :  { %v3482_v40 = vpop.eup %3481 }
 0xba3   :  { %v2244_v21 = vpop.xlane.xlu1 %2243  ;;  %v1992_v8 = vpop.xlane.xlu0 %1991  ;;  %v2263_v41 = vmul.f32 %v3482_v40, %v4422_v58  ;;  %v3567_v40 = vmov 5  }
 0xba4   :  { %v3484_v44 = vpop.eup %3483  ;;  %3493 = vrcp.f32 %v1992_v8  ;;  %3226 = vset.pattern.permute.xlu1 %v3567_v40  ;;  %3225 = vset.pattern.permute.xlu0 %v3567_v40  ;;  %v4534_v8 = vld [vmem:[%s4664_s1 + $0x8] sm:$0xff] }
 0xba5   :  { %v2270_v17 = vpack.c.bf16 %v2263_v41, %v2262_v13  ;;  %3495 = vrcp.f32 %v2244_v21  ;;  %v2009_v34 = vmul.f32 %v3484_v44, %v4419_v30  ;;  %v4528_v21 = vld [vmem:[%s4664_s1] sm:$0xff]  ;;  %v4540_v13 = vld [vmem:[%s4664_s1 + $0x18] sm:$0xff]  ;;  %v4546_v41 = vld [vmem:[%s4664_s1 + $0x10] sm:$0xff]  ;;  %v3568_v44 = vmov 6  }
 0xba6   :  { %v3486_v31 = vpop.eup %3485 }
 0xba7   :  { %v1995_v46 = vpop.xlane.xlu1 %1994  ;;  %v2247_v50 = vpop.xlane.xlu0 %2246  ;;  %v2280_v54 = vsel %vm420_vm3, %v2270_v17, 0  ;;  %v2010_v53 = vmul.f32 %v3486_v31, %v4432_v63  ;;  %v3569_v17 = vmov 7  }
 0xba8   :  { %v3488_v29 = vpop.eup %3487  ;;  %3497 = vrcp.f32 %v2247_v50  ;;  %3152 = vmatpush3.bf16.xpose.msra.mxu0 %v2280_v54 }
 0xba9   :  { %v2016_v38 = vpack.c.bf16 %v2010_v53, %v2009_v34  ;;  %3153 = vmatprep.subr.bf16.mxu0 %v3564_v56  ;;  %3499 = vrcp.f32 %v1995_v46  ;;  %v2264_v43 = vmul.f32 %v3488_v29, %v4429_v33  ;;  %v3244_v53 = vld [vmem:[%s4666_s3 + $0x8] sm:$0xff]   ;;  %v3245_v29 = vld [vmem:[%s4667_s4] sm:$0xff]  }
 0xbaa   :  { %v3490_v16 = vpop.eup %3489 }
 0xbab   :  { %v2250_v58 = vpop.xlane.xlu1 %2249  ;;  %v1998_v60 = vpop.xlane.xlu0 %1997  ;;  %v2028_v15 = vsel %vm420_vm3, %v2016_v38, 0  ;;  %v2265_v26 = vmul.f32 %v3490_v16, %v4441_v51  ;;  %v3570_v38 = vmov 8  }
 0xbac   :  { %v3492_v45 = vpop.eup %3491  ;;  %3501 = vrcp.f32 %v1998_v60  ;;  %3132 = vmatpush3.bf16.xpose.msra.mxu1 %v2028_v15 }
 0xbad   :  { %v2271_v30 = vpack.c.bf16 %v2265_v26, %v2264_v43  ;;  %3133 = vmatprep.subr.bf16.mxu1 %v3564_v56  ;;  %3503 = vrcp.f32 %v2250_v58  ;;  %v2011_v9 = vmul.f32 %v3492_v45, %v4436_v28 }
 0xbae   :  { %v3494_v63 = vpop.eup %3493 }
 0xbaf   :  { %v2020_v18 = vpop.permute.xlu1 %2019  ;;  %v2253_v7 = vpop.xlane.xlu0 %2252  ;;  %v2283_v52 = vsel %vm420_vm3, %v2271_v30, 0  ;;  %v2012_v5 = vmul.f32 %v3494_v63, %v4450_v42 }
 0xbb0   :  { %v3496_v4 = vpop.eup %3495  ;;  %3505 = vrcp.f32 %v2253_v7  ;;  %3154 = vmatpush3.bf16.xpose.msra.mxu0 %v2283_v52  ;;  %v3531_v52 = vld [vmem:[%s4663_s0] sm:$0xff] }
 0xbb1   :  { %v2017_v33 = vpack.c.bf16 %v2012_v5, %v2011_v9  ;;  %3155 = vmatprep.subr.bf16.mxu0 %v3564_v56  ;;  %v2266_v59 = vmul.f32 %v3496_v4, %v4445_v48  ;;  %v3532_v4 = vld [vmem:[%s4663_s0 + $0x8] sm:$0xff] }
 0xbb2   :  { %v3498_v51 = vpop.eup %3497 }
 0xbb3   :  { %v1567_v37 = vpop.permute.xlu1 %1566  ;;  %v2031_v24 = vsel %vm420_vm3, %v2017_v33, 0  ;;  %v2267_v20 = vmul.f32 %v3498_v51, %v4458_v10  ;;  %v3500_v28 = vpop.eup %3499  ;;  %v3533_v51 = vld [vmem:[%s4663_s0 + $0x10] sm:$0xff] }
 0xbb4   :  { %1570 = vst.msk [vmem:[#allocation2] sm:$0xff] %vm1569_vm5, %v1567_v37  ;;  %3134 = vmatpush3.bf16.xpose.msra.mxu1 %v2031_v24  ;;  %v2013_v61 = vmul.f32 %v3500_v28, %v4454_v23 }
 0xbb5   :  { %v2272_v42 = vpack.c.bf16 %v2267_v20, %v2266_v59  ;;  %3135 = vmatprep.subr.bf16.mxu1 %v3564_v56  ;;  %v3534_v59 = vld [vmem:[%s4663_s0 + $0x18] sm:$0xff] }
 0xbb6   :  { %v3502_v32 = vpop.eup %3501 }
 0xbb7   :  { %v1823_v2 = vpop.permute.xlu1 %1822  ;;  %v2286_v3 = vsel %vm420_vm3, %v2272_v42, 0  ;;  %v2014_v1 = vmul.f32 %v3502_v32, %v4466_v14  ;;  %v3504_v35 = vpop.eup %3503 }
 0xbb8   :  { %1825 = vst.msk [vmem:[#allocation2 + $0x8] sm:$0xff] %vm1569_vm5, %v1823_v2  ;;  %3156 = vmatpush3.bf16.xpose.msra.mxu0 %v2286_v3  ;;  %v2268_v49 = vmul.f32 %v3504_v35, %v4464_v25 }
 0xbb9   :  { %v2018_v48 = vpack.c.bf16 %v2014_v1, %v2013_v61  ;;  %3157 = vmatprep.subr.bf16.mxu0 %v3564_v56  ;;  %v2275_v56 = vpop.permute.xlu0 %2274 }
 0xbba   :  { %v3506_v10 = vpop.eup %3505 }
 0xbbb   :  { %v2034_v12 = vsel %vm420_vm3, %v2018_v48, 0  ;;  %v2269_v27 = vmul.f32 %v3506_v10, %v4472_v62  ;;  %v2340_v6 = vld [vmem:[#allocation2] sm:$0xff] }
 0xbbc   :  { %3136 = vmatpush3.bf16.xpose.msra.mxu1 %v2034_v12 }
 0xbbd   :  { %v2273_v0 = vpack.c.bf16 %v2269_v27, %v2268_v49 }
 0xbbf   :  { %v2341_v22 = vld [vmem:[#allocation2 + $0x8] sm:$0xff]  ;;  %v2289_v23 = vsel %vm420_vm3, %v2273_v0, 0 }
 0xbc0   :  { %v2344_v36 = vpack.c.bf16 %v2341_v22, %v2340_v6  ;;  %3158 = vmatpush3.bf16.xpose.msra.mxu0 %v2289_v23 }
 0xbc2   :  { %3163 = vmatprep.subr.bf16.mxu1 %v2344_v36 }
 0xbc3   :  { %3138 = vmatmul.mubr.msk.bf16.vlgmr.msra.gmra.mrb[44].mxu1 %vm420_vm3, %v2020_v18 }
 0xbc4   :  { %3164 = vmatpush3.bf16.msra.mxu1 %v2344_v36  ;;  %3167 = vmatprep.mubr.msk.bf16.mxu1 %vm156_vm0, %v3243_v57 }
 0xbc7   :  { %3160 = vmatmul.mubr.msk.bf16.vlgmr.msra.gmra.mrb[56].mxu0 %vm420_vm3, %v2275_v56 }
 0xc96   :  { %v2070_v14 = vpop.f32.mrb[44].mxu1 }
 0xc97   :  { %2077 = vrot.lane.b32.xlu0 %v2070_v14, %s3566_s2  ;;  %v3139_v25 = vpop.f32.mrb[45].mxu1 }
 0xc98   :  { %v2073_v62 = vpop.f32.mrb[46].mxu1 }
 0xc99   :  { %v3140_v19 = vpop.f32.mrb[47].mxu1 }
 0xc9a   :  { %v2325_v55 = vpop.f32.mrb[56].mxu0 }
 0xc9b   :  { %2332 = vrot.lane.b32.xlu1 %v2325_v55, %s3566_s2  ;;  %v3161_v47 = vpop.f32.mrb[57].mxu0  ;;  %2347 = vperm.xlu0 %3225, %v4528_v21  }
 0xc9c   :  { %v2328_v39 = vpop.f32.mrb[58].mxu0 }
 0xc9d   :  { %v3162_v11 = vpop.f32.mrb[59].mxu0 }
 0xc9f   :  { %2351 = vperm.xlu1 %3226, %v4534_v8   ;;  %2359 = vperm.xlu0 %3225, %v4540_v13  }
 0xca3   :  { %2355 = vperm.xlu1 %3226, %v4546_v41   ;;  %3228 = vset.pattern.permute.xlu0 %v3568_v44 }
 0xca4   :  { %2470 = vperm.xlu0 %3228, %v4534_v8  }
 0xca7   :  { %3227 = vset.pattern.permute.xlu1 %v3568_v44 }
 0xca8   :  { %2466 = vperm.xlu1 %3227, %v4528_v21   ;;  %2474 = vperm.xlu0 %3228, %v4546_v41  }
 0xcac   :  { %3229 = vset.pattern.permute.xlu1 %v3569_v17  ;;  %3231 = vset.pattern.permute.xlu0 %v3569_v17 }
 0xcad   :  { %2486 = vperm.xlu1 %3229, %v4528_v21   ;;  %2494 = vperm.xlu0 %3231, %v4546_v41  }
 0xcb1   :  { %2490 = vperm.xlu1 %3229, %v4534_v8   ;;  %3234 = vset.pattern.permute.xlu0 %v3570_v38 }
 0xcb2   :  { %2516 = vperm.xlu0 %3234, %v4534_v8  }
 0xcb5   :  { %3230 = vset.pattern.permute.xlu1 %v3568_v44 }
 0xcb6   :  { %2478 = vperm.xlu1 %3230, %v4540_v13  }
 0xcba   :  { %3232 = vset.pattern.permute.xlu1 %v3569_v17 }
 0xcbb   :  { %2498 = vperm.xlu1 %3232, %v4540_v13  }
 0xcbf   :  { %3233 = vset.pattern.permute.xlu1 %v3570_v38 }
 0xcc0   :  { %2512 = vperm.xlu1 %3233, %v4528_v21  }
 0xcc4   :  { %2520 = vperm.xlu1 %3233, %v4546_v41  }
 0xcc8   :  { %2524 = vperm.xlu1 %3233, %v4540_v13  }
 0xd09   :  { %v2078_v31 = vpop.permute.xlu0 %2077 }
 0xd0a   :  { %2080 = vst.msk [vmem:[#allocation2 + $0x10] sm:$0xff] %vm1569_vm5, %v2078_v31 }
 0xd0d   :  { %v2333_v46 = vpop.permute.xlu1 %2332 }
 0xd0e   :  { %2335 = vst.msk [vmem:[#allocation2 + $0x18] sm:$0xff] %vm1569_vm5, %v2333_v46 }
 0xd11   :  { %v2342_v50 = vld [vmem:[#allocation2 + $0x10] sm:$0xff] }
 0xd15   :  { %v2343_v54 = vld [vmem:[#allocation2 + $0x18] sm:$0xff] }
 0xd16   :  { %v2345_v34 = vpack.c.bf16 %v2343_v54, %v2342_v50 }
 0xd18   :  { %3165 = vmatprep.subr.bf16.mxu1 %v2345_v34 }
 0xd19   :  { %3166 = vmatpush3.bf16.msra.mxu1 %v2345_v34 }
 0xd1a   :  { %v2348_v58 = vpop.permute.xlu0 %2347 }
 0xd1c   :  { %3168 = vmatmul.mubr.msk.bf16.vlgmr.msra.gmra.mrb[48].mxu1 %vm156_vm0, %v3244_v53 }
 0xd1d   :  { %3175 = vmatprep.mubr.msk.bf16.mxu1 %vm156_vm0, %v3245_v29 }
 0xd1e   :  { %v2352_v16 = vpop.permute.xlu1 %2351  ;;  %v2360_v30 = vpop.permute.xlu0 %2359 }
 0xd22   :  { %v2356_v15 = vpop.permute.xlu1 %2355 }
 0xd23   :  { %v2471_v17 = vpop.permute.xlu0 %2470 }
 0xd27   :  { %v2467_v57 = vpop.permute.xlu1 %2466  ;;  %v2475_v46 = vpop.permute.xlu0 %2474 }
 0xd2c   :  { %v2487_v40 = vpop.permute.xlu1 %2486 }
 0xd30   :  { %v2491_v31 = vpop.permute.xlu1 %2490 }
 0xd35   :  { %v2479_v50 = vpop.permute.xlu1 %2478 }
 0xdef   :  { %v3169_v60 = vpop.f32.mrb[48].mxu1 }
 0xdf0   :  { %v2412_v43 = vpop.f32.mrb[49].mxu1  ;;  %v2421_v18 = vadd.f32 %v3169_v60, %v2356_v15 }
 0xdf1   :  { %v2413_v26 = vadd.f32 %v2412_v43, %v2348_v58  ;;  %v3170_v45 = vpop.f32.mrb[50].mxu1  ;;  %v2495_v58 = vpop.permute.xlu0 %2494 }
 0xdf2   :  { %v2415_v63 = vpop.f32.mrb[51].mxu1  ;;  %v2424_v5 = vadd.f32 %v3170_v45, %v2360_v30  ;;  %v4584_v37 = vadd.f32 %v3533_v51, %v2421_v18  ;;  %v3571_v51 = vmov 9  }
 0xdf3   :  { %v2416_v7 = vadd.f32 %v2415_v63, %v2352_v16  ;;  %v4574_v9 = vadd.f32 %v3531_v52, %v2413_v26  ;;  %v2499_v16 = vpop.permute.xlu1 %2498  ;;  %3235 = vset.pattern.permute.xlu0 %v3571_v51  ;;  %3236 = vset.pattern.permute.xlu1 %v3571_v51 }
 0xdf4   :  { %v4591_v20 = vadd.f32 %v3534_v59, %v2424_v5  ;;  %v3246_v5 = vld [vmem:[%s4667_s4 + $0x8] sm:$0xff]   ;;  %2703 = vperm.xlu0 %3235, %v4528_v21   ;;  %2707 = vperm.xlu1 %3236, %v4534_v8  }
 0xdf5   :  { %v4579_v33 = vadd.f32 %v3532_v4, %v2416_v7  ;;  %v3247_v4 = vld [vmem:[%s4668_s5] sm:$0xff]  }
 0xdf7   :  { %v2431_v24 = vadd.f32 %v4579_v33, %v4574_v9 }
 0xdf8   :  { %2715 = vperm.xlu0 %3235, %v4540_v13   ;;  %2711 = vperm.xlu1 %3236, %v4546_v41  }
 0xdf9   :  { %v2432_v28 = vadd.f32 %v2431_v24, %v4584_v37  ;;  %v2513_v24 = vpop.permute.xlu1 %2512 }
 0xdfb   :  { %v2433_v42 = vadd.f32 %v2432_v28, %v4591_v20 }
 0xdfd   :  { %v2434_v32 = vrot.slane %v2433_v42, 4  ;;  %v2521_v59 = vpop.permute.xlu1 %2520 }
 0xdff   :  { %v2435_v2 = vadd.f32 %v2434_v32, %v2433_v42 }
 0xe01   :  { %v2436_v3 = vrot.slane %v2435_v2, 2  ;;  %v2525_v42 = vpop.permute.xlu1 %2524 }
 0xe03   :  { %v2437_v61 = vadd.f32 %v2436_v3, %v2435_v2 }
 0xe05   :  { %v2438_v1 = vrot.slane %v2437_v61, 1 }
 0xe07   :  { %v2439_v35 = vadd.f32 %v2438_v1, %v2437_v61  ;;  %v2517_v1 = vpop.permute.xlu0 %2516 }
 0xe09   :  { %v2440_v48 = vmul.f32 0.03125, %v2439_v35 }
 0xe0b   :  { %v2442_v10 = vsub.f32 %v4579_v33, %v2440_v48  ;;  %v2441_v12 = vsub.f32 %v4574_v9, %v2440_v48  ;;  %v2443_v49 = vsub.f32 %v4584_v37, %v2440_v48  ;;  %v2444_v27 = vsub.f32 %v4591_v20, %v2440_v48 }
 0xe0d   :  { %v2446_v0 = vmul.f32 %v2442_v10, %v2442_v10  ;;  %v2445_v6 = vmul.f32 %v2441_v12, %v2441_v12  ;;  %v2447_v22 = vmul.f32 %v2443_v49, %v2443_v49  ;;  %v2448_v36 = vmul.f32 %v2444_v27, %v2444_v27 }
 0xe0f   :  { %v2449_v23 = vadd.f32 %v2446_v0, %v2445_v6 }
 0xe11   :  { %v2450_v56 = vadd.f32 %v2449_v23, %v2447_v22 }
 0xe13   :  { %v2451_v14 = vadd.f32 %v2450_v56, %v2448_v36 }
 0xe15   :  { %v2452_v25 = vrot.slane %v2451_v14, 4 }
 0xe17   :  { %v2453_v62 = vadd.f32 %v2452_v25, %v2451_v14 }
 0xe19   :  { %v2454_v19 = vrot.slane %v2453_v62, 2 }
 0xe1b   :  { %v2455_v55 = vadd.f32 %v2454_v19, %v2453_v62 }
 0xe1d   :  { %v2456_v47 = vrot.slane %v2455_v55, 1 }
 0xe1f   :  { %v2457_v39 = vadd.f32 %v2456_v47, %v2455_v55 }
 0xe21   :  { %v2458_v11 = vmul.f32 0.03125, %v2457_v39 }
 0xe23   :  { %v2459_v44 = vadd.f32 1e-05, %v2458_v11 }
 0xe25   :  { %3507 = vrsqrt.f32 %v2459_v44 }
 0xe2f   :  { %v3508_v54 = vpop.eup %3507 }
 0xe30   :  { %v2461_v34 = vmul.f32 %v3508_v54, %v2441_v12  ;;  %v2462_v53 = vmul.f32 %v3508_v54, %v2442_v10  ;;  %v2463_v29 = vmul.f32 %v3508_v54, %v2443_v49  ;;  %v2464_v38 = vmul.f32 %v3508_v54, %v2444_v27 }
 0xe32   :  { %v2481_v60 = vmul.f32 %v2467_v57, %v2461_v34  ;;  %v2482_v15 = vmul.f32 %v2471_v17, %v2462_v53  ;;  %v2483_v43 = vmul.f32 %v2475_v46, %v2463_v29  ;;  %v2484_v26 = vmul.f32 %v2479_v50, %v2464_v38 }
 0xe34   :  { %v2501_v45 = vadd.f32 %v2487_v40, %v2481_v60  ;;  %v2502_v30 = vadd.f32 %v2491_v31, %v2482_v15  ;;  %v2504_v63 = vadd.f32 %v2499_v16, %v2484_v26  ;;  %v2503_v18 = vadd.f32 %v2495_v58, %v2483_v43 }
 0xe36   :  { %v2509_v7 = vpack.c.bf16 %v2502_v30, %v2501_v45  ;;  %v2510_v52 = vpack.c.bf16 %v2504_v63, %v2503_v18 }
 0xe38   :  { %3171 = vmatprep.subr.bf16.mxu1 %v2509_v7 }
 0xe39   :  { %3172 = vmatpush3.bf16.msra.mxu1 %v2509_v7 }
 0xe3a   :  { %3173 = vmatprep.subr.bf16.mxu1 %v2510_v52 }
 0xe3d   :  { %3174 = vmatpush3.bf16.msra.mxu1 %v2510_v52 }
 0xe40   :  { %3176 = vmatmul.mubr.msk.bf16.vlgmr.msra.gmra.mrb[52].mxu1 %vm156_vm0, %v3246_v5 }
 0xe41   :  { %3183 = vmatprep.mubr.msk.bf16.mxu1 %vm156_vm0, %v3247_v4 }
 0xf13   :  { %v3177_v28 = vpop.f32.mrb[52].mxu1 }
 0xf14   :  { %v4611_v32 = vadd.f32 %v3177_v28, %v2521_v59  ;;  %v2577_v2 = vpop.f32.mrb[53].mxu1 }
 0xf15   :  { %v4613_v3 = vadd.f32 %v2577_v2, %v2513_v24  ;;  %v3178_v61 = vpop.f32.mrb[54].mxu1 }
 0xf16   :  { %v4616_v35 = vmul.f32 0.70710677, %v4611_v32  ;;  %v4618_v21 = vadd.f32 %v3178_v61, %v2525_v42  ;;  %v2580_v8 = vpop.f32.mrb[55].mxu1 }
 0xf17   :  { %v4621_v13 = vmul.f32 0.70710677, %v4613_v3  ;;  %v4627_v10 = vadd.f32 %v2580_v8, %v2517_v1 }
 0xf18   :  { %v2610_v41 = vand.u32 2147483647, %v4616_v35  ;;  %v4625_v48 = vmul.f32 0.70710677, %v4618_v21  ;;  %vm2602_vm6 = vcmp.ge.f32.partialorder %v4616_v35, 0.0 }
 0xf19   :  { %v2608_v12 = vand.u32 2147483647, %v4621_v13  ;;  %v4632_v22 = vmul.f32 0.70710677, %v4627_v10  ;;  %vm2600_vm7 = vcmp.ge.f32.partialorder %v4621_v13, 0.0 }
 0xf1a   :  { %v2614_v49 = vmul.f32 0.3275911, %v2610_v41  ;;  %v2611_v0 = vand.u32 2147483647, %v4625_v48  ;;  %v2662_v19 = vsub.f32 0.0, %v2610_v41  ;;  %vm2603_vm8 = vcmp.ge.f32.partialorder %v4625_v48, 0.0 }
 0xf1b   :  { %v2612_v27 = vmul.f32 0.3275911, %v2608_v12  ;;  %v2609_v56 = vand.u32 2147483647, %v4632_v22  ;;  %v2660_v57 = vsub.f32 0.0, %v2608_v12  ;;  %vm2601_vm9 = vcmp.ge.f32.partialorder %v4632_v22, 0.0 }
 0xf1c   :  { %v2618_v6 = vadd.f32 1.0, %v2614_v49  ;;  %v2615_v36 = vmul.f32 0.3275911, %v2611_v0  ;;  %v2666_v47 = vmul.f32 %v2662_v19, %v2610_v41  ;;  %v2663_v39 = vsub.f32 0.0, %v2611_v0 }
 0xf1d   :  { %v2616_v23 = vadd.f32 1.0, %v2612_v27  ;;  %v2613_v25 = vmul.f32 0.3275911, %v2609_v56  ;;  %v2664_v44 = vmul.f32 %v2660_v57, %v2608_v12  ;;  %v2661_v31 = vsub.f32 0.0, %v2609_v56 }
 0xf1e   :  { %3509 = vrcp.f32 %v2618_v6  ;;  %v2619_v14 = vadd.f32 1.0, %v2615_v36  ;;  %v2672_v54 = vmul.f32 1.442695, %v2666_v47  ;;  %v2667_v53 = vmul.f32 %v2663_v39, %v2611_v0 }
 0xf1f   :  { %3511 = vrcp.f32 %v2616_v23  ;;  %v2617_v62 = vadd.f32 1.0, %v2613_v25  ;;  %v2668_v38 = vmul.f32 1.442695, %v2664_v44  ;;  %v2665_v15 = vmul.f32 %v2661_v31, %v2609_v56 }
 0xf20   :  { %3513 = vrcp.f32 %v2619_v14  ;;  %v2674_v63 = vmul.f32 1.442695, %v2667_v53  ;;  %v3572_v44 = vmov -1.0  }
 0xf21   :  { %3515 = vrcp.f32 %v2617_v62  ;;  %v2670_v4 = vmul.f32 1.442695, %v2665_v15  ;;  %v2604_v35 = vsel %vm2600_vm7, 1.0, %v3572_v44  ;;  %v2605_v15 = vsel %vm2601_vm9, 1.0, %v3572_v44 }
 0xf22   :  { %3517 = vpow2.f32 %v2672_v54 }
 0xf23   :  { %3519 = vpow2.f32 %v2668_v38  ;;  %v2607_v38 = vsel %vm2603_vm8, 1.0, %v3572_v44 }
 0xf24   :  { %3521 = vpow2.f32 %v2674_v63 }
 0xf25   :  { %3523 = vpow2.f32 %v2670_v4 }
 0xf28   :  { %v3510_v55 = vpop.eup %3509 }
 0xf29   :  { %v3512_v11 = vpop.eup %3511  ;;  %v2626_v40 = vmul.f32 1.0614054, %v3510_v55 }
 0xf2a   :  { %v2624_v17 = vmul.f32 1.0614054, %v3512_v11  ;;  %v3514_v50 = vpop.eup %3513 }
 0xf2b   :  { %v2630_v46 = vadd.f32 -1.4531521, %v2626_v40  ;;  %v2627_v16 = vmul.f32 1.0614054, %v3514_v50  ;;  %v3516_v58 = vpop.eup %3515 }
 0xf2c   :  { %v2628_v34 = vadd.f32 -1.4531521, %v2624_v17  ;;  %v2625_v45 = vmul.f32 1.0614054, %v3516_v58  ;;  %v3518_v23 = vpop.eup %3517  ;;  %v2606_v17 = vsel %vm2602_vm6, 1.0, %v3572_v44 }
 0xf2d   :  { %v2634_v29 = vmul.f32 %v3510_v55, %v2630_v46  ;;  %v2631_v26 = vadd.f32 -1.4531521, %v2627_v16  ;;  %v3520_v56 = vpop.eup %3519 }
 0xf2e   :  { %v2632_v60 = vmul.f32 %v3512_v11, %v2628_v34  ;;  %v2629_v52 = vadd.f32 -1.4531521, %v2625_v45  ;;  %v3522_v40 = vpop.eup %3521 }
 0xf2f   :  { %v2638_v43 = vadd.f32 1.4214138, %v2634_v29  ;;  %v2635_v7 = vmul.f32 %v3514_v50, %v2631_v26  ;;  %v3524_v54 = vpop.eup %3523  ;;  %v2595_v26 = vmul.f32 0.5, %v4618_v21  ;;  %v2704_v21 = vpop.permute.xlu0 %2703 }
 0xf30   :  { %v2636_v30 = vadd.f32 1.4214138, %v2632_v60  ;;  %v2633_v59 = vmul.f32 %v3516_v58, %v2629_v52  ;;  %v2594_v60 = vmul.f32 0.5, %v4611_v32  ;;  %v3248_v32 = vld [vmem:[%s4668_s5 + $0x8] sm:$0xff]   ;;  %s3535_s5 = scalar_lea.vmem %s2797_s29, 512 }
 0xf31   :  { %v2642_v18 = vmul.f32 %v3510_v55, %v2638_v43  ;;  %v2639_v24 = vadd.f32 1.4214138, %v2635_v7  ;;  %p3536_p0 = scmp.ne.s32.totalorder %s2797_s29, %s3535_s5  ;;  %p3541_p2 = scmp.lt.s32.totalorder %s3535_s5, %s3535_s5 }
 0xf32   :  { %v2640_v5 = vmul.f32 %v3512_v11, %v2636_v30  ;;  %v2637_v61 = vadd.f32 1.4214138, %v2633_v59 }
 0xf33   :  { %v2646_v51 = vadd.f32 -0.28449672, %v2642_v18  ;;  %v2643_v2 = vmul.f32 %v3514_v50, %v2639_v24  ;;  %v2593_v18 = vmul.f32 0.5, %v4627_v10  ;;  %p3542_p3 = por %p3541_p2, %p3540_p1 }
 0xf34   :  { %v2644_v28 = vadd.f32 -0.28449672, %v2640_v5  ;;  %v2641_v12 = vmul.f32 %v3516_v58, %v2637_v61 }
 0xf35   :  { %v2650_v42 = vmul.f32 %v3510_v55, %v2646_v51  ;;  %v2647_v41 = vadd.f32 -0.28449672, %v2643_v2  ;;  %p3543_p4 = pnand %p3542_p3, %p3536_p0 }
 0xf36   :  { %v2648_v1 = vmul.f32 %v3512_v11, %v2644_v28  ;;  %v2645_v6 = vadd.f32 -0.28449672, %v2641_v12  ;;  %v2716_v28 = vpop.permute.xlu0 %2715 }
 0xf37   :  { %v2654_v8 = vadd.f32 0.2548296, %v2650_v42  ;;  %v2651_v0 = vmul.f32 %v3514_v50, %v2647_v41 }
 0xf38   :  { %v2652_v49 = vadd.f32 0.2548296, %v2648_v1  ;;  %v2649_v62 = vmul.f32 %v3516_v58, %v2645_v6 }
 0xf39   :  { %v2658_v27 = vmul.f32 %v3510_v55, %v2654_v8  ;;  %v2655_v25 = vadd.f32 0.2548296, %v2651_v0 }
 0xf3a   :  { %v2656_v36 = vmul.f32 %v3512_v11, %v2652_v49  ;;  %v2653_v39 = vadd.f32 0.2548296, %v2649_v62 }
 0xf3b   :  { %v2678_v14 = vmul.f32 %v3518_v23, %v2658_v27  ;;  %v2659_v47 = vmul.f32 %v3514_v50, %v2655_v25 }
 0xf3c   :  { %v2676_v19 = vmul.f32 %v3520_v56, %v2656_v36  ;;  %v2657_v46 = vmul.f32 %v3516_v58, %v2653_v39  ;;  %v2592_v58 = vmul.f32 0.5, %v4613_v3  ;;  %v2708_v3 = vpop.permute.xlu1 %2707 }
 0xf3d   :  { %v2682_v57 = vsub.f32 1.0, %v2678_v14  ;;  %v2679_v11 = vmul.f32 %v3522_v40, %v2659_v47 }
 0xf3e   :  { %v2680_v55 = vsub.f32 1.0, %v2676_v19  ;;  %v2677_v29 = vmul.f32 %v3524_v54, %v2657_v46 }
 0xf3f   :  { %v2686_v31 = vmul.f32 %v2682_v57, %v2606_v17  ;;  %v2683_v53 = vsub.f32 1.0, %v2679_v11 }
 0xf40   :  { %v2684_v34 = vmul.f32 %v2680_v55, %v2604_v35  ;;  %v2681_v16 = vsub.f32 1.0, %v2677_v29  ;;  %v2712_v51 = vpop.permute.xlu1 %2711 }
 0xf41   :  { %v2690_v13 = vadd.f32 1.0, %v2686_v31  ;;  %v2687_v50 = vmul.f32 %v2683_v53, %v2607_v38 }
 0xf42   :  { %v2688_v43 = vadd.f32 1.0, %v2684_v34  ;;  %v2685_v45 = vmul.f32 %v2681_v16, %v2605_v15 }
 0xf43   :  { %v2691_v48 = vadd.f32 1.0, %v2687_v50  ;;  %v2694_v30 = vmul.f32 %v2690_v13, %v2594_v60 }
 0xf44   :  { %v2689_v22 = vadd.f32 1.0, %v2685_v45  ;;  %v2692_v7 = vmul.f32 %v2688_v43, %v2592_v58 }
 0xf45   :  { %v2695_v63 = vmul.f32 %v2691_v48, %v2595_v26 }
 0xf46   :  { %v2693_v52 = vmul.f32 %v2689_v22, %v2593_v18 }
 0xf47   :  { %v2701_v5 = vpack.c.bf16 %v2695_v63, %v2694_v30 }
 0xf48   :  { %v2700_v4 = vpack.c.bf16 %v2693_v52, %v2692_v7 }
 0xf4a   :  { %3179 = vmatprep.subr.bf16.mxu1 %v2700_v4 }
 0xf4b   :  { %3180 = vmatpush3.bf16.msra.mxu1 %v2700_v4 }
 0xf4c   :  { %3181 = vmatprep.subr.bf16.mxu1 %v2701_v5 }
 0xf4f   :  { %3182 = vmatpush3.bf16.msra.mxu1 %v2701_v5 }
 0xf52   :  { %3184 = vmatmul.mubr.msk.bf16.vlgmr.msra.gmra.mrb[56].mxu1 %vm156_vm0, %v3248_v32 }
0x1025   :  { %v3185_v24 = vpop.f32.mrb[56].mxu1 }
0x1026   :  { %v2777_v10 = vadd.f32 %v3185_v24, %v2712_v51  ;;  %v2768_v59 = vpop.f32.mrb[57].mxu1 }
0x1027   :  { %v2769_v42 = vadd.f32 %v2768_v59, %v2704_v21  ;;  %v3186_v2 = vpop.f32.mrb[58].mxu1 }
0x1028   :  { %v2785_v61 = vadd.f32 %v2777_v10, %v4584_v37  ;;  %v2780_v1 = vadd.f32 %v3186_v2, %v2716_v28  ;;  %v2771_v8 = vpop.f32.mrb[59].mxu1 }
0x1029   :  { %v2783_v41 = vadd.f32 %v2769_v42, %v4574_v9  ;;  %v2772_v12 = vadd.f32 %v2771_v8, %v2708_v3 }
0x102a   :  { %2789 = vst [vmem:[#allocation3 + $0x10] sm:$0xff] %v2785_v61  ;;  %v2786_v49 = vadd.f32 %v2780_v1, %v4591_v20 }
0x102b   :  { %2787 = vst [vmem:[#allocation3] sm:$0xff] %v2783_v41  ;;  %v2784_v27 = vadd.f32 %v2772_v12, %v4579_v33 }
0x102c   :  { %2790 = vst [vmem:[#allocation3 + $0x18] sm:$0xff] %v2786_v49 }
0x102d   :  { %2788 = vst [vmem:[#allocation3 + $0x8] sm:$0xff] %v2784_v27 }
0x102e   :  { %3546 = shalt.err (!%p3543_p4)
}
0x102f   :  { %s3547_s8 = scalar_lea.hbm %s4669_s6, 512 }
0x1030   :  { %p3548_p5 = scmp.ne.s32.totalorder %s4669_s6, %s3547_s8  ;;  %p3551_p6 = scmp.lt.u32.totalorder %s3547_s8, %s4669_s6 }
0x1032   :  { %p3553_p7 = pnand %p3551_p6, %p3548_p5 }
0x1034   :  { %3556 = shalt.err (!%p3553_p7)
}
0x1035   :  { %s3574_s13 = smov 128   ;;  %s3575_s14 = smov 8  }
0x1036   :  { %2802 = dma.vmem_to_hbm [thread:$0]  %s2797_s29, 512, %s4669_s6, [#allocation4], %s3574_s13, %s3574_s13, %s3575_s14  }
0x1037   :  { %3557 = dma.done.wait [#allocation4], 512  }
0x1038   :  { %3558 = vsyncadd [#allocation4], 4294966784 }
0x1039   :  { %2806 = vsyncpa [#allocation4], 1 }

</bundles_post_ra>
